<compile_context>
chip_gen: v7x
topology: tpu7x:2x2x1
jax: 0.10.0
libtpu: 0.0.40
codegen_flags: <defaults>
</compile_context>

<pallas_src>
import functools

import jax
import jax.numpy as jnp
from jax.experimental import pallas as pl
from jax.experimental.pallas import tpu as pltpu


ROW_TILE = 512  # row tile for all [rows, feat] kernels (multiple of 8)


def _mosaic(*sem):
    return pltpu.CompilerParams(dimension_semantics=sem)


def _round_up(x, m):
    return (x + m - 1) // m * m


def _prep_rows(x, tm):
    """Pad rows to a multiple of 8 (usually a no-op) and pick a row tile / grid."""
    rows = x.shape[0]
    rows_al = _round_up(rows, 8)
    if rows_al != rows:
        x = jnp.pad(x, ((0, rows_al - rows), (0, 0)))
    tm_eff = min(tm, rows_al)
    grid = pl.cdiv(rows_al, tm_eff)
    return x, rows, rows_al, tm_eff, grid


def _pad_rows_to(x, rows_al):
    return x if x.shape[0] == rows_al else jnp.pad(x, ((0, rows_al - x.shape[0]), (0, 0)))


# --------------------------------------------------------------------------------------
# Pallas kernels (row-tiled matmul family)
# --------------------------------------------------------------------------------------
def _mm_kernel(x_ref, w_ref, b_ref, o_ref, *, act):
    y = jnp.dot(x_ref[...], w_ref[...], preferred_element_type=jnp.float32) + b_ref[...]
    if act == "relu":
        y = jnp.maximum(y, 0.0)
    o_ref[...] = y.astype(o_ref.dtype)


def pallas_linear(x, w, b=None, act="none", tm=ROW_TILE):
    """y = act(x @ w + b);  x: [rows, k], w: [k, n]."""
    kdim = x.shape[1]
    nout = w.shape[1]
    b2 = jnp.zeros((1, nout), jnp.float32) if b is None else b.reshape(1, nout).astype(jnp.float32)
    xp, rows, rows_al, tm_eff, grid = _prep_rows(x, tm)
    out = pl.pallas_call(
        functools.partial(_mm_kernel, act=act),
        out_shape=jax.ShapeDtypeStruct((rows_al, nout), jnp.float32),
        grid=(grid,),
        in_specs=[
            pl.BlockSpec((tm_eff, kdim), lambda i: (i, 0)),
            pl.BlockSpec((kdim, nout), lambda i: (0, 0)),
            pl.BlockSpec((1, nout), lambda i: (0, 0)),
        ],
        out_specs=pl.BlockSpec((tm_eff, nout), lambda i: (i, 0)),
        compiler_params=_mosaic("parallel"),
    )(xp, w, b2)
    return out if rows == rows_al else out[:rows]


def _ln_mm_kernel(x_ref, g_ref, bt_ref, w_ref, b_ref, o_ref, *, eps):
    """Fused LayerNorm(feature) -> 1x1 conv (bottleneck)."""
    x = x_ref[...]
    mu = jnp.mean(x, axis=-1, keepdims=True)
    var = jnp.mean((x - mu) ** 2, axis=-1, keepdims=True)
    xn = (x - mu) * jax.lax.rsqrt(var + eps) * g_ref[...] + bt_ref[...]
    o_ref[...] = (jnp.dot(xn, w_ref[...], preferred_element_type=jnp.float32)
                  + b_ref[...]).astype(o_ref.dtype)


def pallas_ln_linear(x, gamma, beta, w, b, eps=1e-5, tm=ROW_TILE):
    kdim = x.shape[1]
    nout = w.shape[1]
    xp, rows, rows_al, tm_eff, grid = _prep_rows(x, tm)
    out = pl.pallas_call(
        functools.partial(_ln_mm_kernel, eps=eps),
        out_shape=jax.ShapeDtypeStruct((rows_al, nout), jnp.float32),
        grid=(grid,),
        in_specs=[
            pl.BlockSpec((tm_eff, kdim), lambda i: (i, 0)),
            pl.BlockSpec((1, kdim), lambda i: (0, 0)),
            pl.BlockSpec((1, kdim), lambda i: (0, 0)),
            pl.BlockSpec((kdim, nout), lambda i: (0, 0)),
            pl.BlockSpec((1, nout), lambda i: (0, 0)),
        ],
        out_specs=pl.BlockSpec((tm_eff, nout), lambda i: (i, 0)),
        compiler_params=_mosaic("parallel"),
    )(xp, gamma.reshape(1, kdim), beta.reshape(1, kdim), w,
      b.reshape(1, nout).astype(jnp.float32))
    return out if rows == rows_al else out[:rows]


def _fc_ln_res_kernel(h_ref, r_ref, w_ref, b_ref, g_ref, bt_ref, o_ref, *, eps):
    """Fused post-LSTM projection: residual + LayerNorm(h @ W + b)."""
    y = jnp.dot(h_ref[...], w_ref[...], preferred_element_type=jnp.float32) + b_ref[...]
    mu = jnp.mean(y, axis=-1, keepdims=True)
    var = jnp.mean((y - mu) ** 2, axis=-1, keepdims=True)
    y = (y - mu) * jax.lax.rsqrt(var + eps) * g_ref[...] + bt_ref[...]
    o_ref[...] = (r_ref[...] + y).astype(o_ref.dtype)


def pallas_fc_ln_res(h, res, w, b, gamma, beta, eps=1e-5, tm=ROW_TILE):
    hdim = h.shape[1]
    nout = w.shape[1]
    hp, rows, rows_al, tm_eff, grid = _prep_rows(h, tm)
    rp = _pad_rows_to(res, rows_al)
    out = pl.pallas_call(
        functools.partial(_fc_ln_res_kernel, eps=eps),
        out_shape=jax.ShapeDtypeStruct((rows_al, nout), jnp.float32),
        grid=(grid,),
        in_specs=[
            pl.BlockSpec((tm_eff, hdim), lambda i: (i, 0)),
            pl.BlockSpec((tm_eff, nout), lambda i: (i, 0)),
            pl.BlockSpec((hdim, nout), lambda i: (0, 0)),
            pl.BlockSpec((1, nout), lambda i: (0, 0)),
            pl.BlockSpec((1, nout), lambda i: (0, 0)),
            pl.BlockSpec((1, nout), lambda i: (0, 0)),
        ],
        out_specs=pl.BlockSpec((tm_eff, nout), lambda i: (i, 0)),
        compiler_params=_mosaic("parallel"),
    )(hp, rp, w, b.reshape(1, nout).astype(jnp.float32),
      gamma.reshape(1, nout), beta.reshape(1, nout))
    return out if rows == rows_al else out[:rows]


def _prelu_mm_kernel(x_ref, a_ref, w_ref, b_ref, o_ref):
    """Fused PReLU (single shared alpha, from SMEM) -> 1x1 conv (B -> N)."""
    x = x_ref[...]
    a = a_ref[0, 0]
    x = jnp.where(x >= 0.0, x, a * x)
    o_ref[...] = (jnp.dot(x, w_ref[...], preferred_element_type=jnp.float32)
                  + b_ref[...]).astype(o_ref.dtype)


def pallas_prelu_linear(x, alpha, w, b, tm=ROW_TILE):
    kdim = x.shape[1]
    nout = w.shape[1]
    xp, rows, rows_al, tm_eff, grid = _prep_rows(x, tm)
    out = pl.pallas_call(
        _prelu_mm_kernel,
        out_shape=jax.ShapeDtypeStruct((rows_al, nout), jnp.float32),
        grid=(grid,),
        in_specs=[
            pl.BlockSpec((tm_eff, kdim), lambda i: (i, 0)),
            pl.BlockSpec(memory_space=pltpu.MemorySpace.SMEM),   # scalar alpha
            pl.BlockSpec((kdim, nout), lambda i: (0, 0)),
            pl.BlockSpec((1, nout), lambda i: (0, 0)),
        ],
        out_specs=pl.BlockSpec((tm_eff, nout), lambda i: (i, 0)),
        compiler_params=_mosaic("parallel"),
    )(xp, alpha, w, b.reshape(1, nout).astype(jnp.float32))
    return out if rows == rows_al else out[:rows]


def _mask_decode_kernel(en_ref, m_ref, w_ref, o_ref):
    """Fused ReLU mask + mask-apply + ConvTranspose1d frame matmul (N -> L)."""
    est = en_ref[...] * jnp.maximum(m_ref[...], 0.0)
    o_ref[...] = jnp.dot(est, w_ref[...], preferred_element_type=jnp.float32).astype(o_ref.dtype)


def pallas_mask_decode(en, mask, w, tm=ROW_TILE):
    kdim = en.shape[1]
    nout = w.shape[1]
    enp, rows, rows_al, tm_eff, grid = _prep_rows(en, tm)
    mp = _pad_rows_to(mask, rows_al)
    out = pl.pallas_call(
        _mask_decode_kernel,
        out_shape=jax.ShapeDtypeStruct((rows_al, nout), jnp.float32),
        grid=(grid,),
        in_specs=[
            pl.BlockSpec((tm_eff, kdim), lambda i: (i, 0)),
            pl.BlockSpec((tm_eff, kdim), lambda i: (i, 0)),
            pl.BlockSpec((kdim, nout), lambda i: (0, 0)),
        ],
        out_specs=pl.BlockSpec((tm_eff, nout), lambda i: (i, 0)),
        compiler_params=_mosaic("parallel"),
    )(enp, mp, w)
    return out if rows == rows_al else out[:rows]


# --------------------------------------------------------------------------------------
# LSTM recurrence kernel (input projection hoisted; grid = (Bseq tiles, time))
# --------------------------------------------------------------------------------------
def _lstm_scan_kernel(xg_ref, whh_ref, ho_ref, h_sc, c_sc):
    """One LSTM timestep.  Grid axis 1 is the (sequential) time axis; h/c live in VMEM
    scratch and carry across grid steps.  xg_ref already holds x @ Wih + bias.
    PyTorch gate order (i, f, g, o)."""
    @pl.when(pl.program_id(1) == 0)
    def _():
        h_sc[...] = jnp.zeros_like(h_sc)
        c_sc[...] = jnp.zeros_like(c_sc)

    H = h_sc.shape[-1]
    gates = xg_ref[...] + jnp.dot(h_sc[...], whh_ref[...],
                                  preferred_element_type=jnp.float32)
    i_g = jax.nn.sigmoid(gates[:, 0 * H:1 * H])
    f_g = jax.nn.sigmoid(gates[:, 1 * H:2 * H])
    g_g = jnp.tanh(gates[:, 2 * H:3 * H])
    o_g = jax.nn.sigmoid(gates[:, 3 * H:4 * H])
    c = f_g * c_sc[...] + i_g * g_g
    h = o_g * jnp.tanh(c)
    c_sc[...] = c
    h_sc[...] = h
    ho_ref[...] = h


def pallas_lstm(xg, whh, bseq_tile=256):
    """xg: [T, Bseq, 4H] precomputed input projections (x@Wih + b), time-major.
    whh: [H, 4H].  Returns hidden states [T, Bseq, H] (zero initial state)."""
    T, Bseq, G = xg.shape
    H = whh.shape[0]
    bs = Bseq if Bseq <= bseq_tile else bseq_tile   # full dim, or an 8-aligned tile
    nb = pl.cdiv(Bseq, bs)
    return pl.pallas_call(
        _lstm_scan_kernel,
        out_shape=jax.ShapeDtypeStruct((T, Bseq, H), jnp.float32),
        grid=(nb, T),
        in_specs=[
            pl.BlockSpec((None, bs, G), lambda b, t: (t, b, 0)),
            pl.BlockSpec((H, G), lambda b, t: (0, 0)),
        ],
        out_specs=pl.BlockSpec((None, bs, H), lambda b, t: (t, b, 0)),
        scratch_shapes=[
            pltpu.VMEM((bs, H), jnp.float32),
            pltpu.VMEM((bs, H), jnp.float32),
        ],
        compiler_params=_mosaic("parallel", "arbitrary"),
    )(xg, whh)


# --------------------------------------------------------------------------------------
# JAX glue (framing, segmentation, overlap-add) — index plumbing only, no heavy compute.
# --------------------------------------------------------------------------------------
def encode(sig, W, L, stride):
    """Conv1d(1, N, L, stride, bias=False) + ReLU as a framed matmul -> [M, Te, N]."""
    M, T = sig.shape
    Te = (T - L) // stride + 1
    idx = jnp.arange(Te)[:, None] * stride + jnp.arange(L)[None, :]
    frames = sig[:, idx]                                    # [M, Te, L]
    y = pallas_linear(frames.reshape(M * Te, L), W, None, act="relu")
    return y.reshape(M, Te, W.shape[1])


def _segment_tln(x, K):
    """x: [M, T, C] -> ([K, S, M, C], gap).  50%-overlap chunking as in DPRNN-TasNet."""
    M, T, C = x.shape
    P = K // 2
    gap = K - (P + T % K) % K
    if gap > 0:
        x = jnp.pad(x, ((0, 0), (0, gap), (0, 0)))
    x = jnp.pad(x, ((0, 0), (P, P), (0, 0)))
    Lp = x.shape[1]
    S1 = (Lp - P) // K
    x1 = x[:, :Lp - P, :].reshape(M, S1, K, C)
    x2 = x[:, P:, :].reshape(M, S1, K, C)
    xx = jnp.stack([x1, x2], axis=2).reshape(M, 2 * S1, K, C)  # interleaved chunks
    return jnp.transpose(xx, (2, 1, 0, 3)), gap                # [K, S, M, C]


def _over_add_tln(y, gap):
    """Inverse of _segment_tln: [K, S, M, C] -> [M, T, C]."""
    Kc, S, M, C = y.shape
    P = Kc // 2
    S1 = S // 2
    y = jnp.transpose(y, (2, 1, 0, 3)).reshape(M, S1, 2, Kc, C)
    y1 = y[:, :, 0].reshape(M, S1 * Kc, C)[:, P:, :]
    y2 = y[:, :, 1].reshape(M, S1 * Kc, C)[:, : S1 * Kc - P, :]
    out = y1 + y2
    if gap > 0:
        out = out[:, :-gap, :]
    return out


# --------------------------------------------------------------------------------------
# Parameters & forward pass
# --------------------------------------------------------------------------------------
def init_params(key, N, L, B, H, R):
    def nrm(k, shape, scale=0.1):
        return scale * jax.random.normal(k, shape, jnp.float32)

    keys = iter(jax.random.split(key, 8 + 8 * R))
    p = {
        "enc_noisy_W": nrm(next(keys), (L, N)),
        "enc_refer_W": nrm(next(keys), (L, N)),
        "ln_in_g": jnp.ones((N,), jnp.float32),
        "ln_in_b": jnp.zeros((N,), jnp.float32),
        "bn_W": nrm(next(keys), (N, B)),
        "bn_b": jnp.zeros((B,), jnp.float32),
        "spk_W": nrm(next(keys), (N, B)),
        "spk_b": jnp.zeros((B,), jnp.float32),
        "prelu_a": jnp.array([[0.25]], jnp.float32),   # nn.PReLU() single shared alpha
        "out_W": nrm(next(keys), (B, N)),
        "out_b": jnp.zeros((N,), jnp.float32),
        "dec_W": nrm(next(keys), (N, L)),
    }
    blocks = []
    for _ in range(R):
        blk = {}
        for path in ("intra", "inter"):
            blk[f"{path}_Wih"] = nrm(next(keys), (B, 4 * H))
            blk[f"{path}_Whh"] = nrm(next(keys), (H, 4 * H))
            blk[f"{path}_b"] = jnp.zeros((4 * H,), jnp.float32)      # b_ih + b_hh combined
            blk[f"{path}_fc_W"] = nrm(next(keys), (H, B))
            blk[f"{path}_fc_b"] = jnp.zeros((B,), jnp.float32)
            blk[f"{path}_ln_g"] = jnp.ones((B,), jnp.float32)
            blk[f"{path}_ln_b"] = jnp.zeros((B,), jnp.float32)
        blocks.append(blk)
    p["blocks"] = blocks
    return p


def tf_dsdprnn_forward(params, noisy, refer, *, N, L, B, H, R, K, stride):
    M, T = noisy.shape

    # ---- Encoders (noisy / reference speaker) ----
    noisy_en = encode(noisy, params["enc_noisy_W"], L, stride)   # [M, Te, N]
    refer_en = encode(refer, params["enc_refer_W"], L, stride)   # [M, Te_r, N]
    Te = noisy_en.shape[1]

    # ---- Mask estimator (DPRNN_ME): fused LayerNorm + bottleneck 1x1 conv ----
    x = pallas_ln_linear(noisy_en.reshape(M * Te, N),
                         params["ln_in_g"], params["ln_in_b"],
                         params["bn_W"], params["bn_b"])          # [M*Te, B]
    x = x.reshape(M, Te, B)

    # speaker embedding fuse
    spk = jnp.mean(refer_en, axis=1)                              # [M, N]
    e = pallas_linear(spk, params["spk_W"], params["spk_b"])      # [M, B]
    x = x + e[:, None, :]

    seg, gap = _segment_tln(x, K)                                 # [K, S, M, B]
    S = seg.shape[1]

    for blk in params["blocks"]:
        # ---- intra-chunk path: recurrence over K, batch = S*M sequences ----
        rows = seg.reshape(-1, B)                                            # (k, s, m)
        xg = pallas_linear(rows, blk["intra_Wih"], blk["intra_b"])           # hoisted x@Wih
        h = pallas_lstm(xg.reshape(K, S * M, 4 * H), blk["intra_Whh"])
        seg = pallas_fc_ln_res(h.reshape(-1, H), rows,
                               blk["intra_fc_W"], blk["intra_fc_b"],
                               blk["intra_ln_g"], blk["intra_ln_b"]).reshape(K, S, M, B)

        # ---- inter-chunk path: recurrence over S, batch = K*M sequences ----
        seg_s = jnp.transpose(seg, (1, 0, 2, 3))                             # [S, K, M, B]
        rows = seg_s.reshape(-1, B)                                          # (s, k, m)
        xg = pallas_linear(rows, blk["inter_Wih"], blk["inter_b"])
        h = pallas_lstm(xg.reshape(S, K * M, 4 * H), blk["inter_Whh"])
        seg_s = pallas_fc_ln_res(h.reshape(-1, H), rows,
                                 blk["inter_fc_W"], blk["inter_fc_b"],
                                 blk["inter_ln_g"], blk["inter_ln_b"]).reshape(S, K, M, B)
        seg = jnp.transpose(seg_s, (1, 0, 2, 3))                             # [K, S, M, B]

    # ---- output layer: fused PReLU -> 1x1 conv (B -> N), then overlap-add mask ----
    o = pallas_prelu_linear(seg.reshape(-1, B), params["prelu_a"],
                            params["out_W"], params["out_b"])     # [K*S*M, N]
    mask = _over_add_tln(o.reshape(K, S, M, N), gap)              # [M, Te, N]

    # ---- Decoder: fused relu(mask) * encoder feats + ConvTranspose1d frame matmul ----
    frames = pallas_mask_decode(noisy_en.reshape(M * Te, N),
                                mask.reshape(M * Te, N),
                                params["dec_W"]).reshape(M, Te, L)

    # ConvTranspose1d(N, 1, L, stride, bias=False) overlap-add.  stride | L, so the scatter
    # folds into L//stride shifted adds of contiguous chunks.
    # TODO(synk): the overlap-add itself stays in XLA (pad + add); it is pure data movement.
    T_out = (Te - 1) * stride + L
    if L % stride == 0:
        n_sub = L // stride
        f4 = frames.reshape(M, Te, n_sub, stride)
        chunks = [jnp.pad(f4[:, :, c, :], ((0, 0), (c, n_sub - 1 - c), (0, 0)))
                  for c in range(n_sub)]
        out = sum(chunks).reshape(M, T_out)
    else:
        out = jnp.zeros((M, T_out), jnp.float32)
        for l in range(L):
            out = out.at[:, l: l + stride * (Te - 1) + 1: stride].add(frames[:, :, l])
    return out[:, :T]                                             # clean[:, :length]


# --------------------------------------------------------------------------------------
if __name__ == "__main__":
    # small config consistent with TF_DSDPRNN(N, L, B, H, R, K, stride=...)
    N, L, B, H, R, K = 16, 8, 8, 16, 2, 10
    stride = 4
    M, T = 2, 132  # batch, waveform samples -> 32 encoder frames

    key = jax.random.PRNGKey(0)
    k_noisy, k_refer, k_par = jax.random.split(key, 3)
    noisy = jax.random.normal(k_noisy, (M, T), jnp.float32)
    refer = jax.random.normal(k_refer, (M, T), jnp.float32)
    params = init_params(k_par, N, L, B, H, R)

    fwd = jax.jit(functools.partial(
        tf_dsdprnn_forward, N=N, L=L, B=B, H=H, R=R, K=K, stride=stride))
    clean = jax.block_until_ready(fwd(params, noisy, refer))

    assert clean.shape == (M, T), clean.shape
    assert bool(jnp.isfinite(clean).all())
    print("KERNEL_OK")
</pallas_src>

<mosaic_0001>
module attributes {stable_mosaic.version = 11 : i64} {
  func.func @_mm_kernel(%arg0: i32, %arg1: memref<64x8xf32, #tpu.memory_space<vmem>>, %arg2: memref<8x16xf32, #tpu.memory_space<vmem>>, %arg3: memref<1x16xf32, #tpu.memory_space<vmem>>, %arg4: memref<64x16xf32, #tpu.memory_space<vmem>>) attributes {dimension_semantics = [#tpu.dimension_semantics<parallel>], iteration_bounds = array<i64: 1>, scalar_prefetch = 0 : i64, scratch_operands = 0 : i64, tpu.core_type = #tpu.core_type<tc>, window_params = [{transform_indices = @transform_0, window_bounds = array<i64: 64, 8>}, {pipeline_mode = #tpu.pipeline_mode<synchronous>, transform_indices = @transform_1, window_bounds = array<i64: 8, 16>}, {pipeline_mode = #tpu.pipeline_mode<synchronous>, transform_indices = @transform_2, window_bounds = array<i64: 1, 16>}, {transform_indices = @transform_3, window_bounds = array<i64: 64, 16>}]} {
    %c0 = arith.constant 0 : index
    %c0_0 = arith.constant 0 : index
    %0 = vector.load %arg1[%c0, %c0_0] : memref<64x8xf32, #tpu.memory_space<vmem>>, vector<64x8xf32>
    %c0_1 = arith.constant 0 : index
    %c0_2 = arith.constant 0 : index
    %1 = vector.load %arg2[%c0_1, %c0_2] : memref<8x16xf32, #tpu.memory_space<vmem>>, vector<8x16xf32>
    %cst = arith.constant dense<0.000000e+00> : vector<64x16xf32>
    %2 = tpu.matmul %0, %1, %cst {dimension_numbers = #tpu.dot_dimension_numbers<[1], [0], [0], [1], [0, 0, 1, 1], [], []>} : vector<64x8xf32>, vector<8x16xf32>, vector<64x16xf32> -> vector<64x16xf32>
    %c0_3 = arith.constant 0 : index
    %c0_4 = arith.constant 0 : index
    %3 = vector.load %arg3[%c0_3, %c0_4] : memref<1x16xf32, #tpu.memory_space<vmem>>, vector<1x16xf32>
    %4 = vector.broadcast %3 : vector<1x16xf32> to vector<64x16xf32>
    %5 = arith.addf %2, %4 : vector<64x16xf32>
    %cst_5 = arith.constant 0.000000e+00 : f32
    %6 = vector.broadcast %cst_5 : f32 to vector<64x16xf32>
    %7 = arith.maximumf %5, %6 : vector<64x16xf32>
    %c0_6 = arith.constant 0 : index
    %c0_7 = arith.constant 0 : index
    %8 = vector.load %arg4[%c0_6, %c0_7] : memref<64x16xf32, #tpu.memory_space<vmem>>, vector<64x16xf32>
    tpu.vector_store %arg4[%c0_6, %c0_7], %7 {strides = array<i32>} : memref<64x16xf32, #tpu.memory_space<vmem>>, vector<64x16xf32>,
    return
  }
  func.func @transform_0(%arg0: i32) -> (i32, i32) {
    %c0_i32 = arith.constant 0 : i32
    %c0_i32_0 = arith.constant 0 : i32
    return %arg0, %c0_i32 : i32, i32
  }
  func.func @transform_1(%arg0: i32) -> (i32, i32) {
    %c0_i32 = arith.constant 0 : i32
    %c0_i32_0 = arith.constant 0 : i32
    %c0_i32_1 = arith.constant 0 : i32
    return %c0_i32, %c0_i32_0 : i32, i32
  }
  func.func @transform_2(%arg0: i32) -> (i32, i32) {
    %c0_i32 = arith.constant 0 : i32
    %c0_i32_0 = arith.constant 0 : i32
    %c0_i32_1 = arith.constant 0 : i32
    return %c0_i32, %c0_i32_0 : i32, i32
  }
  func.func @transform_3(%arg0: i32) -> (i32, i32) {
    %c0_i32 = arith.constant 0 : i32
    %c0_i32_0 = arith.constant 0 : i32
    return %arg0, %c0_i32 : i32, i32
  }
}

module attributes {stable_mosaic.version = 11 : i64} {
  func.func @_ln_mm_kernel(%arg0: i32, %arg1: memref<64x16xf32, #tpu.memory_space<vmem>>, %arg2: memref<1x16xf32, #tpu.memory_space<vmem>>, %arg3: memref<1x16xf32, #tpu.memory_space<vmem>>, %arg4: memref<16x8xf32, #tpu.memory_space<vmem>>, %arg5: memref<1x8xf32, #tpu.memory_space<vmem>>, %arg6: memref<64x8xf32, #tpu.memory_space<vmem>>) attributes {dimension_semantics = [#tpu.dimension_semantics<parallel>], iteration_bounds = array<i64: 1>, scalar_prefetch = 0 : i64, scratch_operands = 0 : i64, tpu.core_type = #tpu.core_type<tc>, window_params = [{transform_indices = @transform_0, window_bounds = array<i64: 64, 16>}, {pipeline_mode = #tpu.pipeline_mode<synchronous>, transform_indices = @transform_1, window_bounds = array<i64: 1, 16>}, {pipeline_mode = #tpu.pipeline_mode<synchronous>, transform_indices = @transform_2, window_bounds = array<i64: 1, 16>}, {pipeline_mode = #tpu.pipeline_mode<synchronous>, transform_indices = @transform_3, window_bounds = array<i64: 16, 8>}, {pipeline_mode = #tpu.pipeline_mode<synchronous>, transform_indices = @transform_4, window_bounds = array<i64: 1, 8>}, {transform_indices = @transform_5, window_bounds = array<i64: 64, 8>}]} {
    %c0 = arith.constant 0 : index
    %c0_0 = arith.constant 0 : index
    %0 = vector.load %arg1[%c0, %c0_0] : memref<64x16xf32, #tpu.memory_space<vmem>>, vector<64x16xf32>
    %cst = arith.constant dense<0.000000e+00> : vector<64xf32>
    %1 = vector.multi_reduction <add>, %0, %cst [1] : vector<64x16xf32> to vector<64xf32>
    %2 = vector.shape_cast %1 : vector<64xf32> to vector<64x1xf32>
    %cst_1 = arith.constant 1.600000e+01 : f32
    %3 = vector.broadcast %cst_1 : f32 to vector<64x1xf32>
    %4 = arith.divf %2, %3 : vector<64x1xf32>
    %5 = vector.broadcast %4 : vector<64x1xf32> to vector<64x16xf32>
    %6 = arith.subf %0, %5 : vector<64x16xf32>
    %7 = arith.mulf %6, %6 : vector<64x16xf32>
    %cst_2 = arith.constant dense<0.000000e+00> : vector<64xf32>
    %8 = vector.multi_reduction <add>, %7, %cst_2 [1] : vector<64x16xf32> to vector<64xf32>
    %9 = vector.shape_cast %8 : vector<64xf32> to vector<64x1xf32>
    %cst_3 = arith.constant 1.600000e+01 : f32
    %10 = vector.broadcast %cst_3 : f32 to vector<64x1xf32>
    %11 = arith.divf %9, %10 : vector<64x1xf32>
    %12 = vector.broadcast %4 : vector<64x1xf32> to vector<64x16xf32>
    %13 = arith.subf %0, %12 : vector<64x16xf32>
    %cst_4 = arith.constant 9.99999974E-6 : f32
    %14 = vector.broadcast %cst_4 : f32 to vector<64x1xf32>
    %15 = arith.addf %11, %14 : vector<64x1xf32>
    %16 = math.rsqrt %15 : vector<64x1xf32>
    %17 = vector.broadcast %16 : vector<64x1xf32> to vector<64x16xf32>
    %18 = arith.mulf %13, %17 : vector<64x16xf32>
    %c0_5 = arith.constant 0 : index
    %c0_6 = arith.constant 0 : index
    %19 = vector.load %arg2[%c0_5, %c0_6] : memref<1x16xf32, #tpu.memory_space<vmem>>, vector<1x16xf32>
    %20 = vector.broadcast %19 : vector<1x16xf32> to vector<64x16xf32>
    %21 = arith.mulf %18, %20 : vector<64x16xf32>
    %c0_7 = arith.constant 0 : index
    %c0_8 = arith.constant 0 : index
    %22 = vector.load %arg3[%c0_7, %c0_8] : memref<1x16xf32, #tpu.memory_space<vmem>>, vector<1x16xf32>
    %23 = vector.broadcast %22 : vector<1x16xf32> to vector<64x16xf32>
    %24 = arith.addf %21, %23 : vector<64x16xf32>
    %c0_9 = arith.constant 0 : index
    %c0_10 = arith.constant 0 : index
    %25 = vector.load %arg4[%c0_9, %c0_10] : memref<16x8xf32, #tpu.memory_space<vmem>>, vector<16x8xf32>
    %cst_11 = arith.constant dense<0.000000e+00> : vector<64x8xf32>
    %26 = tpu.matmul %24, %25, %cst_11 {dimension_numbers = #tpu.dot_dimension_numbers<[1], [0], [0], [1], [0, 0, 1, 1], [], []>} : vector<64x16xf32>, vector<16x8xf32>, vector<64x8xf32> -> vector<64x8xf32>
    %c0_12 = arith.constant 0 : index
    %c0_13 = arith.constant 0 : index
    %27 = vector.load %arg5[%c0_12, %c0_13] : memref<1x8xf32, #tpu.memory_space<vmem>>, vector<1x8xf32>
    %28 = vector.broadcast %27 : vector<1x8xf32> to vector<64x8xf32>
    %29 = arith.addf %26, %28 : vector<64x8xf32>
    %c0_14 = arith.constant 0 : index
    %c0_15 = arith.constant 0 : index
    %30 = vector.load %arg6[%c0_14, %c0_15] : memref<64x8xf32, #tpu.memory_space<vmem>>, vector<64x8xf32>
    tpu.vector_store %arg6[%c0_14, %c0_15], %29 {strides = array<i32>} : memref<64x8xf32, #tpu.memory_space<vmem>>, vector<64x8xf32>,
    return
  }
  func.func @transform_0(%arg0: i32) -> (i32, i32) {
    %c0_i32 = arith.constant 0 : i32
    %c0_i32_0 = arith.constant 0 : i32
    return %arg0, %c0_i32 : i32, i32
  }
  func.func @transform_1(%arg0: i32) -> (i32, i32) {
    %c0_i32 = arith.constant 0 : i32
    %c0_i32_0 = arith.constant 0 : i32
    %c0_i32_1 = arith.constant 0 : i32
    return %c0_i32, %c0_i32_0 : i32, i32
  }
  func.func @transform_2(%arg0: i32) -> (i32, i32) {
    %c0_i32 = arith.constant 0 : i32
    %c0_i32_0 = arith.constant 0 : i32
    %c0_i32_1 = arith.constant 0 : i32
    return %c0_i32, %c0_i32_0 : i32, i32
  }
  func.func @transform_3(%arg0: i32) -> (i32, i32) {
    %c0_i32 = arith.constant 0 : i32
    %c0_i32_0 = arith.constant 0 : i32
    %c0_i32_1 = arith.constant 0 : i32
    return %c0_i32, %c0_i32_0 : i32, i32
  }
  func.func @transform_4(%arg0: i32) -> (i32, i32) {
    %c0_i32 = arith.constant 0 : i32
    %c0_i32_0 = arith.constant 0 : i32
    %c0_i32_1 = arith.constant 0 : i32
    return %c0_i32, %c0_i32_0 : i32, i32
  }
  func.func @transform_5(%arg0: i32) -> (i32, i32) {
    %c0_i32 = arith.constant 0 : i32
    %c0_i32_0 = arith.constant 0 : i32
    return %arg0, %c0_i32 : i32, i32
  }
}

module attributes {stable_mosaic.version = 11 : i64} {
  func.func @_mm_kernel(%arg0: i32, %arg1: memref<8x16xf32, #tpu.memory_space<vmem>>, %arg2: memref<16x8xf32, #tpu.memory_space<vmem>>, %arg3: memref<1x8xf32, #tpu.memory_space<vmem>>, %arg4: memref<8x8xf32, #tpu.memory_space<vmem>>) attributes {dimension_semantics = [#tpu.dimension_semantics<parallel>], iteration_bounds = array<i64: 1>, scalar_prefetch = 0 : i64, scratch_operands = 0 : i64, tpu.core_type = #tpu.core_type<tc>, window_params = [{transform_indices = @transform_0, window_bounds = array<i64: 8, 16>}, {pipeline_mode = #tpu.pipeline_mode<synchronous>, transform_indices = @transform_1, window_bounds = array<i64: 16, 8>}, {pipeline_mode = #tpu.pipeline_mode<synchronous>, transform_indices = @transform_2, window_bounds = array<i64: 1, 8>}, {transform_indices = @transform_3, window_bounds = array<i64: 8, 8>}]} {
    %c0 = arith.constant 0 : index
    %c0_0 = arith.constant 0 : index
    %0 = vector.load %arg1[%c0, %c0_0] : memref<8x16xf32, #tpu.memory_space<vmem>>, vector<8x16xf32>
    %c0_1 = arith.constant 0 : index
    %c0_2 = arith.constant 0 : index
    %1 = vector.load %arg2[%c0_1, %c0_2] : memref<16x8xf32, #tpu.memory_space<vmem>>, vector<16x8xf32>
    %cst = arith.constant dense<0.000000e+00> : vector<8x8xf32>
    %2 = tpu.matmul %0, %1, %cst {dimension_numbers = #tpu.dot_dimension_numbers<[1], [0], [0], [1], [0, 0, 1, 1], [], []>} : vector<8x16xf32>, vector<16x8xf32>, vector<8x8xf32> -> vector<8x8xf32>
    %c0_3 = arith.constant 0 : index
    %c0_4 = arith.constant 0 : index
    %3 = vector.load %arg3[%c0_3, %c0_4] : memref<1x8xf32, #tpu.memory_space<vmem>>, vector<1x8xf32>
    %4 = vector.broadcast %3 : vector<1x8xf32> to vector<8x8xf32>
    %5 = arith.addf %2, %4 : vector<8x8xf32>
    %c0_5 = arith.constant 0 : index
    %c0_6 = arith.constant 0 : index
    %6 = vector.load %arg4[%c0_5, %c0_6] : memref<8x8xf32, #tpu.memory_space<vmem>>, vector<8x8xf32>
    tpu.vector_store %arg4[%c0_5, %c0_6], %5 {strides = array<i32>} : memref<8x8xf32, #tpu.memory_space<vmem>>, vector<8x8xf32>,
    return
  }
  func.func @transform_0(%arg0: i32) -> (i32, i32) {
    %c0_i32 = arith.constant 0 : i32
    %c0_i32_0 = arith.constant 0 : i32
    return %arg0, %c0_i32 : i32, i32
  }
  func.func @transform_1(%arg0: i32) -> (i32, i32) {
    %c0_i32 = arith.constant 0 : i32
    %c0_i32_0 = arith.constant 0 : i32
    %c0_i32_1 = arith.constant 0 : i32
    return %c0_i32, %c0_i32_0 : i32, i32
  }
  func.func @transform_2(%arg0: i32) -> (i32, i32) {
    %c0_i32 = arith.constant 0 : i32
    %c0_i32_0 = arith.constant 0 : i32
    %c0_i32_1 = arith.constant 0 : i32
    return %c0_i32, %c0_i32_0 : i32, i32
  }
  func.func @transform_3(%arg0: i32) -> (i32, i32) {
    %c0_i32 = arith.constant 0 : i32
    %c0_i32_0 = arith.constant 0 : i32
    return %arg0, %c0_i32 : i32, i32
  }
}

module attributes {stable_mosaic.version = 11 : i64} {
  func.func @_mm_kernel(%arg0: i32, %arg1: memref<160x8xf32, #tpu.memory_space<vmem>>, %arg2: memref<8x64xf32, #tpu.memory_space<vmem>>, %arg3: memref<1x64xf32, #tpu.memory_space<vmem>>, %arg4: memref<160x64xf32, #tpu.memory_space<vmem>>) attributes {dimension_semantics = [#tpu.dimension_semantics<parallel>], iteration_bounds = array<i64: 1>, scalar_prefetch = 0 : i64, scratch_operands = 0 : i64, tpu.core_type = #tpu.core_type<tc>, window_params = [{transform_indices = @transform_0, window_bounds = array<i64: 160, 8>}, {pipeline_mode = #tpu.pipeline_mode<synchronous>, transform_indices = @transform_1, window_bounds = array<i64: 8, 64>}, {pipeline_mode = #tpu.pipeline_mode<synchronous>, transform_indices = @transform_2, window_bounds = array<i64: 1, 64>}, {transform_indices = @transform_3, window_bounds = array<i64: 160, 64>}]} {
    %c0 = arith.constant 0 : index
    %c0_0 = arith.constant 0 : index
    %0 = vector.load %arg1[%c0, %c0_0] : memref<160x8xf32, #tpu.memory_space<vmem>>, vector<160x8xf32>
    %c0_1 = arith.constant 0 : index
    %c0_2 = arith.constant 0 : index
    %1 = vector.load %arg2[%c0_1, %c0_2] : memref<8x64xf32, #tpu.memory_space<vmem>>, vector<8x64xf32>
    %cst = arith.constant dense<0.000000e+00> : vector<160x64xf32>
    %2 = tpu.matmul %0, %1, %cst {dimension_numbers = #tpu.dot_dimension_numbers<[1], [0], [0], [1], [0, 0, 1, 1], [], []>} : vector<160x8xf32>, vector<8x64xf32>, vector<160x64xf32> -> vector<160x64xf32>
    %c0_3 = arith.constant 0 : index
    %c0_4 = arith.constant 0 : index
    %3 = vector.load %arg3[%c0_3, %c0_4] : memref<1x64xf32, #tpu.memory_space<vmem>>, vector<1x64xf32>
    %4 = vector.broadcast %3 : vector<1x64xf32> to vector<160x64xf32>
    %5 = arith.addf %2, %4 : vector<160x64xf32>
    %c0_5 = arith.constant 0 : index
    %c0_6 = arith.constant 0 : index
    %6 = vector.load %arg4[%c0_5, %c0_6] : memref<160x64xf32, #tpu.memory_space<vmem>>, vector<160x64xf32>
    tpu.vector_store %arg4[%c0_5, %c0_6], %5 {strides = array<i32>} : memref<160x64xf32, #tpu.memory_space<vmem>>, vector<160x64xf32>,
    return
  }
  func.func @transform_0(%arg0: i32) -> (i32, i32) {
    %c0_i32 = arith.constant 0 : i32
    %c0_i32_0 = arith.constant 0 : i32
    return %arg0, %c0_i32 : i32, i32
  }
  func.func @transform_1(%arg0: i32) -> (i32, i32) {
    %c0_i32 = arith.constant 0 : i32
    %c0_i32_0 = arith.constant 0 : i32
    %c0_i32_1 = arith.constant 0 : i32
    return %c0_i32, %c0_i32_0 : i32, i32
  }
  func.func @transform_2(%arg0: i32) -> (i32, i32) {
    %c0_i32 = arith.constant 0 : i32
    %c0_i32_0 = arith.constant 0 : i32
    %c0_i32_1 = arith.constant 0 : i32
    return %c0_i32, %c0_i32_0 : i32, i32
  }
  func.func @transform_3(%arg0: i32) -> (i32, i32) {
    %c0_i32 = arith.constant 0 : i32
    %c0_i32_0 = arith.constant 0 : i32
    return %arg0, %c0_i32 : i32, i32
  }
}

module attributes {stable_mosaic.version = 11 : i64} {
  func.func @_fc_ln_res_kernel(%arg0: i32, %arg1: memref<160x16xf32, #tpu.memory_space<vmem>>, %arg2: memref<160x8xf32, #tpu.memory_space<vmem>>, %arg3: memref<16x8xf32, #tpu.memory_space<vmem>>, %arg4: memref<1x8xf32, #tpu.memory_space<vmem>>, %arg5: memref<1x8xf32, #tpu.memory_space<vmem>>, %arg6: memref<1x8xf32, #tpu.memory_space<vmem>>, %arg7: memref<160x8xf32, #tpu.memory_space<vmem>>) attributes {dimension_semantics = [#tpu.dimension_semantics<parallel>], iteration_bounds = array<i64: 1>, scalar_prefetch = 0 : i64, scratch_operands = 0 : i64, tpu.core_type = #tpu.core_type<tc>, window_params = [{transform_indices = @transform_0, window_bounds = array<i64: 160, 16>}, {transform_indices = @transform_1, window_bounds = array<i64: 160, 8>}, {pipeline_mode = #tpu.pipeline_mode<synchronous>, transform_indices = @transform_2, window_bounds = array<i64: 16, 8>}, {pipeline_mode = #tpu.pipeline_mode<synchronous>, transform_indices = @transform_3, window_bounds = array<i64: 1, 8>}, {pipeline_mode = #tpu.pipeline_mode<synchronous>, transform_indices = @transform_4, window_bounds = array<i64: 1, 8>}, {pipeline_mode = #tpu.pipeline_mode<synchronous>, transform_indices = @transform_5, window_bounds = array<i64: 1, 8>}, {transform_indices = @transform_6, window_bounds = array<i64: 160, 8>}]} {
    %c0 = arith.constant 0 : index
    %c0_0 = arith.constant 0 : index
    %0 = vector.load %arg1[%c0, %c0_0] : memref<160x16xf32, #tpu.memory_space<vmem>>, vector<160x16xf32>
    %c0_1 = arith.constant 0 : index
    %c0_2 = arith.constant 0 : index
    %1 = vector.load %arg3[%c0_1, %c0_2] : memref<16x8xf32, #tpu.memory_space<vmem>>, vector<16x8xf32>
    %cst = arith.constant dense<0.000000e+00> : vector<160x8xf32>
    %2 = tpu.matmul %0, %1, %cst {dimension_numbers = #tpu.dot_dimension_numbers<[1], [0], [0], [1], [0, 0, 1, 1], [], []>} : vector<160x16xf32>, vector<16x8xf32>, vector<160x8xf32> -> vector<160x8xf32>
    %c0_3 = arith.constant 0 : index
    %c0_4 = arith.constant 0 : index
    %3 = vector.load %arg4[%c0_3, %c0_4] : memref<1x8xf32, #tpu.memory_space<vmem>>, vector<1x8xf32>
    %4 = vector.broadcast %3 : vector<1x8xf32> to vector<160x8xf32>
    %5 = arith.addf %2, %4 : vector<160x8xf32>
    %cst_5 = arith.constant dense<0.000000e+00> : vector<160xf32>
    %6 = vector.multi_reduction <add>, %5, %cst_5 [1] : vector<160x8xf32> to vector<160xf32>
    %7 = vector.shape_cast %6 : vector<160xf32> to vector<160x1xf32>
    %cst_6 = arith.constant 8.000000e+00 : f32
    %8 = vector.broadcast %cst_6 : f32 to vector<160x1xf32>
    %9 = arith.divf %7, %8 : vector<160x1xf32>
    %10 = vector.broadcast %9 : vector<160x1xf32> to vector<160x8xf32>
    %11 = arith.subf %5, %10 : vector<160x8xf32>
    %12 = arith.mulf %11, %11 : vector<160x8xf32>
    %cst_7 = arith.constant dense<0.000000e+00> : vector<160xf32>
    %13 = vector.multi_reduction <add>, %12, %cst_7 [1] : vector<160x8xf32> to vector<160xf32>
    %14 = vector.shape_cast %13 : vector<160xf32> to vector<160x1xf32>
    %cst_8 = arith.constant 8.000000e+00 : f32
    %15 = vector.broadcast %cst_8 : f32 to vector<160x1xf32>
    %16 = arith.divf %14, %15 : vector<160x1xf32>
    %17 = vector.broadcast %9 : vector<160x1xf32> to vector<160x8xf32>
    %18 = arith.subf %5, %17 : vector<160x8xf32>
    %cst_9 = arith.constant 9.99999974E-6 : f32
    %19 = vector.broadcast %cst_9 : f32 to vector<160x1xf32>
    %20 = arith.addf %16, %19 : vector<160x1xf32>
    %21 = math.rsqrt %20 : vector<160x1xf32>
    %22 = vector.broadcast %21 : vector<160x1xf32> to vector<160x8xf32>
    %23 = arith.mulf %18, %22 : vector<160x8xf32>
    %c0_10 = arith.constant 0 : index
    %c0_11 = arith.constant 0 : index
    %24 = vector.load %arg5[%c0_10, %c0_11] : memref<1x8xf32, #tpu.memory_space<vmem>>, vector<1x8xf32>
    %25 = vector.broadcast %24 : vector<1x8xf32> to vector<160x8xf32>
    %26 = arith.mulf %23, %25 : vector<160x8xf32>
    %c0_12 = arith.constant 0 : index
    %c0_13 = arith.constant 0 : index
    %27 = vector.load %arg6[%c0_12, %c0_13] : memref<1x8xf32, #tpu.memory_space<vmem>>, vector<1x8xf32>
    %28 = vector.broadcast %27 : vector<1x8xf32> to vector<160x8xf32>
    %29 = arith.addf %26, %28 : vector<160x8xf32>
    %c0_14 = arith.constant 0 : index
    %c0_15 = arith.constant 0 : index
    %30 = vector.load %arg2[%c0_14, %c0_15] : memref<160x8xf32, #tpu.memory_space<vmem>>, vector<160x8xf32>
    %31 = arith.addf %30, %29 : vector<160x8xf32>
    %c0_16 = arith.constant 0 : index
    %c0_17 = arith.constant 0 : index
    %32 = vector.load %arg7[%c0_16, %c0_17] : memref<160x8xf32, #tpu.memory_space<vmem>>, vector<160x8xf32>
    tpu.vector_store %arg7[%c0_16, %c0_17], %31 {strides = array<i32>} : memref<160x8xf32, #tpu.memory_space<vmem>>, vector<160x8xf32>,
    return
  }
  func.func @transform_0(%arg0: i32) -> (i32, i32) {
    %c0_i32 = arith.constant 0 : i32
    %c0_i32_0 = arith.constant 0 : i32
    return %arg0, %c0_i32 : i32, i32
  }
  func.func @transform_1(%arg0: i32) -> (i32, i32) {
    %c0_i32 = arith.constant 0 : i32
    %c0_i32_0 = arith.constant 0 : i32
    return %arg0, %c0_i32 : i32, i32
  }
  func.func @transform_2(%arg0: i32) -> (i32, i32) {
    %c0_i32 = arith.constant 0 : i32
    %c0_i32_0 = arith.constant 0 : i32
    %c0_i32_1 = arith.constant 0 : i32
    return %c0_i32, %c0_i32_0 : i32, i32
  }
  func.func @transform_3(%arg0: i32) -> (i32, i32) {
    %c0_i32 = arith.constant 0 : i32
    %c0_i32_0 = arith.constant 0 : i32
    %c0_i32_1 = arith.constant 0 : i32
    return %c0_i32, %c0_i32_0 : i32, i32
  }
  func.func @transform_4(%arg0: i32) -> (i32, i32) {
    %c0_i32 = arith.constant 0 : i32
    %c0_i32_0 = arith.constant 0 : i32
    %c0_i32_1 = arith.constant 0 : i32
    return %c0_i32, %c0_i32_0 : i32, i32
  }
  func.func @transform_5(%arg0: i32) -> (i32, i32) {
    %c0_i32 = arith.constant 0 : i32
    %c0_i32_0 = arith.constant 0 : i32
    %c0_i32_1 = arith.constant 0 : i32
    return %c0_i32, %c0_i32_0 : i32, i32
  }
  func.func @transform_6(%arg0: i32) -> (i32, i32) {
    %c0_i32 = arith.constant 0 : i32
    %c0_i32_0 = arith.constant 0 : i32
    return %arg0, %c0_i32 : i32, i32
  }
}

module attributes {stable_mosaic.version = 11 : i64} {
  func.func @_lstm_scan_kernel(%arg0: i32, %arg1: i32, %arg2: memref<1x16x64xf32, #tpu.memory_space<vmem>>, %arg3: memref<16x64xf32, #tpu.memory_space<vmem>>, %arg4: memref<1x16x16xf32, #tpu.memory_space<vmem>>, %arg5: memref<16x16xf32, #tpu.memory_space<vmem>>, %arg6: memref<16x16xf32, #tpu.memory_space<vmem>>) attributes {dimension_semantics = [#tpu.dimension_semantics<parallel>, #tpu.dimension_semantics<arbitrary>], iteration_bounds = array<i64: 1, 10>, scalar_prefetch = 0 : i64, scratch_operands = 2 : i64, tpu.core_type = #tpu.core_type<tc>, window_params = [{transform_indices = @transform_0, window_bounds = array<i64: 1, 16, 64>}, {pipeline_mode = #tpu.pipeline_mode<synchronous>, transform_indices = @transform_1, window_bounds = array<i64: 16, 64>}, {transform_indices = @transform_2, window_bounds = array<i64: 1, 16, 16>}]} {
    %c0_i32 = arith.constant 0 : i32
    %0 = arith.cmpi eq, %arg1, %c0_i32 : i32
    %1 = arith.extui %0 : i1 to i32
    %c0_i32_0 = arith.constant 0 : i32
    %2 = arith.cmpi ne, %1, %c0_i32_0 : i32
    scf.if %2 {
      %cst_19 = arith.constant 0.000000e+00 : f32
      %40 = vector.broadcast %cst_19 : f32 to vector<16x16xf32>
      %c0_20 = arith.constant 0 : index
      %c0_21 = arith.constant 0 : index
      %41 = vector.load %arg5[%c0_20, %c0_21] : memref<16x16xf32, #tpu.memory_space<vmem>>, vector<16x16xf32>
      tpu.vector_store %arg5[%c0_20, %c0_21], %40 {strides = array<i32>} : memref<16x16xf32, #tpu.memory_space<vmem>>, vector<16x16xf32>,
      %cst_22 = arith.constant 0.000000e+00 : f32
      %42 = vector.broadcast %cst_22 : f32 to vector<16x16xf32>
      %c0_23 = arith.constant 0 : index
      %c0_24 = arith.constant 0 : index
      %43 = vector.load %arg6[%c0_23, %c0_24] : memref<16x16xf32, #tpu.memory_space<vmem>>, vector<16x16xf32>
      tpu.vector_store %arg6[%c0_23, %c0_24], %42 {strides = array<i32>} : memref<16x16xf32, #tpu.memory_space<vmem>>, vector<16x16xf32>,
    } else {
    }
    %c0 = arith.constant 0 : index
    %c0_1 = arith.constant 0 : index
    %c0_2 = arith.constant 0 : index
    %3 = vector.load %arg2[%c0, %c0_1, %c0_2] : memref<1x16x64xf32, #tpu.memory_space<vmem>>, vector<1x16x64xf32>
    %4 = vector.shape_cast %3 : vector<1x16x64xf32> to vector<16x64xf32>
    %c0_3 = arith.constant 0 : index
    %c0_4 = arith.constant 0 : index
    %5 = vector.load %arg5[%c0_3, %c0_4] : memref<16x16xf32, #tpu.memory_space<vmem>>, vector<16x16xf32>
    %c0_5 = arith.constant 0 : index
    %c0_6 = arith.constant 0 : index
    %6 = vector.load %arg3[%c0_5, %c0_6] : memref<16x64xf32, #tpu.memory_space<vmem>>, vector<16x64xf32>
    %cst = arith.constant dense<0.000000e+00> : vector<16x64xf32>
    %7 = tpu.matmul %5, %6, %cst {dimension_numbers = #tpu.dot_dimension_numbers<[1], [0], [0], [1], [0, 0, 1, 1], [], []>} : vector<16x16xf32>, vector<16x64xf32>, vector<16x64xf32> -> vector<16x64xf32>
    %8 = arith.addf %4, %7 : vector<16x64xf32>
    %9 = vector.extract_strided_slice %8 {offsets = [0, 0], sizes = [16, 16], strides = [1, 1]} : vector<16x64xf32> to vector<16x16xf32>
    %10 = arith.negf %9 : vector<16x16xf32>
    %11 = math.exp %10 : vector<16x16xf32>
    %cst_7 = arith.constant 1.000000e+00 : f32
    %12 = vector.broadcast %cst_7 : f32 to vector<16x16xf32>
    %13 = arith.addf %12, %11 : vector<16x16xf32>
    %14 = arith.divf %12, %13 : vector<16x16xf32>
    %15 = vector.extract_strided_slice %8 {offsets = [0, 16], sizes = [16, 16], strides = [1, 1]} : vector<16x64xf32> to vector<16x16xf32>
    %16 = arith.negf %15 : vector<16x16xf32>
    %17 = math.exp %16 : vector<16x16xf32>
    %cst_8 = arith.constant 1.000000e+00 : f32
    %18 = vector.broadcast %cst_8 : f32 to vector<16x16xf32>
    %19 = arith.addf %18, %17 : vector<16x16xf32>
    %20 = arith.divf %18, %19 : vector<16x16xf32>
    %21 = vector.extract_strided_slice %8 {offsets = [0, 32], sizes = [16, 16], strides = [1, 1]} : vector<16x64xf32> to vector<16x16xf32>
    %22 = math.tanh %21 : vector<16x16xf32>
    %23 = vector.extract_strided_slice %8 {offsets = [0, 48], sizes = [16, 16], strides = [1, 1]} : vector<16x64xf32> to vector<16x16xf32>
    %24 = arith.negf %23 : vector<16x16xf32>
    %25 = math.exp %24 : vector<16x16xf32>
    %cst_9 = arith.constant 1.000000e+00 : f32
    %26 = vector.broadcast %cst_9 : f32 to vector<16x16xf32>
    %27 = arith.addf %26, %25 : vector<16x16xf32>
    %28 = arith.divf %26, %27 : vector<16x16xf32>
    %c0_10 = arith.constant 0 : index
    %c0_11 = arith.constant 0 : index
    %29 = vector.load %arg6[%c0_10, %c0_11] : memref<16x16xf32, #tpu.memory_space<vmem>>, vector<16x16xf32>
    %30 = arith.mulf %20, %29 : vector<16x16xf32>
    %31 = arith.mulf %14, %22 : vector<16x16xf32>
    %32 = arith.addf %30, %31 : vector<16x16xf32>
    %33 = math.tanh %32 : vector<16x16xf32>
    %34 = arith.mulf %28, %33 : vector<16x16xf32>
    %c0_12 = arith.constant 0 : index
    %c0_13 = arith.constant 0 : index
    %35 = vector.load %arg6[%c0_12, %c0_13] : memref<16x16xf32, #tpu.memory_space<vmem>>, vector<16x16xf32>
    tpu.vector_store %arg6[%c0_12, %c0_13], %32 {strides = array<i32>} : memref<16x16xf32, #tpu.memory_space<vmem>>, vector<16x16xf32>,
    %c0_14 = arith.constant 0 : index
    %c0_15 = arith.constant 0 : index
    %36 = vector.load %arg5[%c0_14, %c0_15] : memref<16x16xf32, #tpu.memory_space<vmem>>, vector<16x16xf32>
    tpu.vector_store %arg5[%c0_14, %c0_15], %34 {strides = array<i32>} : memref<16x16xf32, #tpu.memory_space<vmem>>, vector<16x16xf32>,
    %c0_16 = arith.constant 0 : index
    %c0_17 = arith.constant 0 : index
    %c0_18 = arith.constant 0 : index
    %37 = vector.load %arg4[%c0_16, %c0_17, %c0_18] : memref<1x16x16xf32, #tpu.memory_space<vmem>>, vector<1x16x16xf32>
    %38 = vector.shape_cast %37 : vector<1x16x16xf32> to vector<16x16xf32>
    %39 = vector.shape_cast %34 : vector<16x16xf32> to vector<1x16x16xf32>
    tpu.vector_store %arg4[%c0_16, %c0_17, %c0_18], %39 {strides = array<i32>} : memref<1x16x16xf32, #tpu.memory_space<vmem>>, vector<1x16x16xf32>,
    return
  }
  func.func @transform_0(%arg0: i32, %arg1: i32) -> (i32, i32, i32) {
    %c0_i32 = arith.constant 0 : i32
    %c0_i32_0 = arith.constant 0 : i32
    return %arg1, %arg0, %c0_i32 : i32, i32, i32
  }
  func.func @transform_1(%arg0: i32, %arg1: i32) -> (i32, i32) {
    %c0_i32 = arith.constant 0 : i32
    %c0_i32_0 = arith.constant 0 : i32
    %c0_i32_1 = arith.constant 0 : i32
    return %c0_i32, %c0_i32_0 : i32, i32
  }
  func.func @transform_2(%arg0: i32, %arg1: i32) -> (i32, i32, i32) {
    %c0_i32 = arith.constant 0 : i32
    %c0_i32_0 = arith.constant 0 : i32
    return %arg1, %arg0, %c0_i32 : i32, i32, i32
  }
}

module attributes {stable_mosaic.version = 11 : i64} {
  func.func @_lstm_scan_kernel(%arg0: i32, %arg1: i32, %arg2: memref<1x20x64xf32, #tpu.memory_space<vmem>>, %arg3: memref<16x64xf32, #tpu.memory_space<vmem>>, %arg4: memref<1x20x16xf32, #tpu.memory_space<vmem>>, %arg5: memref<20x16xf32, #tpu.memory_space<vmem>>, %arg6: memref<20x16xf32, #tpu.memory_space<vmem>>) attributes {dimension_semantics = [#tpu.dimension_semantics<parallel>, #tpu.dimension_semantics<arbitrary>], iteration_bounds = array<i64: 1, 8>, scalar_prefetch = 0 : i64, scratch_operands = 2 : i64, tpu.core_type = #tpu.core_type<tc>, window_params = [{transform_indices = @transform_0, window_bounds = array<i64: 1, 20, 64>}, {pipeline_mode = #tpu.pipeline_mode<synchronous>, transform_indices = @transform_1, window_bounds = array<i64: 16, 64>}, {transform_indices = @transform_2, window_bounds = array<i64: 1, 20, 16>}]} {
    %c0_i32 = arith.constant 0 : i32
    %0 = arith.cmpi eq, %arg1, %c0_i32 : i32
    %1 = arith.extui %0 : i1 to i32
    %c0_i32_0 = arith.constant 0 : i32
    %2 = arith.cmpi ne, %1, %c0_i32_0 : i32
    scf.if %2 {
      %cst_19 = arith.constant 0.000000e+00 : f32
      %40 = vector.broadcast %cst_19 : f32 to vector<20x16xf32>
      %c0_20 = arith.constant 0 : index
      %c0_21 = arith.constant 0 : index
      %41 = vector.load %arg5[%c0_20, %c0_21] : memref<20x16xf32, #tpu.memory_space<vmem>>, vector<20x16xf32>
      tpu.vector_store %arg5[%c0_20, %c0_21], %40 {strides = array<i32>} : memref<20x16xf32, #tpu.memory_space<vmem>>, vector<20x16xf32>,
      %cst_22 = arith.constant 0.000000e+00 : f32
      %42 = vector.broadcast %cst_22 : f32 to vector<20x16xf32>
      %c0_23 = arith.constant 0 : index
      %c0_24 = arith.constant 0 : index
      %43 = vector.load %arg6[%c0_23, %c0_24] : memref<20x16xf32, #tpu.memory_space<vmem>>, vector<20x16xf32>
      tpu.vector_store %arg6[%c0_23, %c0_24], %42 {strides = array<i32>} : memref<20x16xf32, #tpu.memory_space<vmem>>, vector<20x16xf32>,
    } else {
    }
    %c0 = arith.constant 0 : index
    %c0_1 = arith.constant 0 : index
    %c0_2 = arith.constant 0 : index
    %3 = vector.load %arg2[%c0, %c0_1, %c0_2] : memref<1x20x64xf32, #tpu.memory_space<vmem>>, vector<1x20x64xf32>
    %4 = vector.shape_cast %3 : vector<1x20x64xf32> to vector<20x64xf32>
    %c0_3 = arith.constant 0 : index
    %c0_4 = arith.constant 0 : index
    %5 = vector.load %arg5[%c0_3, %c0_4] : memref<20x16xf32, #tpu.memory_space<vmem>>, vector<20x16xf32>
    %c0_5 = arith.constant 0 : index
    %c0_6 = arith.constant 0 : index
    %6 = vector.load %arg3[%c0_5, %c0_6] : memref<16x64xf32, #tpu.memory_space<vmem>>, vector<16x64xf32>
    %cst = arith.constant dense<0.000000e+00> : vector<20x64xf32>
    %7 = tpu.matmul %5, %6, %cst {dimension_numbers = #tpu.dot_dimension_numbers<[1], [0], [0], [1], [0, 0, 1, 1], [], []>} : vector<20x16xf32>, vector<16x64xf32>, vector<20x64xf32> -> vector<20x64xf32>
    %8 = arith.addf %4, %7 : vector<20x64xf32>
    %9 = vector.extract_strided_slice %8 {offsets = [0, 0], sizes = [20, 16], strides = [1, 1]} : vector<20x64xf32> to vector<20x16xf32>
    %10 = arith.negf %9 : vector<20x16xf32>
    %11 = math.exp %10 : vector<20x16xf32>
    %cst_7 = arith.constant 1.000000e+00 : f32
    %12 = vector.broadcast %cst_7 : f32 to vector<20x16xf32>
    %13 = arith.addf %12, %11 : vector<20x16xf32>
    %14 = arith.divf %12, %13 : vector<20x16xf32>
    %15 = vector.extract_strided_slice %8 {offsets = [0, 16], sizes = [20, 16], strides = [1, 1]} : vector<20x64xf32> to vector<20x16xf32>
    %16 = arith.negf %15 : vector<20x16xf32>
    %17 = math.exp %16 : vector<20x16xf32>
    %cst_8 = arith.constant 1.000000e+00 : f32
    %18 = vector.broadcast %cst_8 : f32 to vector<20x16xf32>
    %19 = arith.addf %18, %17 : vector<20x16xf32>
    %20 = arith.divf %18, %19 : vector<20x16xf32>
    %21 = vector.extract_strided_slice %8 {offsets = [0, 32], sizes = [20, 16], strides = [1, 1]} : vector<20x64xf32> to vector<20x16xf32>
    %22 = math.tanh %21 : vector<20x16xf32>
    %23 = vector.extract_strided_slice %8 {offsets = [0, 48], sizes = [20, 16], strides = [1, 1]} : vector<20x64xf32> to vector<20x16xf32>
    %24 = arith.negf %23 : vector<20x16xf32>
    %25 = math.exp %24 : vector<20x16xf32>
    %cst_9 = arith.constant 1.000000e+00 : f32
    %26 = vector.broadcast %cst_9 : f32 to vector<20x16xf32>
    %27 = arith.addf %26, %25 : vector<20x16xf32>
    %28 = arith.divf %26, %27 : vector<20x16xf32>
    %c0_10 = arith.constant 0 : index
    %c0_11 = arith.constant 0 : index
    %29 = vector.load %arg6[%c0_10, %c0_11] : memref<20x16xf32, #tpu.memory_space<vmem>>, vector<20x16xf32>
    %30 = arith.mulf %20, %29 : vector<20x16xf32>
    %31 = arith.mulf %14, %22 : vector<20x16xf32>
    %32 = arith.addf %30, %31 : vector<20x16xf32>
    %33 = math.tanh %32 : vector<20x16xf32>
    %34 = arith.mulf %28, %33 : vector<20x16xf32>
    %c0_12 = arith.constant 0 : index
    %c0_13 = arith.constant 0 : index
    %35 = vector.load %arg6[%c0_12, %c0_13] : memref<20x16xf32, #tpu.memory_space<vmem>>, vector<20x16xf32>
    tpu.vector_store %arg6[%c0_12, %c0_13], %32 {strides = array<i32>} : memref<20x16xf32, #tpu.memory_space<vmem>>, vector<20x16xf32>,
    %c0_14 = arith.constant 0 : index
    %c0_15 = arith.constant 0 : index
    %36 = vector.load %arg5[%c0_14, %c0_15] : memref<20x16xf32, #tpu.memory_space<vmem>>, vector<20x16xf32>
    tpu.vector_store %arg5[%c0_14, %c0_15], %34 {strides = array<i32>} : memref<20x16xf32, #tpu.memory_space<vmem>>, vector<20x16xf32>,
    %c0_16 = arith.constant 0 : index
    %c0_17 = arith.constant 0 : index
    %c0_18 = arith.constant 0 : index
    %37 = vector.load %arg4[%c0_16, %c0_17, %c0_18] : memref<1x20x16xf32, #tpu.memory_space<vmem>>, vector<1x20x16xf32>
    %38 = vector.shape_cast %37 : vector<1x20x16xf32> to vector<20x16xf32>
    %39 = vector.shape_cast %34 : vector<20x16xf32> to vector<1x20x16xf32>
    tpu.vector_store %arg4[%c0_16, %c0_17, %c0_18], %39 {strides = array<i32>} : memref<1x20x16xf32, #tpu.memory_space<vmem>>, vector<1x20x16xf32>,
    return
  }
  func.func @transform_0(%arg0: i32, %arg1: i32) -> (i32, i32, i32) {
    %c0_i32 = arith.constant 0 : i32
    %c0_i32_0 = arith.constant 0 : i32
    return %arg1, %arg0, %c0_i32 : i32, i32, i32
  }
  func.func @transform_1(%arg0: i32, %arg1: i32) -> (i32, i32) {
    %c0_i32 = arith.constant 0 : i32
    %c0_i32_0 = arith.constant 0 : i32
    %c0_i32_1 = arith.constant 0 : i32
    return %c0_i32, %c0_i32_0 : i32, i32
  }
  func.func @transform_2(%arg0: i32, %arg1: i32) -> (i32, i32, i32) {
    %c0_i32 = arith.constant 0 : i32
    %c0_i32_0 = arith.constant 0 : i32
    return %arg1, %arg0, %c0_i32 : i32, i32, i32
  }
}

module attributes {stable_mosaic.version = 11 : i64} {
  func.func @_prelu_mm_kernel(%arg0: i32, %arg1: memref<160x8xf32, #tpu.memory_space<vmem>>, %arg2: memref<1x1xf32, #tpu.memory_space<smem>>, %arg3: memref<8x16xf32, #tpu.memory_space<vmem>>, %arg4: memref<1x16xf32, #tpu.memory_space<vmem>>, %arg5: memref<160x16xf32, #tpu.memory_space<vmem>>) attributes {dimension_semantics = [#tpu.dimension_semantics<parallel>], iteration_bounds = array<i64: 1>, scalar_prefetch = 0 : i64, scratch_operands = 0 : i64, tpu.core_type = #tpu.core_type<tc>, window_params = [{transform_indices = @transform_0, window_bounds = array<i64: 160, 8>}, {transform_indices = @transform_1, window_bounds = array<i64: 1, 1>}, {pipeline_mode = #tpu.pipeline_mode<synchronous>, transform_indices = @transform_2, window_bounds = array<i64: 8, 16>}, {pipeline_mode = #tpu.pipeline_mode<synchronous>, transform_indices = @transform_3, window_bounds = array<i64: 1, 16>}, {transform_indices = @transform_4, window_bounds = array<i64: 160, 16>}]} {
    %c0 = arith.constant 0 : index
    %c0_0 = arith.constant 0 : index
    %0 = vector.load %arg1[%c0, %c0_0] : memref<160x8xf32, #tpu.memory_space<vmem>>, vector<160x8xf32>
    %c0_1 = arith.constant 0 : index
    %c0_2 = arith.constant 0 : index
    %1 = memref.load %arg2[%c0_1, %c0_2] : memref<1x1xf32, #tpu.memory_space<smem>>
    %cst = arith.constant 0.000000e+00 : f32
    %2 = vector.broadcast %cst : f32 to vector<160x8xf32>
    %3 = arith.cmpf oge, %0, %2 : vector<160x8xf32>
    %4 = vector.broadcast %1 : f32 to vector<160x8xf32>
    %5 = arith.mulf %4, %0 : vector<160x8xf32>
    %6 = arith.select %3, %0, %5 : vector<160x8xi1>, vector<160x8xf32>
    %c0_3 = arith.constant 0 : index
    %c0_4 = arith.constant 0 : index
    %7 = vector.load %arg3[%c0_3, %c0_4] : memref<8x16xf32, #tpu.memory_space<vmem>>, vector<8x16xf32>
    %cst_5 = arith.constant dense<0.000000e+00> : vector<160x16xf32>
    %8 = tpu.matmul %6, %7, %cst_5 {dimension_numbers = #tpu.dot_dimension_numbers<[1], [0], [0], [1], [0, 0, 1, 1], [], []>} : vector<160x8xf32>, vector<8x16xf32>, vector<160x16xf32> -> vector<160x16xf32>
    %c0_6 = arith.constant 0 : index
    %c0_7 = arith.constant 0 : index
    %9 = vector.load %arg4[%c0_6, %c0_7] : memref<1x16xf32, #tpu.memory_space<vmem>>, vector<1x16xf32>
    %10 = vector.broadcast %9 : vector<1x16xf32> to vector<160x16xf32>
    %11 = arith.addf %8, %10 : vector<160x16xf32>
    %c0_8 = arith.constant 0 : index
    %c0_9 = arith.constant 0 : index
    %12 = vector.load %arg5[%c0_8, %c0_9] : memref<160x16xf32, #tpu.memory_space<vmem>>, vector<160x16xf32>
    tpu.vector_store %arg5[%c0_8, %c0_9], %11 {strides = array<i32>} : memref<160x16xf32, #tpu.memory_space<vmem>>, vector<160x16xf32>,
    return
  }
  func.func @transform_0(%arg0: i32) -> (i32, i32) {
    %c0_i32 = arith.constant 0 : i32
    %c0_i32_0 = arith.constant 0 : i32
    return %arg0, %c0_i32 : i32, i32
  }
  func.func @transform_1(%arg0: i32) -> (i32, i32) {
    %c0_i32 = arith.constant 0 : i32
    %c0_i32_0 = arith.constant 0 : i32
    %c0_i32_1 = arith.constant 0 : i32
    return %c0_i32, %c0_i32_0 : i32, i32
  }
  func.func @transform_2(%arg0: i32) -> (i32, i32) {
    %c0_i32 = arith.constant 0 : i32
    %c0_i32_0 = arith.constant 0 : i32
    %c0_i32_1 = arith.constant 0 : i32
    return %c0_i32, %c0_i32_0 : i32, i32
  }
  func.func @transform_3(%arg0: i32) -> (i32, i32) {
    %c0_i32 = arith.constant 0 : i32
    %c0_i32_0 = arith.constant 0 : i32
    %c0_i32_1 = arith.constant 0 : i32
    return %c0_i32, %c0_i32_0 : i32, i32
  }
  func.func @transform_4(%arg0: i32) -> (i32, i32) {
    %c0_i32 = arith.constant 0 : i32
    %c0_i32_0 = arith.constant 0 : i32
    return %arg0, %c0_i32 : i32, i32
  }
}

module attributes {stable_mosaic.version = 11 : i64} {
  func.func @_mask_decode_kernel(%arg0: i32, %arg1: memref<64x16xf32, #tpu.memory_space<vmem>>, %arg2: memref<64x16xf32, #tpu.memory_space<vmem>>, %arg3: memref<16x8xf32, #tpu.memory_space<vmem>>, %arg4: memref<64x8xf32, #tpu.memory_space<vmem>>) attributes {dimension_semantics = [#tpu.dimension_semantics<parallel>], iteration_bounds = array<i64: 1>, scalar_prefetch = 0 : i64, scratch_operands = 0 : i64, tpu.core_type = #tpu.core_type<tc>, window_params = [{transform_indices = @transform_0, window_bounds = array<i64: 64, 16>}, {transform_indices = @transform_1, window_bounds = array<i64: 64, 16>}, {pipeline_mode = #tpu.pipeline_mode<synchronous>, transform_indices = @transform_2, window_bounds = array<i64: 16, 8>}, {transform_indices = @transform_3, window_bounds = array<i64: 64, 8>}]} {
    %c0 = arith.constant 0 : index
    %c0_0 = arith.constant 0 : index
    %0 = vector.load %arg1[%c0, %c0_0] : memref<64x16xf32, #tpu.memory_space<vmem>>, vector<64x16xf32>
    %c0_1 = arith.constant 0 : index
    %c0_2 = arith.constant 0 : index
    %1 = vector.load %arg2[%c0_1, %c0_2] : memref<64x16xf32, #tpu.memory_space<vmem>>, vector<64x16xf32>
    %cst = arith.constant 0.000000e+00 : f32
    %2 = vector.broadcast %cst : f32 to vector<64x16xf32>
    %3 = arith.maximumf %1, %2 : vector<64x16xf32>
    %4 = arith.mulf %0, %3 : vector<64x16xf32>
    %c0_3 = arith.constant 0 : index
    %c0_4 = arith.constant 0 : index
    %5 = vector.load %arg3[%c0_3, %c0_4] : memref<16x8xf32, #tpu.memory_space<vmem>>, vector<16x8xf32>
    %cst_5 = arith.constant dense<0.000000e+00> : vector<64x8xf32>
    %6 = tpu.matmul %4, %5, %cst_5 {dimension_numbers = #tpu.dot_dimension_numbers<[1], [0], [0], [1], [0, 0, 1, 1], [], []>} : vector<64x16xf32>, vector<16x8xf32>, vector<64x8xf32> -> vector<64x8xf32>
    %c0_6 = arith.constant 0 : index
    %c0_7 = arith.constant 0 : index
    %7 = vector.load %arg4[%c0_6, %c0_7] : memref<64x8xf32, #tpu.memory_space<vmem>>, vector<64x8xf32>
    tpu.vector_store %arg4[%c0_6, %c0_7], %6 {strides = array<i32>} : memref<64x8xf32, #tpu.memory_space<vmem>>, vector<64x8xf32>,
    return
  }
  func.func @transform_0(%arg0: i32) -> (i32, i32) {
    %c0_i32 = arith.constant 0 : i32
    %c0_i32_0 = arith.constant 0 : i32
    return %arg0, %c0_i32 : i32, i32
  }
  func.func @transform_1(%arg0: i32) -> (i32, i32) {
    %c0_i32 = arith.constant 0 : i32
    %c0_i32_0 = arith.constant 0 : i32
    return %arg0, %c0_i32 : i32, i32
  }
  func.func @transform_2(%arg0: i32) -> (i32, i32) {
    %c0_i32 = arith.constant 0 : i32
    %c0_i32_0 = arith.constant 0 : i32
    %c0_i32_1 = arith.constant 0 : i32
    return %c0_i32, %c0_i32_0 : i32, i32
  }
  func.func @transform_3(%arg0: i32) -> (i32, i32) {
    %c0_i32 = arith.constant 0 : i32
    %c0_i32_0 = arith.constant 0 : i32
    return %arg0, %c0_i32 : i32, i32
  }
}

</mosaic_0001>

<bundles_post_ra>
// kernel: tf_dsdprnn_forward.20
= control target key start
LH: loop header
LB: loop body
LE: loop exit
PB: predicated region body
PF: predicated region fallthrough
CT: control target
= control target key end

     0   :  { %vm28_vm0 = vcmask 130048   ;;  %vm302_vm1 = vcmask 64512   ;;  %s539_s0 = inlined_call_operand.vmem [shape: f32[64,16], index: 0, kind: input, shape index: {}]   ;;  %s540_s3 = inlined_call_operand.vmem [shape: f32[16,8], index: 3, kind: input, shape index: {}]   ;;  %s541_s1 = inlined_call_operand.vmem [shape: f32[1,16], index: 1, kind: input, shape index: {}]   ;;  %s542_s2 = inlined_call_operand.vmem [shape: f32[1,16], index: 2, kind: input, shape index: {}]   ;;  %s543_s4 = inlined_call_operand.vmem [shape: f32[1,8], index: 4, kind: input, shape index: {}]   ;;  %s544_s5 = inlined_call_operand.vmem [shape: f32[64,8], index: 5, kind: output, shape index: {}]  }
   0x1   :  { %v20_v0 = vld [vmem:[%s539_s0] sm:$0xff]  ;;  %v21_v1 = vld [vmem:[%s539_s0 + $0x8] sm:$0xff]  ;;  %v22_v8 = vld [vmem:[%s539_s0 + $0x10] sm:$0xff] }
   0x2   :  { %v24_v2 = vld [vmem:[%s539_s0 + $0x20] sm:$0xff]  ;;  %v29_v3 = vsel %vm28_vm0, %v20_v0, 0.0  ;;  %v32_v4 = vsel %vm28_vm0, %v21_v1, 0.0  ;;  %v25_v5 = vld [vmem:[%s539_s0 + $0x28] sm:$0xff]  ;;  %v26_v9 = vld [vmem:[%s539_s0 + $0x30] sm:$0xff]  ;;  %v35_v10 = vsel %vm28_vm0, %v22_v8, 0.0 }
   0x3   :  { %30 = vadd.xlane.f32.xlu0 %v29_v3  ;;  %33 = vadd.xlane.f32.xlu1 %v32_v4  ;;  %v41_v6 = vsel %vm28_vm0, %v24_v2, 0.0  ;;  %v44_v7 = vsel %vm28_vm0, %v25_v5, 0.0  ;;  %v47_v11 = vsel %vm28_vm0, %v26_v9, 0.0  ;;  %v23_v12 = vld [vmem:[%s539_s0 + $0x18] sm:$0xff]  ;;  %v164_v56 = vld [vmem:[%s540_s3] sm:$0xff]  ;;  %v165_v57 = vld [vmem:[%s540_s3 + $0x8] sm:$0xff] }
   0x4   :  { %v27_v13 = vld [vmem:[%s539_s0 + $0x38] sm:$0xff]  ;;  %v38_v14 = vsel %vm28_vm0, %v23_v12, 0.0  ;;  %v352_v58 = vpack.c.bf16 %v165_v57, %v164_v56 }
   0x5   :  { %v50_v15 = vsel %vm28_vm0, %v27_v13, 0.0 }
   0x6   :  { %353 = vmatprep.subr.bf16.mxu0 %v352_v58  ;;  %356 = vmatprep.subr.bf16.mxu1 %v352_v58 }
   0x7   :  { %42 = vadd.xlane.f32.xlu0 %v41_v6  ;;  %45 = vadd.xlane.f32.xlu1 %v44_v7 }
   0x8   :  { %355 = vmatpush3.bf16.msra.mxu0 %v352_v58  ;;  %357 = vmatpush3.bf16.msra.mxu1 %v352_v58 }
   0xb   :  { %36 = vadd.xlane.f32.xlu0 %v35_v10  ;;  %48 = vadd.xlane.f32.xlu1 %v47_v11 }
   0xf   :  { %39 = vadd.xlane.f32.xlu0 %v38_v14  ;;  %51 = vadd.xlane.f32.xlu1 %v50_v15 }
  0x90   :  { %v31_v16 = vpop.xlane.xlu0 %30  ;;  %v34_v17 = vpop.xlane.xlu1 %33 }
  0x91   :  { %v54_v18 = vmul.f32 0.0625, %v31_v16  ;;  %v55_v19 = vmul.f32 0.0625, %v34_v17  ;;  %v315_v17 = vld [vmem:[%s541_s1] ss:$0 sm:$0xff] }
  0x93   :  { %v436_v20 = vsub.f32 %v20_v0, %v54_v18  ;;  %v438_v21 = vsub.f32 %v21_v1, %v55_v19 }
  0x94   :  { %v43_v22 = vpop.xlane.xlu0 %42  ;;  %v46_v23 = vpop.xlane.xlu1 %45 }
  0x95   :  { %v58_v24 = vmul.f32 0.0625, %v43_v22  ;;  %v59_v25 = vmul.f32 0.0625, %v46_v23  ;;  %v70_v26 = vmul.f32 %v436_v20, %v436_v20  ;;  %v71_v27 = vmul.f32 %v438_v21, %v438_v21  ;;  %v316_v23 = vld [vmem:[%s542_s2] ss:$0 sm:$0xff] }
  0x97   :  { %v444_v28 = vsub.f32 %v24_v2, %v58_v24  ;;  %v446_v29 = vsub.f32 %v25_v5, %v59_v25  ;;  %v78_v30 = vsel %vm28_vm0, %v70_v26, 0.0  ;;  %v81_v33 = vsel %vm28_vm0, %v71_v27, 0.0 }
  0x98   :  { %79 = vadd.xlane.f32.xlu0 %v78_v30  ;;  %v37_v31 = vpop.xlane.xlu0 %36  ;;  %v49_v32 = vpop.xlane.xlu1 %48 }
  0x99   :  { %v56_v34 = vmul.f32 0.0625, %v37_v31  ;;  %v60_v35 = vmul.f32 0.0625, %v49_v32  ;;  %v74_v36 = vmul.f32 %v444_v28, %v444_v28  ;;  %v75_v37 = vmul.f32 %v446_v29, %v446_v29 }
  0x9b   :  { %v454_v38 = vsub.f32 %v22_v8, %v56_v34  ;;  %v456_v39 = vsub.f32 %v26_v9, %v60_v35  ;;  %v90_v40 = vsel %vm28_vm0, %v74_v36, 0.0  ;;  %v93_v43 = vsel %vm28_vm0, %v75_v37, 0.0 }
  0x9c   :  { %82 = vadd.xlane.f32.xlu0 %v81_v33  ;;  %91 = vadd.xlane.f32.xlu1 %v90_v40  ;;  %v40_v41 = vpop.xlane.xlu0 %39  ;;  %v52_v42 = vpop.xlane.xlu1 %51 }
  0x9d   :  { %v57_v44 = vmul.f32 0.0625, %v40_v41  ;;  %v61_v45 = vmul.f32 0.0625, %v52_v42  ;;  %v72_v46 = vmul.f32 %v454_v38, %v454_v38  ;;  %v76_v47 = vmul.f32 %v456_v39, %v456_v39 }
  0x9f   :  { %v464_v48 = vsub.f32 %v23_v12, %v57_v44  ;;  %v466_v49 = vsub.f32 %v27_v13, %v61_v45  ;;  %v84_v50 = vsel %vm28_vm0, %v72_v46, 0.0  ;;  %v96_v51 = vsel %vm28_vm0, %v76_v47, 0.0 }
  0xa0   :  { %94 = vadd.xlane.f32.xlu1 %v93_v43  ;;  %85 = vadd.xlane.f32.xlu0 %v84_v50 }
  0xa1   :  { %v73_v52 = vmul.f32 %v464_v48, %v464_v48  ;;  %v77_v53 = vmul.f32 %v466_v49, %v466_v49 }
  0xa3   :  { %v87_v54 = vsel %vm28_vm0, %v73_v52, 0.0  ;;  %v99_v55 = vsel %vm28_vm0, %v77_v53, 0.0 }
  0xa4   :  { %97 = vadd.xlane.f32.xlu1 %v96_v51  ;;  %88 = vadd.xlane.f32.xlu0 %v87_v54 }
  0xa8   :  { %100 = vadd.xlane.f32.xlu1 %v99_v55 }
 0x125   :  { %v80_v59 = vpop.xlane.xlu0 %79 }
 0x126   :  { %v102_v60 = vmul.f32 0.0625, %v80_v59 }
 0x128   :  { %v110_v61 = vadd.f32 1e-05, %v102_v60 }
 0x129   :  { %v92_v62 = vpop.xlane.xlu1 %91  ;;  %v83_v63 = vpop.xlane.xlu0 %82 }
 0x12a   :  { %358 = vrsqrt.f32 %v110_v61  ;;  %v106_v0 = vmul.f32 0.0625, %v92_v62  ;;  %v103_v1 = vmul.f32 0.0625, %v83_v63 }
 0x12c   :  { %v114_v2 = vadd.f32 1e-05, %v106_v0  ;;  %v111_v3 = vadd.f32 1e-05, %v103_v1 }
 0x12d   :  { %v95_v4 = vpop.xlane.xlu1 %94  ;;  %v86_v5 = vpop.xlane.xlu0 %85 }
 0x12e   :  { %360 = vrsqrt.f32 %v114_v2  ;;  %v107_v6 = vmul.f32 0.0625, %v95_v4  ;;  %v104_v7 = vmul.f32 0.0625, %v86_v5 }
 0x12f   :  { %362 = vrsqrt.f32 %v111_v3 }
 0x130   :  { %v115_v8 = vadd.f32 1e-05, %v107_v6  ;;  %v112_v9 = vadd.f32 1e-05, %v104_v7 }
 0x131   :  { %v98_v10 = vpop.xlane.xlu1 %97  ;;  %v89_v11 = vpop.xlane.xlu0 %88 }
 0x132   :  { %364 = vrsqrt.f32 %v115_v8  ;;  %v108_v12 = vmul.f32 0.0625, %v98_v10  ;;  %v105_v13 = vmul.f32 0.0625, %v89_v11 }
 0x133   :  { %366 = vrsqrt.f32 %v112_v9 }
 0x134   :  { %v359_v14 = vpop.eup %358  ;;  %v116_v15 = vadd.f32 1e-05, %v108_v12  ;;  %v113_v16 = vadd.f32 1e-05, %v105_v13 }
 0x135   :  { %v101_v18 = vpop.xlane.xlu1 %100  ;;  %v126_v19 = vmul.f32 %v359_v14, %v436_v20 }
 0x136   :  { %368 = vrsqrt.f32 %v116_v15  ;;  %v109_v22 = vmul.f32 0.0625, %v101_v18 }
 0x137   :  { %370 = vrsqrt.f32 %v113_v16  ;;  %v141_v24 = vmul.f32 %v315_v17, %v126_v19 }
 0x138   :  { %v361_v25 = vpop.eup %360  ;;  %v117_v26 = vadd.f32 1e-05, %v109_v22 }
 0x139   :  { %v363_v27 = vpop.eup %362  ;;  %v156_v30 = vadd.f32 %v316_v23, %v141_v24  ;;  %v130_v31 = vmul.f32 %v361_v25, %v444_v28 }
 0x13a   :  { %372 = vrsqrt.f32 %v117_v26  ;;  %v127_v32 = vmul.f32 %v363_v27, %v438_v21 }
 0x13b   :  { %340 = vmatprep.mubr.msk.f32.mxu0 %vm28_vm0, %v156_v30  ;;  %v145_v20 = vmul.f32 %v315_v17, %v130_v31 }
 0x13c   :  { %v365_v33 = vpop.eup %364  ;;  %v142_v34 = vmul.f32 %v315_v17, %v127_v32 }
 0x13d   :  { %v367_v35 = vpop.eup %366  ;;  %v160_v36 = vadd.f32 %v316_v23, %v145_v20  ;;  %v131_v37 = vmul.f32 %v365_v33, %v446_v29 }
 0x13e   :  { %v157_v40 = vadd.f32 %v316_v23, %v142_v34  ;;  %v128_v41 = vmul.f32 %v367_v35, %v454_v38 }
 0x13f   :  { %346 = vmatprep.mubr.msk.f32.mxu1 %vm28_vm0, %v160_v36  ;;  %v146_v42 = vmul.f32 %v315_v17, %v131_v37 }
 0x140   :  { %v369_v43 = vpop.eup %368  ;;  %341 = vmatmul.mubr.msk.f32.vlgmr.msra.gmra.mrb[0].mxu0 %vm28_vm0, %v157_v40  ;;  %v143_v28 = vmul.f32 %v315_v17, %v128_v41 }
 0x141   :  { %v371_v21 = vpop.eup %370  ;;  %v161_v44 = vadd.f32 %v316_v23, %v146_v42  ;;  %v132_v45 = vmul.f32 %v369_v43, %v456_v39 }
 0x142   :  { %v158_v46 = vadd.f32 %v316_v23, %v143_v28  ;;  %v129_v47 = vmul.f32 %v371_v21, %v464_v48  ;;  %v317_v48 = vld [vmem:[%s543_s4] ss:$0 sm:$0xff] }
 0x143   :  { %347 = vmatmul.mubr.msk.f32.vlgmr.msra.gmra.mrb[0].mxu1 %vm28_vm0, %v161_v44  ;;  %v147_v29 = vmul.f32 %v315_v17, %v132_v45 }
 0x144   :  { %v373_v50 = vpop.eup %372  ;;  %343 = vmatprep.mubr.msk.f32.mxu0 %vm28_vm0, %v158_v46  ;;  %v144_v38 = vmul.f32 %v315_v17, %v129_v47 }
 0x145   :  { %v162_v51 = vadd.f32 %v316_v23, %v147_v29  ;;  %v133_v52 = vmul.f32 %v373_v50, %v466_v49 }
 0x146   :  { %v159_v53 = vadd.f32 %v316_v23, %v144_v38 }
 0x147   :  { %349 = vmatprep.mubr.msk.f32.mxu1 %vm28_vm0, %v162_v51  ;;  %v148_v54 = vmul.f32 %v315_v17, %v133_v52 }
 0x148   :  { %344 = vmatmul.mubr.msk.f32.gmra.mrb[2].mxu0 %vm28_vm0, %v159_v53 }
 0x149   :  { %v163_v39 = vadd.f32 %v316_v23, %v148_v54 }
 0x14b   :  { %350 = vmatmul.mubr.msk.f32.gmra.mrb[2].mxu1 %vm28_vm0, %v163_v39 }
 0x213   :  { %v342_v55 = vpop.f32.mrb[0].mxu0 }
 0x214   :  { %v269_v56 = vadd.f32 %v342_v55, %v317_v48  ;;  %v263_v57 = vpop.f32.mrb[1].mxu0 }
 0x215   :  { %v264_v58 = vadd.f32 %v317_v48, %v263_v57 }
 0x216   :  { %304 = vst.msk [vmem:[%s544_s5 + $0x8] sm:$0xff] %vm302_vm1, %v269_v56  ;;  %v348_v49 = vpop.f32.mrb[0].mxu1 }
 0x217   :  { %303 = vst.msk [vmem:[%s544_s5] sm:$0xff] %vm302_vm1, %v264_v58  ;;  %v289_v59 = vadd.f32 %v348_v49, %v317_v48  ;;  %v283_v60 = vpop.f32.mrb[1].mxu1 }
 0x218   :  { %v284_v61 = vadd.f32 %v317_v48, %v283_v60 }
 0x219   :  { %308 = vst.msk [vmem:[%s544_s5 + $0x28] sm:$0xff] %vm302_vm1, %v289_v59 }
 0x21a   :  { %307 = vst.msk [vmem:[%s544_s5 + $0x20] sm:$0xff] %vm302_vm1, %v284_v61 }
 0x21b   :  { %v345_v62 = vpop.f32.mrb[2].mxu0 }
 0x21c   :  { %v279_v63 = vadd.f32 %v345_v62, %v317_v48  ;;  %v273_v0 = vpop.f32.mrb[3].mxu0 }
 0x21d   :  { %v274_v1 = vadd.f32 %v317_v48, %v273_v0 }
 0x21e   :  { %306 = vst.msk [vmem:[%s544_s5 + $0x18] sm:$0xff] %vm302_vm1, %v279_v63  ;;  %v351_v2 = vpop.f32.mrb[2].mxu1 }
 0x21f   :  { %305 = vst.msk [vmem:[%s544_s5 + $0x10] sm:$0xff] %vm302_vm1, %v274_v1  ;;  %v299_v3 = vadd.f32 %v351_v2, %v317_v48  ;;  %v293_v4 = vpop.f32.mrb[3].mxu1 }
 0x220   :  { %v294_v5 = vadd.f32 %v317_v48, %v293_v4 }
 0x221   :  { %310 = vst.msk [vmem:[%s544_s5 + $0x38] sm:$0xff] %vm302_vm1, %v299_v3 }
 0x222   :  { %309 = vst.msk [vmem:[%s544_s5 + $0x30] sm:$0xff] %vm302_vm1, %v294_v5 }

// kernel: tf_dsdprnn_forward.18
= control target key start
LH: loop header
LB: loop body
LE: loop exit
PB: predicated region body
PF: predicated region fallthrough
CT: control target
= control target key end

     0   :  { %vm30_vm0 = vcmask 64512   ;;  %vm168_vm1 = vcmask 130048   ;;  %s305_s1 = inlined_call_operand.vmem [shape: f32[8,16], index: 1, kind: input, shape index: {}]   ;;  %s306_s0 = inlined_call_operand.vmem [shape: f32[64,8], index: 0, kind: input, shape index: {}]   ;;  %s307_s2 = inlined_call_operand.vmem [shape: f32[1,16], index: 2, kind: input, shape index: {}]   ;;  %s308_s3 = inlined_call_operand.vmem [shape: f32[64,16], index: 3, kind: output, shape index: {}]  }
   0x1   :  { %v22_v0 = vld [vmem:[%s305_s1] sm:$0xff]  ;;  %v15_v3 = vld [vmem:[%s306_s0 + $0x8] sm:$0xff]  ;;  %v16_v5 = vld [vmem:[%s306_s0 + $0x10] sm:$0xff] }
   0x2   :  { %v14_v1 = vld [vmem:[%s306_s0] sm:$0xff]  ;;  %199 = vmatprep.subr.mxu0 %v22_v0  ;;  %213 = vmatprep.subr.mxu1 %v22_v0  ;;  %v19_v4 = vld [vmem:[%s306_s0 + $0x28] sm:$0xff]  ;;  %v20_v6 = vld [vmem:[%s306_s0 + $0x30] sm:$0xff] }
   0x3   :  { %v18_v2 = vld [vmem:[%s306_s0 + $0x20] sm:$0xff]  ;;  %200 = vmatpush3.msra.mxu0 %v22_v0  ;;  %214 = vmatpush3.msra.mxu1 %v22_v0  ;;  %v17_v7 = vld [vmem:[%s306_s0 + $0x18] sm:$0xff] }
   0x4   :  { %201 = vmatprep.mubr.msk.f32.mxu0 %vm30_vm0, %v14_v1  ;;  %207 = vmatprep.mubr.msk.f32.mxu1 %vm30_vm0, %v18_v2  ;;  %v21_v8 = vld [vmem:[%s306_s0 + $0x38] sm:$0xff]  ;;  %v181_v9 = vld [vmem:[%s307_s2] ss:$0 sm:$0xff] }
   0x5   :  { %202 = vmatmul.mubr.msk.f32.vlgmr.msra.gmra.mrb[0].mxu0 %vm30_vm0, %v15_v3  ;;  %208 = vmatmul.mubr.msk.f32.vlgmr.msra.gmra.mrb[0].mxu1 %vm30_vm0, %v19_v4 }
   0x6   :  { %204 = vmatprep.mubr.msk.f32.mxu0 %vm30_vm0, %v16_v5  ;;  %210 = vmatprep.mubr.msk.f32.mxu1 %vm30_vm0, %v20_v6 }
   0x9   :  { %205 = vmatmul.mubr.msk.f32.gmra.mrb[2].mxu0 %vm30_vm0, %v17_v7  ;;  %211 = vmatmul.mubr.msk.f32.gmra.mrb[2].mxu1 %vm30_vm0, %v21_v8 }
  0xd8   :  { %v203_v10 = vpop.f32.mrb[0].mxu0  ;;  %v209_v11 = vpop.f32.mrb[0].mxu1 }
  0xd9   :  { %v127_v12 = vadd.f32 %v203_v10, %v181_v9  ;;  %v147_v13 = vadd.f32 %v209_v11, %v181_v9  ;;  %v121_v14 = vpop.f32.mrb[1].mxu0  ;;  %v141_v15 = vpop.f32.mrb[1].mxu1 }
  0xda   :  { %v122_v16 = vadd.f32 %v181_v9, %v121_v14  ;;  %v142_v17 = vadd.f32 %v181_v9, %v141_v15 }
  0xdb   :  { %v161_v18 = vmax.f32 %v127_v12, 0.0  ;;  %v165_v19 = vmax.f32 %v147_v13, 0.0 }
  0xdc   :  { %v160_v20 = vmax.f32 %v122_v16, 0.0  ;;  %v164_v21 = vmax.f32 %v142_v17, 0.0  ;;  %v206_v22 = vpop.f32.mrb[2].mxu0  ;;  %v212_v23 = vpop.f32.mrb[2].mxu1 }
  0xdd   :  { %170 = vst.msk [vmem:[%s308_s3 + $0x8] sm:$0xff] %vm168_vm1, %v161_v18  ;;  %174 = vst.msk [vmem:[%s308_s3 + $0x28] sm:$0xff] %vm168_vm1, %v165_v19  ;;  %v137_v24 = vadd.f32 %v206_v22, %v181_v9  ;;  %v157_v25 = vadd.f32 %v212_v23, %v181_v9  ;;  %v131_v26 = vpop.f32.mrb[3].mxu0  ;;  %v151_v27 = vpop.f32.mrb[3].mxu1 }
  0xde   :  { %169 = vst.msk [vmem:[%s308_s3] sm:$0xff] %vm168_vm1, %v160_v20  ;;  %173 = vst.msk [vmem:[%s308_s3 + $0x20] sm:$0xff] %vm168_vm1, %v164_v21  ;;  %v132_v28 = vadd.f32 %v181_v9, %v131_v26  ;;  %v152_v29 = vadd.f32 %v181_v9, %v151_v27 }
  0xdf   :  { %v163_v30 = vmax.f32 %v137_v24, 0.0  ;;  %v167_v31 = vmax.f32 %v157_v25, 0.0 }
  0xe0   :  { %v162_v32 = vmax.f32 %v132_v28, 0.0  ;;  %v166_v33 = vmax.f32 %v152_v29, 0.0 }
  0xe1   :  { %172 = vst.msk [vmem:[%s308_s3 + $0x18] sm:$0xff] %vm168_vm1, %v163_v30  ;;  %176 = vst.msk [vmem:[%s308_s3 + $0x38] sm:$0xff] %vm168_vm1, %v167_v31 }
  0xe2   :  { %171 = vst.msk [vmem:[%s308_s3 + $0x10] sm:$0xff] %vm168_vm1, %v162_v32  ;;  %175 = vst.msk [vmem:[%s308_s3 + $0x30] sm:$0xff] %vm168_vm1, %v166_v33 }

// kernel: tf_dsdprnn_forward.21
= control target key start
LH: loop header
LB: loop body
LE: loop exit
PB: predicated region body
PF: predicated region fallthrough
CT: control target
= control target key end

     0   :  { %v122_v0 = vmov 0.0|0.0   ;;  %vm123_vm0 = vmmov 0   ;;  %v124_v3 = vmov 0.0   ;;  %vm24_vm1 = vcmask 130048   ;;  %s160_s1 = inlined_call_operand.vmem [shape: f32[16,8], index: 1, kind: input, shape index: {}]   ;;  %s161_s0 = inlined_call_operand.vmem [shape: f32[8,16], index: 0, kind: input, shape index: {}]   ;;  %s162_s2 = inlined_call_operand.vmem [shape: f32[1,8], index: 2, kind: input, shape index: {}]   ;;  %s163_s3 = inlined_call_operand.vmem [shape: f32[8,8], index: 3, kind: output, shape index: {}]  }
   0x1   :  { %116 = vmatprep.subr.bf16.mxu0 %v122_v0  ;;  %v15_v1 = vld [vmem:[%s160_s1] sm:$0xff]  ;;  %v16_v2 = vld [vmem:[%s160_s1 + $0x8] sm:$0xff]  ;;  %113 = vmatprep.mubr.msk.f32.mxu0 %vm123_vm0, %v124_v3  ;;  %vm98_vm2 = vcmask 64512  }
   0x2   :  { %v117_v4 = vpack.c.bf16 %v16_v2, %v15_v1  ;;  %v14_v5 = vld [vmem:[%s161_s0] sm:$0xff] }
   0x3   :  { %v104_v6 = vld [vmem:[%s162_s2] ss:$0 sm:$0xff] }
   0x4   :  { %118 = vmatpush3.bf16.msra.mxu0 %v117_v4 }
   0x7   :  { %114 = vmatmul.mubr.msk.f32.vlgmr.msra.gmra.mrb[0].mxu0 %vm24_vm1, %v14_v5 }
  0xda   :  { %v94_v7 = vpop.f32.mrb[0].mxu0 }
  0xdb   :  { %v95_v8 = vadd.f32 %v104_v6, %v94_v7  ;;  %v115_v9 = vpop.f32.mrb[1].mxu0 }
  0xdd   :  { %99 = vst.msk [vmem:[%s163_s3] sm:$0xff] %vm98_vm2, %v95_v8 }

// kernel: tf_dsdprnn_forward.22
= control target key start
LH: loop header
LB: loop body
LE: loop exit
PB: predicated region body
PF: predicated region fallthrough
CT: control target
= control target key end

     0   :  { %vm42_vm0 = vcmask 64512   ;;  %vm268_vm1 = vcmask 523264   ;;  %s555_s1 = inlined_call_operand.vmem [shape: f32[8,64], index: 1, kind: input, shape index: {}]   ;;  %s556_s0 = inlined_call_operand.vmem [shape: f32[160,8], index: 0, kind: input, shape index: {}]   ;;  %s557_s2 = inlined_call_operand.vmem [shape: f32[1,64], index: 2, kind: input, shape index: {}]   ;;  %s558_s3 = inlined_call_operand.vmem [shape: f32[160,64], index: 3, kind: output, shape index: {}]  }
   0x1   :  { %v34_v0 = vld [vmem:[%s555_s1] sm:$0xff]  ;;  %v24_v2 = vld [vmem:[%s556_s0 + $0x50] sm:$0xff]  ;;  %v15_v3 = vld [vmem:[%s556_s0 + $0x8] sm:$0xff] }
   0x2   :  { %v14_v1 = vld [vmem:[%s556_s0] sm:$0xff]  ;;  %335 = vmatprep.subr.mxu0 %v34_v0  ;;  %367 = vmatprep.subr.mxu1 %v34_v0  ;;  %v25_v4 = vld [vmem:[%s556_s0 + $0x58] sm:$0xff]  ;;  %v16_v5 = vld [vmem:[%s556_s0 + $0x10] sm:$0xff] }
   0x3   :  { %336 = vmatpush3.msra.mxu0 %v34_v0  ;;  %368 = vmatpush3.msra.mxu1 %v34_v0  ;;  %v26_v6 = vld [vmem:[%s556_s0 + $0x60] sm:$0xff]  ;;  %v17_v7 = vld [vmem:[%s556_s0 + $0x18] sm:$0xff]  ;;  %v27_v8 = vld [vmem:[%s556_s0 + $0x68] sm:$0xff] }
   0x4   :  { %337 = vmatprep.mubr.msk.f32.mxu0 %vm42_vm0, %v14_v1  ;;  %352 = vmatprep.mubr.msk.f32.mxu1 %vm42_vm0, %v24_v2  ;;  %v18_v9 = vld [vmem:[%s556_s0 + $0x20] sm:$0xff]  ;;  %v28_v10 = vld [vmem:[%s556_s0 + $0x70] sm:$0xff]  ;;  %v19_v11 = vld [vmem:[%s556_s0 + $0x28] sm:$0xff] }
   0x5   :  { %338 = vmatmul.mubr.msk.f32.vlgmr.msra.gmra.mrb[0].mxu0 %vm42_vm0, %v15_v3  ;;  %353 = vmatmul.mubr.msk.f32.vlgmr.msra.gmra.mrb[0].mxu1 %vm42_vm0, %v25_v4  ;;  %v29_v12 = vld [vmem:[%s556_s0 + $0x78] sm:$0xff]  ;;  %v20_v13 = vld [vmem:[%s556_s0 + $0x30] sm:$0xff]  ;;  %v30_v14 = vld [vmem:[%s556_s0 + $0x80] sm:$0xff] }
   0x6   :  { %340 = vmatprep.mubr.msk.f32.mxu0 %vm42_vm0, %v16_v5  ;;  %355 = vmatprep.mubr.msk.f32.mxu1 %vm42_vm0, %v26_v6  ;;  %v21_v15 = vld [vmem:[%s556_s0 + $0x38] sm:$0xff]  ;;  %v31_v16 = vld [vmem:[%s556_s0 + $0x88] sm:$0xff]  ;;  %v22_v17 = vld [vmem:[%s556_s0 + $0x40] sm:$0xff] }
   0x7   :  { %v32_v18 = vld [vmem:[%s556_s0 + $0x90] sm:$0xff]  ;;  %v23_v19 = vld [vmem:[%s556_s0 + $0x48] sm:$0xff]  ;;  %v33_v20 = vld [vmem:[%s556_s0 + $0x98] sm:$0xff] }
   0x8   :  { %v293_v21 = vld [vmem:[%s557_s2] ss:$0 sm:$0xff] }
   0x9   :  { %341 = vmatmul.mubr.msk.f32.gmra.mrb[2].mxu0 %vm42_vm0, %v17_v7  ;;  %356 = vmatmul.mubr.msk.f32.gmra.mrb[2].mxu1 %vm42_vm0, %v27_v8 }
   0xa   :  { %343 = vmatprep.mubr.msk.f32.mxu0 %vm42_vm0, %v18_v9  ;;  %358 = vmatprep.mubr.msk.f32.mxu1 %vm42_vm0, %v28_v10 }
   0xd   :  { %344 = vmatmul.mubr.msk.f32.gmra.mrb[4].mxu0 %vm42_vm0, %v19_v11  ;;  %359 = vmatmul.mubr.msk.f32.gmra.mrb[4].mxu1 %vm42_vm0, %v29_v12 }
   0xe   :  { %346 = vmatprep.mubr.msk.f32.mxu0 %vm42_vm0, %v20_v13  ;;  %361 = vmatprep.mubr.msk.f32.mxu1 %vm42_vm0, %v30_v14 }
  0x11   :  { %347 = vmatmul.mubr.msk.f32.gmra.mrb[6].mxu0 %vm42_vm0, %v21_v15  ;;  %362 = vmatmul.mubr.msk.f32.gmra.mrb[6].mxu1 %vm42_vm0, %v31_v16 }
  0x12   :  { %349 = vmatprep.mubr.msk.f32.mxu0 %vm42_vm0, %v22_v17  ;;  %364 = vmatprep.mubr.msk.f32.mxu1 %vm42_vm0, %v32_v18 }
  0x15   :  { %350 = vmatmul.mubr.msk.f32.gmra.mrb[8].mxu0 %vm42_vm0, %v23_v19  ;;  %365 = vmatmul.mubr.msk.f32.gmra.mrb[8].mxu1 %vm42_vm0, %v33_v20 }
  0xd8   :  { %v339_v22 = vpop.f32.mrb[0].mxu0  ;;  %v354_v23 = vpop.f32.mrb[0].mxu1 }
  0xd9   :  { %v175_v24 = vadd.f32 %v339_v22, %v293_v21  ;;  %v225_v25 = vadd.f32 %v354_v23, %v293_v21  ;;  %v169_v26 = vpop.f32.mrb[1].mxu0  ;;  %v219_v27 = vpop.f32.mrb[1].mxu1 }
  0xda   :  { %v170_v28 = vadd.f32 %v293_v21, %v169_v26  ;;  %v220_v29 = vadd.f32 %v293_v21, %v219_v27 }
  0xdb   :  { %270 = vst.msk [vmem:[%s558_s3 + $0x8] sm:$0xff] %vm268_vm1, %v175_v24  ;;  %280 = vst.msk [vmem:[%s558_s3 + $0x58] sm:$0xff] %vm268_vm1, %v225_v25 }
  0xdc   :  { %269 = vst.msk [vmem:[%s558_s3] sm:$0xff] %vm268_vm1, %v170_v28  ;;  %279 = vst.msk [vmem:[%s558_s3 + $0x50] sm:$0xff] %vm268_vm1, %v220_v29  ;;  %v342_v30 = vpop.f32.mrb[2].mxu0  ;;  %v357_v31 = vpop.f32.mrb[2].mxu1 }
  0xdd   :  { %v185_v32 = vadd.f32 %v342_v30, %v293_v21  ;;  %v235_v33 = vadd.f32 %v357_v31, %v293_v21  ;;  %v179_v34 = vpop.f32.mrb[3].mxu0  ;;  %v229_v35 = vpop.f32.mrb[3].mxu1 }
  0xde   :  { %v180_v36 = vadd.f32 %v293_v21, %v179_v34  ;;  %v230_v37 = vadd.f32 %v293_v21, %v229_v35 }
  0xdf   :  { %272 = vst.msk [vmem:[%s558_s3 + $0x18] sm:$0xff] %vm268_vm1, %v185_v32  ;;  %282 = vst.msk [vmem:[%s558_s3 + $0x68] sm:$0xff] %vm268_vm1, %v235_v33 }
  0xe0   :  { %271 = vst.msk [vmem:[%s558_s3 + $0x10] sm:$0xff] %vm268_vm1, %v180_v36  ;;  %281 = vst.msk [vmem:[%s558_s3 + $0x60] sm:$0xff] %vm268_vm1, %v230_v37  ;;  %v345_v38 = vpop.f32.mrb[4].mxu0  ;;  %v360_v39 = vpop.f32.mrb[4].mxu1 }
  0xe1   :  { %v195_v40 = vadd.f32 %v345_v38, %v293_v21  ;;  %v245_v41 = vadd.f32 %v360_v39, %v293_v21  ;;  %v189_v42 = vpop.f32.mrb[5].mxu0  ;;  %v239_v43 = vpop.f32.mrb[5].mxu1 }
  0xe2   :  { %v190_v44 = vadd.f32 %v293_v21, %v189_v42  ;;  %v240_v45 = vadd.f32 %v293_v21, %v239_v43 }
  0xe3   :  { %274 = vst.msk [vmem:[%s558_s3 + $0x28] sm:$0xff] %vm268_vm1, %v195_v40  ;;  %284 = vst.msk [vmem:[%s558_s3 + $0x78] sm:$0xff] %vm268_vm1, %v245_v41 }
  0xe4   :  { %273 = vst.msk [vmem:[%s558_s3 + $0x20] sm:$0xff] %vm268_vm1, %v190_v44  ;;  %283 = vst.msk [vmem:[%s558_s3 + $0x70] sm:$0xff] %vm268_vm1, %v240_v45  ;;  %v348_v46 = vpop.f32.mrb[6].mxu0  ;;  %v363_v47 = vpop.f32.mrb[6].mxu1 }
  0xe5   :  { %v205_v48 = vadd.f32 %v348_v46, %v293_v21  ;;  %v255_v49 = vadd.f32 %v363_v47, %v293_v21  ;;  %v199_v50 = vpop.f32.mrb[7].mxu0  ;;  %v249_v51 = vpop.f32.mrb[7].mxu1 }
  0xe6   :  { %v200_v52 = vadd.f32 %v293_v21, %v199_v50  ;;  %v250_v53 = vadd.f32 %v293_v21, %v249_v51 }
  0xe7   :  { %276 = vst.msk [vmem:[%s558_s3 + $0x38] sm:$0xff] %vm268_vm1, %v205_v48  ;;  %286 = vst.msk [vmem:[%s558_s3 + $0x88] sm:$0xff] %vm268_vm1, %v255_v49 }
  0xe8   :  { %275 = vst.msk [vmem:[%s558_s3 + $0x30] sm:$0xff] %vm268_vm1, %v200_v52  ;;  %285 = vst.msk [vmem:[%s558_s3 + $0x80] sm:$0xff] %vm268_vm1, %v250_v53  ;;  %v351_v54 = vpop.f32.mrb[8].mxu0  ;;  %v366_v55 = vpop.f32.mrb[8].mxu1 }
  0xe9   :  { %v215_v56 = vadd.f32 %v351_v54, %v293_v21  ;;  %v265_v57 = vadd.f32 %v366_v55, %v293_v21  ;;  %v209_v58 = vpop.f32.mrb[9].mxu0  ;;  %v259_v59 = vpop.f32.mrb[9].mxu1 }
  0xea   :  { %v210_v60 = vadd.f32 %v293_v21, %v209_v58  ;;  %v260_v61 = vadd.f32 %v293_v21, %v259_v59 }
  0xeb   :  { %278 = vst.msk [vmem:[%s558_s3 + $0x48] sm:$0xff] %vm268_vm1, %v215_v56  ;;  %288 = vst.msk [vmem:[%s558_s3 + $0x98] sm:$0xff] %vm268_vm1, %v265_v57 }
  0xec   :  { %277 = vst.msk [vmem:[%s558_s3 + $0x40] sm:$0xff] %vm268_vm1, %v210_v60  ;;  %287 = vst.msk [vmem:[%s558_s3 + $0x90] sm:$0xff] %vm268_vm1, %v260_v61 }

// kernel: tf_dsdprnn_forward.23
= control target key start
LH: loop header
LB: loop body
LE: loop exit
PB: predicated region body
PF: predicated region fallthrough
CT: control target
= control target key end

     0   :  { %s573_s9 = smov 0   ;;  %s575_s10 = smov 0   ;;  %s628_s0 = inlined_call_operand.vmem [shape: f32[10,16,64], index: 0, kind: input, shape index: {}]   ;;  %s629_s1 = inlined_call_operand.vmem [shape: f32[16,64], index: 1, kind: input, shape index: {}]   ;;  %s630_s2 = inlined_call_operand.vmem [shape: f32[10,16,16], index: 2, kind: output, shape index: {}]  }
   0x1   :  { %s577_s11 = smov 0  }
   0x2 LB: > { %s21_s12 = sadd.s32 1, %s546_s10  ;;  %p453_p0 = scmp.ge.s32.totalorder %s550_s11, 1  ;;  %s550_s11 = sphi %s577_s11, %s12_s11   ;;  %s546_s10 = sphi %s575_s10, %s632_s10   ;;  %s542_s9 = sphi %s573_s9, %s631_s9  }
   0x3   : > { %p22_p1 = scmp.ge.s32.totalorder %s21_s12, 10  ;;  %p133_p2 = scmp.lt.s32.totalorder %s550_s11, 11 }
   0x5   : > { %s634_s12 = smov (%p22_p1, %s21_s12), 0  ;;  %p134_p3 = pnand %p453_p0, %p133_p2 }
   0x6   : > { %p164_p4 = scmp.lt.s32.totalorder (!%p134_p3), %s542_s9, 9  ;;  %p458_p5 = scmp.ne.s32.totalorder (!%p134_p3), %s542_s9, 0 }
   0x7   : > { %137 = sbr.rel (%p134_p3) target bundleno = 737 (0x2e1), region = 28 }
   0xe   : > { %s165_s13 = scalar_select %p164_p4, %s542_s9, 9 }
   0xf   : > { %186 = sbr.rel (%p458_p5) target bundleno = 22 (0x16), region = 32  ;;  %vm187_vm0 = vcmask (!%p458_p5), 130048   ;;  %v552_v0 = vmov (!%p458_p5), 0.0  }
  0x10   : > { %s465_s14 = sshll.u32 %s165_s13, 4  ;;  %188 = vst.msk [vmem:[#allocation2] sm:$0xff] (!%p458_p5), %vm187_vm0, %v552_v0  ;;  %189 = vst.msk [vmem:[#allocation2 + $0x8] sm:$0xff] (!%p458_p5), %vm187_vm0, %v552_v0 }
  0x11   : > { %s171_s17 = scalar_lea.vmem %s628_s0, %s465_s14  ;;  %s597_s20 = scalar_lea.vmem %s630_s2, %s465_s14  ;;  %190 = vst.msk [vmem:[#allocation3] sm:$0xff] (!%p458_p5), %vm187_vm0, %v552_v0  ;;  %191 = vst.msk [vmem:[#allocation3 + $0x8] sm:$0xff] (!%p458_p5), %vm187_vm0, %v552_v0 }
  0x16 PF: > { %v196_v1 = vld [vmem:[%s629_s1] sm:$0xff]  ;;  %v197_v2 = vld [vmem:[%s629_s1 + $0x8] sm:$0xff]  ;;  %vm198_vm1 = vcmask 130048   ;;  %s553_s25 = smov 16   ;;  %s554_s26 = smov 96  }
  0x17   : > { %v194_v3 = vld [vmem:[#allocation2] sm:$0xff]  ;;  %v478_v4 = vpack.c.bf16 %v197_v2, %v196_v1  ;;  %v195_v7 = vld [vmem:[#allocation2 + $0x8] sm:$0xff]  ;;  %s555_s27 = smov 32   ;;  %s556_s28 = smov 112  }
  0x18   : > { %475 = vmatprep.mubr.msk.f32.mxu0 %vm198_vm1, %v194_v3  ;;  %v296_v5 = vld [vmem:[#allocation3] sm:$0xff]  ;;  %v297_v6 = vld [vmem:[#allocation3 + $0x8] sm:$0xff]  ;;  %v192_v8 = vld [vmem:[%s171_s17] sm:$0xff]  ;;  %s557_s29 = smov 80  }
  0x19   : > { %300 = vrot.lane.b32.xlu1 %v296_v5, %s553_s25  ;;  %479 = vmatprep.subr.bf16.mxu0 %v478_v4  ;;  %v193_v10 = vld [vmem:[%s171_s17 + $0x8] sm:$0xff] }
  0x1a   : > { %481 = vmatpush3.bf16.msra.mxu0 %v478_v4 }
  0x1d   : > { %302 = vrot.lane.b32.xlu1 %v297_v6, %s553_s25  ;;  %476 = vmatmul.mubr.msk.f32.vlgmr.msra.gmra.mrb[0].mxu0 %vm198_vm1, %v195_v7 }
  0x8b   : > { %v301_v28 = vpop.permute.xlu1 %300 }
  0x8f   : > { %v303_v30 = vpop.permute.xlu1 %302 }
  0xf0   : > { %v477_v9 = vpop.f32.mrb[0].mxu0 }
  0xf1   : > { %v271_v11 = vpop.f32.mrb[1].mxu0  ;;  %v281_v13 = vadd.f32 %v477_v9, %v193_v10 }
  0xf2   : > { %v280_v12 = vadd.f32 %v271_v11, %v192_v8 }
  0xf3   : > { %v462_v17 = vmul.f32 -1.442695, %v281_v13 }
  0xf4   : > { %512 = vtanh.f32 %v280_v12  ;;  %v461_v16 = vmul.f32 -1.442695, %v280_v12 }
  0xf5   : > { %514 = vtanh.f32 %v281_v13 }
  0xf6   : > { %516 = vpow2.f32 %v461_v16 }
  0xf7   : > { %518 = vpow2.f32 %v462_v17 }
  0xfe   : > { %v513_v14 = vpop.eup %512 }
  0xff   : > { %310 = vrot.lane.b32.xlu0 %v513_v14, %s554_s26  ;;  %v515_v15 = vpop.eup %514 }
 0x100   : > { %v517_v18 = vpop.eup %516 }
 0x101   : > { %v288_v19 = vadd.f32 1.0, %v517_v18  ;;  %v519_v20 = vpop.eup %518 }
 0x102   : > { %v289_v21 = vadd.f32 1.0, %v519_v20 }
 0x103   : > { %312 = vrot.lane.b32.xlu0 %v515_v15, %s554_s26  ;;  %520 = vrcp.f32 %v288_v19 }
 0x104   : > { %522 = vrcp.f32 %v289_v21 }
 0x10d   : > { %v521_v22 = vpop.eup %520 }
 0x10e   : > { %v523_v25 = vpop.eup %522  ;;  %v306_v29 = vmul.f32 %v521_v22, %v301_v28 }
 0x10f   : > { %v307_v33 = vmul.f32 %v523_v25, %v303_v30 }
 0x171   : > { %v311_v23 = vpop.permute.xlu0 %310 }
 0x172   : > { %v316_v24 = vmul.f32 %v521_v22, %v311_v23 }
 0x174   : > { %320 = vrot.lane.b32.xlu0 %v316_v24, %s553_s25 }
 0x175   : > { %v313_v26 = vpop.permute.xlu0 %312 }
 0x176   : > { %v317_v27 = vmul.f32 %v523_v25, %v313_v26 }
 0x178   : > { %322 = vrot.lane.b32.xlu1 %v317_v27, %s553_s25 }
 0x1e6   : > { %v321_v31 = vpop.permute.xlu0 %320 }
 0x1e7   : > { %v326_v32 = vadd.f32 %v321_v31, %v306_v29 }
 0x1e9   : > { %524 = vtanh.f32 %v326_v32 }
 0x1ea   : > { %v323_v34 = vpop.permute.xlu1 %322 }
 0x1eb   : > { %v327_v35 = vadd.f32 %v323_v34, %v307_v33 }
 0x1ed   : > { %526 = vtanh.f32 %v327_v35 }
 0x1f3   : > { %v525_v36 = vpop.eup %524 }
 0x1f4   : > { %332 = vrot.lane.b32.xlu0 %v525_v36, %s555_s27 }
 0x1f7   : > { %v527_v37 = vpop.eup %526 }
 0x1f8   : > { %334 = vrot.lane.b32.xlu1 %v527_v37, %s555_s27  ;;  %342 = vrot.lane.b32.xlu0 %v326_v32, %s556_s28 }
 0x1fc   : > { %344 = vrot.lane.b32.xlu1 %v327_v35, %s556_s28 }
 0x266   : > { %v333_v38 = vpop.permute.xlu0 %332 }
 0x267   : > { %v338_v39 = vmul.f32 %v521_v22, %v333_v38 }
 0x269   : > { %352 = vrot.lane.b32.xlu0 %v338_v39, %s557_s29 }
 0x26a   : > { %v335_v40 = vpop.permute.xlu1 %334  ;;  %v343_v41 = vpop.permute.xlu0 %342 }
 0x26b   : > { %v339_v42 = vmul.f32 %v523_v25, %v335_v40  ;;  %348 = vst.msk [vmem:[#allocation3] sm:$0xff] %vm198_vm1, %v343_v41 }
 0x26d   : > { %354 = vrot.lane.b32.xlu1 %v339_v42, %s557_s29 }
 0x26e   : > { %v345_v43 = vpop.permute.xlu1 %344 }
 0x26f   : > { %349 = vst.msk [vmem:[#allocation3 + $0x8] sm:$0xff] %vm198_vm1, %v345_v43 }
 0x2db   : > { %v353_v44 = vpop.permute.xlu0 %352 }
 0x2dc   : > { %358 = vst.msk [vmem:[#allocation2] sm:$0xff] %vm198_vm1, %v353_v44  ;;  %360 = vst.msk [vmem:[%s597_s20] sm:$0xff] %vm198_vm1, %v353_v44 }
 0x2df   : > { %v355_v45 = vpop.permute.xlu1 %354 }
 0x2e0   : > { %359 = vst.msk [vmem:[#allocation2 + $0x8] sm:$0xff] %vm198_vm1, %v355_v45  ;;  %361 = vst.msk [vmem:[%s597_s20 + $0x8] sm:$0xff] %vm198_vm1, %v355_v45 }
 0x2e1 PF: > { %s12_s11 = sadd.s32 1, %s550_s11   ;;  %s631_s9 = smov %s546_s10 }
 0x2e2   : > { %p9_p6 = scmp.ge.s32.totalorder %s12_s11, 12   ;;  %s632_s10 = smov %s634_s12 }
 0x2e4   :  { %11 = sbr.rel (!%p9_p6) target bundleno = 2 (0x2), region = 62 }

// kernel: tf_dsdprnn_forward.24
= control target key start
LH: loop header
LB: loop body
LE: loop exit
PB: predicated region body
PF: predicated region fallthrough
CT: control target
= control target key end

     0   :  { %vm52_vm0 = vcmask 130048   ;;  %vm278_vm1 = vcmask 64512   ;;  %s1339_s2 = inlined_call_operand.vmem [shape: f32[16,8], index: 2, kind: input, shape index: {}]   ;;  %s1340_s0 = inlined_call_operand.vmem [shape: f32[160,16], index: 0, kind: input, shape index: {}]   ;;  %s1341_s3 = inlined_call_operand.vmem [shape: f32[1,8], index: 3, kind: input, shape index: {}]   ;;  %s1342_s4 = inlined_call_operand.vmem [shape: f32[1,8], index: 4, kind: input, shape index: {}]   ;;  %s1343_s5 = inlined_call_operand.vmem [shape: f32[1,8], index: 5, kind: input, shape index: {}]   ;;  %s1344_s1 = inlined_call_operand.vmem [shape: f32[160,8], index: 1, kind: input, shape index: {}]   ;;  %s1345_s6 = inlined_call_operand.vmem [shape: f32[160,8], index: 6, kind: output, shape index: {}]  }
   0x1   :  { %v43_v0 = vld [vmem:[%s1339_s2] sm:$0xff]  ;;  %v44_v1 = vld [vmem:[%s1339_s2 + $0x8] sm:$0xff]  ;;  %v33_v4 = vld [vmem:[%s1340_s0 + $0x50] sm:$0xff] }
   0x2   :  { %v23_v2 = vld [vmem:[%s1340_s0] sm:$0xff]  ;;  %v737_v3 = vpack.c.bf16 %v44_v1, %v43_v0  ;;  %722 = vmatprep.mubr.msk.f32.mxu1 %vm52_vm0, %v33_v4  ;;  %v24_v5 = vld [vmem:[%s1340_s0 + $0x8] sm:$0xff]  ;;  %v34_v6 = vld [vmem:[%s1340_s0 + $0x58] sm:$0xff] }
   0x3   :  { %707 = vmatprep.mubr.msk.f32.mxu0 %vm52_vm0, %v23_v2  ;;  %v25_v7 = vld [vmem:[%s1340_s0 + $0x10] sm:$0xff]  ;;  %v35_v8 = vld [vmem:[%s1340_s0 + $0x60] sm:$0xff]  ;;  %v26_v9 = vld [vmem:[%s1340_s0 + $0x18] sm:$0xff] }
   0x4   :  { %738 = vmatprep.subr.bf16.mxu0 %v737_v3  ;;  %741 = vmatprep.subr.bf16.mxu1 %v737_v3  ;;  %v36_v10 = vld [vmem:[%s1340_s0 + $0x68] sm:$0xff]  ;;  %v27_v11 = vld [vmem:[%s1340_s0 + $0x20] sm:$0xff]  ;;  %v37_v12 = vld [vmem:[%s1340_s0 + $0x70] sm:$0xff] }
   0x5   :  { %740 = vmatpush3.bf16.msra.mxu0 %v737_v3  ;;  %742 = vmatpush3.bf16.msra.mxu1 %v737_v3  ;;  %v28_v13 = vld [vmem:[%s1340_s0 + $0x28] sm:$0xff]  ;;  %v38_v14 = vld [vmem:[%s1340_s0 + $0x78] sm:$0xff]  ;;  %v29_v15 = vld [vmem:[%s1340_s0 + $0x30] sm:$0xff] }
   0x6   :  { %v39_v16 = vld [vmem:[%s1340_s0 + $0x80] sm:$0xff]  ;;  %v30_v17 = vld [vmem:[%s1340_s0 + $0x38] sm:$0xff]  ;;  %v40_v18 = vld [vmem:[%s1340_s0 + $0x88] sm:$0xff] }
   0x7   :  { %v31_v19 = vld [vmem:[%s1340_s0 + $0x40] sm:$0xff]  ;;  %v41_v20 = vld [vmem:[%s1340_s0 + $0x90] sm:$0xff]  ;;  %v32_v21 = vld [vmem:[%s1340_s0 + $0x48] sm:$0xff] }
   0x8   :  { %708 = vmatmul.mubr.msk.f32.vlgmr.msra.gmra.mrb[0].mxu0 %vm52_vm0, %v24_v5  ;;  %723 = vmatmul.mubr.msk.f32.vlgmr.msra.gmra.mrb[0].mxu1 %vm52_vm0, %v34_v6  ;;  %v42_v22 = vld [vmem:[%s1340_s0 + $0x98] sm:$0xff]  ;;  %v907_v23 = vld [vmem:[%s1341_s3] ss:$0 sm:$0xff] }
   0x9   :  { %710 = vmatprep.mubr.msk.f32.mxu0 %vm52_vm0, %v25_v7  ;;  %725 = vmatprep.mubr.msk.f32.mxu1 %vm52_vm0, %v35_v8 }
   0xc   :  { %711 = vmatmul.mubr.msk.f32.gmra.mrb[2].mxu0 %vm52_vm0, %v26_v9  ;;  %726 = vmatmul.mubr.msk.f32.gmra.mrb[2].mxu1 %vm52_vm0, %v36_v10 }
   0xd   :  { %713 = vmatprep.mubr.msk.f32.mxu0 %vm52_vm0, %v27_v11  ;;  %728 = vmatprep.mubr.msk.f32.mxu1 %vm52_vm0, %v37_v12 }
  0x10   :  { %714 = vmatmul.mubr.msk.f32.gmra.mrb[4].mxu0 %vm52_vm0, %v28_v13  ;;  %729 = vmatmul.mubr.msk.f32.gmra.mrb[4].mxu1 %vm52_vm0, %v38_v14 }
  0x11   :  { %716 = vmatprep.mubr.msk.f32.mxu0 %vm52_vm0, %v29_v15  ;;  %731 = vmatprep.mubr.msk.f32.mxu1 %vm52_vm0, %v39_v16 }
  0x14   :  { %717 = vmatmul.mubr.msk.f32.gmra.mrb[6].mxu0 %vm52_vm0, %v30_v17  ;;  %732 = vmatmul.mubr.msk.f32.gmra.mrb[6].mxu1 %vm52_vm0, %v40_v18 }
  0x15   :  { %719 = vmatprep.mubr.msk.f32.mxu0 %vm52_vm0, %v31_v19  ;;  %734 = vmatprep.mubr.msk.f32.mxu1 %vm52_vm0, %v41_v20 }
  0x18   :  { %720 = vmatmul.mubr.msk.f32.gmra.mrb[8].mxu0 %vm52_vm0, %v32_v21  ;;  %735 = vmatmul.mubr.msk.f32.gmra.mrb[8].mxu1 %vm52_vm0, %v42_v22 }
  0xdb   :  { %v709_v24 = vpop.f32.mrb[0].mxu0  ;;  %v724_v25 = vpop.f32.mrb[0].mxu1 }
  0xdc   :  { %v910_v26 = vadd.f32 %v709_v24, %v907_v23  ;;  %v913_v27 = vadd.f32 %v724_v25, %v907_v23  ;;  %v179_v28 = vpop.f32.mrb[1].mxu0  ;;  %v229_v29 = vpop.f32.mrb[1].mxu1 }
  0xdd   :  { %v916_v30 = vadd.f32 %v907_v23, %v179_v28  ;;  %v929_v39 = vadd.f32 %v907_v23, %v229_v29 }
  0xde   :  { %v312_v31 = vsel %vm278_vm1, %v913_v27, 0.0  ;;  %v282_v32 = vsel %vm278_vm1, %v910_v26, 0.0 }
  0xdf   :  { %313 = vadd.xlane.f32.xlu1 %v312_v31  ;;  %283 = vadd.xlane.f32.xlu0 %v282_v32  ;;  %v712_v33 = vpop.f32.mrb[2].mxu0  ;;  %v727_v34 = vpop.f32.mrb[2].mxu1  ;;  %v279_v41 = vsel %vm278_vm1, %v916_v30, 0.0  ;;  %v309_v49 = vsel %vm278_vm1, %v929_v39, 0.0 }
  0xe0   :  { %v923_v35 = vadd.f32 %v712_v33, %v907_v23  ;;  %v189_v36 = vpop.f32.mrb[3].mxu0  ;;  %v926_v37 = vadd.f32 %v727_v34, %v907_v23  ;;  %v239_v38 = vpop.f32.mrb[3].mxu1 }
  0xe1   :  { %v938_v47 = vadd.f32 %v907_v23, %v189_v36  ;;  %v941_v48 = vadd.f32 %v907_v23, %v239_v38 }
  0xe2   :  { %v288_v40 = vsel %vm278_vm1, %v923_v35, 0.0  ;;  %v318_v44 = vsel %vm278_vm1, %v926_v37, 0.0 }
  0xe3   :  { %289 = vadd.xlane.f32.xlu1 %v288_v40  ;;  %280 = vadd.xlane.f32.xlu0 %v279_v41  ;;  %v715_v42 = vpop.f32.mrb[4].mxu0  ;;  %v730_v43 = vpop.f32.mrb[4].mxu1  ;;  %v285_v56 = vsel %vm278_vm1, %v938_v47, 0.0  ;;  %v315_v57 = vsel %vm278_vm1, %v941_v48, 0.0 }
  0xe4   :  { %v199_v45 = vpop.f32.mrb[5].mxu0  ;;  %v249_v46 = vpop.f32.mrb[5].mxu1  ;;  %v946_v52 = vadd.f32 %v715_v42, %v907_v23  ;;  %v956_v60 = vadd.f32 %v730_v43, %v907_v23 }
  0xe5   :  { %v949_v53 = vadd.f32 %v907_v23, %v199_v45  ;;  %v959_v61 = vadd.f32 %v907_v23, %v249_v46 }
  0xe6   :  { %v294_v62 = vsel %vm278_vm1, %v946_v52, 0.0  ;;  %v324_v4 = vsel %vm278_vm1, %v956_v60, 0.0 }
  0xe7   :  { %319 = vadd.xlane.f32.xlu1 %v318_v44  ;;  %310 = vadd.xlane.f32.xlu0 %v309_v49  ;;  %v718_v50 = vpop.f32.mrb[6].mxu0  ;;  %v733_v51 = vpop.f32.mrb[6].mxu1  ;;  %v291_v63 = vsel %vm278_vm1, %v949_v53, 0.0  ;;  %v321_v5 = vsel %vm278_vm1, %v959_v61, 0.0 }
  0xe8   :  { %v209_v54 = vpop.f32.mrb[7].mxu0  ;;  %v259_v55 = vpop.f32.mrb[7].mxu1  ;;  %v966_v2 = vadd.f32 %v718_v50, %v907_v23  ;;  %v976_v6 = vadd.f32 %v733_v51, %v907_v23 }
  0xe9   :  { %v969_v3 = vadd.f32 %v907_v23, %v209_v54  ;;  %v979_v7 = vadd.f32 %v907_v23, %v259_v55 }
  0xea   :  { %v300_v8 = vsel %vm278_vm1, %v966_v2, 0.0  ;;  %v330_v12 = vsel %vm278_vm1, %v976_v6, 0.0 }
  0xeb   :  { %286 = vadd.xlane.f32.xlu1 %v285_v56  ;;  %316 = vadd.xlane.f32.xlu0 %v315_v57  ;;  %v721_v58 = vpop.f32.mrb[8].mxu0  ;;  %v736_v59 = vpop.f32.mrb[8].mxu1  ;;  %v297_v9 = vsel %vm278_vm1, %v969_v3, 0.0  ;;  %v327_v13 = vsel %vm278_vm1, %v979_v7, 0.0 }
  0xec   :  { %v219_v0 = vpop.f32.mrb[9].mxu0  ;;  %v269_v1 = vpop.f32.mrb[9].mxu1  ;;  %v986_v10 = vadd.f32 %v721_v58, %v907_v23  ;;  %v996_v14 = vadd.f32 %v736_v59, %v907_v23 }
  0xed   :  { %v989_v11 = vadd.f32 %v907_v23, %v219_v0  ;;  %v999_v15 = vadd.f32 %v907_v23, %v269_v1 }
  0xee   :  { %v306_v16 = vsel %vm278_vm1, %v986_v10, 0.0  ;;  %v336_v18 = vsel %vm278_vm1, %v996_v14, 0.0 }
  0xef   :  { %295 = vadd.xlane.f32.xlu1 %v294_v62  ;;  %292 = vadd.xlane.f32.xlu0 %v291_v63  ;;  %v303_v17 = vsel %vm278_vm1, %v989_v11, 0.0  ;;  %v333_v19 = vsel %vm278_vm1, %v999_v15, 0.0 }
  0xf3   :  { %325 = vadd.xlane.f32.xlu1 %v324_v4  ;;  %322 = vadd.xlane.f32.xlu0 %v321_v5 }
  0xf7   :  { %301 = vadd.xlane.f32.xlu1 %v300_v8  ;;  %298 = vadd.xlane.f32.xlu0 %v297_v9 }
  0xfb   :  { %331 = vadd.xlane.f32.xlu1 %v330_v12  ;;  %328 = vadd.xlane.f32.xlu0 %v327_v13 }
  0xff   :  { %307 = vadd.xlane.f32.xlu1 %v306_v16  ;;  %304 = vadd.xlane.f32.xlu0 %v303_v17 }
 0x103   :  { %337 = vadd.xlane.f32.xlu1 %v336_v18  ;;  %334 = vadd.xlane.f32.xlu0 %v333_v19 }
 0x16c   :  { %v314_v20 = vpop.xlane.xlu1 %313  ;;  %v284_v21 = vpop.xlane.xlu0 %283 }
 0x16d   :  { %v351_v22 = vmul.f32 0.125, %v314_v20  ;;  %v341_v23 = vmul.f32 0.125, %v284_v21 }
 0x16f   :  { %v1010_v24 = vsub.f32 %v913_v27, %v351_v22  ;;  %v1013_v25 = vsub.f32 %v910_v26, %v341_v23 }
 0x170   :  { %v290_v28 = vpop.xlane.xlu1 %289  ;;  %v281_v29 = vpop.xlane.xlu0 %280 }
 0x171   :  { %v343_v31 = vmul.f32 0.125, %v290_v28  ;;  %v340_v32 = vmul.f32 0.125, %v281_v29  ;;  %v381_v33 = vmul.f32 %v1013_v25, %v1013_v25  ;;  %v391_v27 = vmul.f32 %v1010_v24, %v1010_v24 }
 0x173   :  { %v1018_v34 = vsub.f32 %v923_v35, %v343_v31  ;;  %v1021_v36 = vsub.f32 %v916_v30, %v340_v32  ;;  %v403_v38 = vsel %vm278_vm1, %v381_v33, 0.0  ;;  %v433_v45 = vsel %vm278_vm1, %v391_v27, 0.0 }
 0x174   :  { %v320_v26 = vpop.xlane.xlu1 %319  ;;  %404 = vadd.xlane.f32.xlu1 %v403_v38  ;;  %v311_v40 = vpop.xlane.xlu0 %310 }
 0x175   :  { %v353_v41 = vmul.f32 0.125, %v320_v26  ;;  %v350_v42 = vmul.f32 0.125, %v311_v40  ;;  %v380_v43 = vmul.f32 %v1021_v36, %v1021_v36  ;;  %v383_v35 = vmul.f32 %v1018_v34, %v1018_v34 }
 0x177   :  { %v1031_v44 = vsub.f32 %v926_v37, %v353_v41  ;;  %v1034_v30 = vsub.f32 %v929_v39, %v350_v42  ;;  %v400_v46 = vsel %vm278_vm1, %v380_v43, 0.0  ;;  %v409_v56 = vsel %vm278_vm1, %v383_v35, 0.0 }
 0x178   :  { %434 = vadd.xlane.f32.xlu1 %v433_v45  ;;  %v287_v49 = vpop.xlane.xlu1 %286  ;;  %401 = vadd.xlane.f32.xlu0 %v400_v46  ;;  %v317_v50 = vpop.xlane.xlu0 %316 }
 0x179   :  { %v342_v51 = vmul.f32 0.125, %v287_v49  ;;  %v352_v54 = vmul.f32 0.125, %v317_v50  ;;  %v390_v55 = vmul.f32 %v1034_v30, %v1034_v30  ;;  %v393_v58 = vmul.f32 %v1031_v44, %v1031_v44 }
 0x17b   :  { %v1042_v37 = vsub.f32 %v938_v47, %v342_v51  ;;  %v1045_v39 = vsub.f32 %v941_v48, %v352_v54  ;;  %v430_v57 = vsel %vm278_vm1, %v390_v55, 0.0  ;;  %v439_v5 = vsel %vm278_vm1, %v393_v58, 0.0 }
 0x17c   :  { %410 = vadd.xlane.f32.xlu1 %v409_v56  ;;  %v296_v59 = vpop.xlane.xlu1 %295  ;;  %431 = vadd.xlane.f32.xlu0 %v430_v57  ;;  %v293_v62 = vpop.xlane.xlu0 %292 }
 0x17d   :  { %v345_v63 = vmul.f32 0.125, %v296_v59  ;;  %v344_v0 = vmul.f32 0.125, %v293_v62  ;;  %v382_v1 = vmul.f32 %v1042_v37, %v1042_v37  ;;  %v392_v47 = vmul.f32 %v1045_v39, %v1045_v39 }
 0x17f   :  { %v1055_v48 = vsub.f32 %v946_v52, %v345_v63  ;;  %v1058_v4 = vsub.f32 %v949_v53, %v344_v0  ;;  %v406_v8 = vsel %vm278_vm1, %v382_v1, 0.0  ;;  %v436_v18 = vsel %vm278_vm1, %v392_v47, 0.0 }
 0x180   :  { %440 = vadd.xlane.f32.xlu1 %v439_v5  ;;  %v326_v9 = vpop.xlane.xlu1 %325  ;;  %407 = vadd.xlane.f32.xlu0 %v406_v8  ;;  %v323_v12 = vpop.xlane.xlu0 %322 }
 0x181   :  { %v355_v13 = vmul.f32 0.125, %v326_v9  ;;  %v354_v16 = vmul.f32 0.125, %v323_v12  ;;  %v385_v17 = vmul.f32 %v1055_v48, %v1055_v48  ;;  %v384_v20 = vmul.f32 %v1058_v4, %v1058_v4 }
 0x183   :  { %v1066_v52 = vsub.f32 %v956_v60, %v355_v13  ;;  %v1069_v53 = vsub.f32 %v959_v61, %v354_v16  ;;  %v415_v19 = vsel %vm278_vm1, %v385_v17, 0.0  ;;  %v412_v33 = vsel %vm278_vm1, %v384_v20, 0.0 }
 0x184   :  { %416 = vadd.xlane.f32.xlu1 %v415_v19  ;;  %v302_v21 = vpop.xlane.xlu1 %301  ;;  %437 = vadd.xlane.f32.xlu0 %v436_v18  ;;  %v299_v22 = vpop.xlane.xlu0 %298 }
 0x185   :  { %v347_v23 = vmul.f32 0.125, %v302_v21  ;;  %v346_v28 = vmul.f32 0.125, %v299_v22  ;;  %v395_v29 = vmul.f32 %v1066_v52, %v1066_v52  ;;  %v394_v60 = vmul.f32 %v1069_v53, %v1069_v53 }
 0x187   :  { %v1079_v61 = vsub.f32 %v966_v2, %v347_v23  ;;  %v1082_v31 = vsub.f32 %v969_v3, %v346_v28  ;;  %v445_v32 = vsel %vm278_vm1, %v395_v29, 0.0  ;;  %v442_v42 = vsel %vm278_vm1, %v394_v60, 0.0 }
 0x188   :  { %446 = vadd.xlane.f32.xlu1 %v445_v32  ;;  %v332_v38 = vpop.xlane.xlu1 %331  ;;  %413 = vadd.xlane.f32.xlu0 %v412_v33  ;;  %v329_v27 = vpop.xlane.xlu0 %328 }
 0x189   :  { %v357_v26 = vmul.f32 0.125, %v332_v38  ;;  %v356_v40 = vmul.f32 0.125, %v329_v27  ;;  %v387_v41 = vmul.f32 %v1079_v61, %v1079_v61  ;;  %v386_v35 = vmul.f32 %v1082_v31, %v1082_v31 }
 0x18b   :  { %v1090_v2 = vsub.f32 %v976_v6, %v357_v26  ;;  %v1093_v3 = vsub.f32 %v979_v7, %v356_v40  ;;  %v421_v43 = vsel %vm278_vm1, %v387_v41, 0.0  ;;  %v418_v56 = vsel %vm278_vm1, %v386_v35, 0.0 }
 0x18c   :  { %422 = vadd.xlane.f32.xlu1 %v421_v43  ;;  %v308_v45 = vpop.xlane.xlu1 %307  ;;  %443 = vadd.xlane.f32.xlu0 %v442_v42  ;;  %v305_v46 = vpop.xlane.xlu0 %304  ;;  %v1132_v42 = vld [vmem:[%s1342_s4] ss:$0 sm:$0xff] }
 0x18d   :  { %v349_v49 = vmul.f32 0.125, %v308_v45  ;;  %v348_v50 = vmul.f32 0.125, %v305_v46  ;;  %v397_v51 = vmul.f32 %v1090_v2, %v1090_v2  ;;  %v396_v6 = vmul.f32 %v1093_v3, %v1093_v3 }
 0x18f   :  { %v1103_v7 = vsub.f32 %v986_v10, %v349_v49  ;;  %v1106_v54 = vsub.f32 %v989_v11, %v348_v50  ;;  %v451_v55 = vsel %vm278_vm1, %v397_v51, 0.0  ;;  %v448_v0 = vsel %vm278_vm1, %v396_v6, 0.0  ;;  %v1138_v50 = vld [vmem:[%s1343_s5] ss:$0 sm:$0xff] }
 0x190   :  { %452 = vadd.xlane.f32.xlu1 %v451_v55  ;;  %v338_v57 = vpop.xlane.xlu1 %337  ;;  %419 = vadd.xlane.f32.xlu0 %v418_v56  ;;  %v335_v58 = vpop.xlane.xlu0 %334 }
 0x191   :  { %v359_v59 = vmul.f32 0.125, %v338_v57  ;;  %v358_v62 = vmul.f32 0.125, %v335_v58  ;;  %v389_v63 = vmul.f32 %v1103_v7, %v1103_v7  ;;  %v388_v47 = vmul.f32 %v1106_v54, %v1106_v54  ;;  %v595_v57 = vld [vmem:[%s1344_s1 + $0x8] sm:$0xff] }
 0x193   :  { %v1114_v10 = vsub.f32 %v996_v14, %v359_v59  ;;  %v1117_v11 = vsub.f32 %v999_v15, %v358_v62  ;;  %v427_v1 = vsel %vm278_vm1, %v389_v63, 0.0  ;;  %v424_v9 = vsel %vm278_vm1, %v388_v47, 0.0 }
 0x194   :  { %428 = vadd.xlane.f32.xlu1 %v427_v1  ;;  %449 = vadd.xlane.f32.xlu0 %v448_v0 }
 0x195   :  { %v399_v5 = vmul.f32 %v1114_v10, %v1114_v10  ;;  %v398_v14 = vmul.f32 %v1117_v11, %v1117_v11 }
 0x197   :  { %v457_v8 = vsel %vm278_vm1, %v399_v5, 0.0  ;;  %v454_v15 = vsel %vm278_vm1, %v398_v14, 0.0 }
 0x198   :  { %458 = vadd.xlane.f32.xlu1 %v457_v8  ;;  %425 = vadd.xlane.f32.xlu0 %v424_v9 }
 0x19c   :  { %455 = vadd.xlane.f32.xlu0 %v454_v15 }
 0x201   :  { %v405_v12 = vpop.xlane.xlu1 %404 }
 0x202   :  { %v461_v13 = vmul.f32 0.125, %v405_v12  ;;  %v605_v12 = vld [vmem:[%s1344_s1 + $0x58] sm:$0xff] }
 0x204   :  { %v481_v16 = vadd.f32 1e-05, %v461_v13 }
 0x205   :  { %v435_v17 = vpop.xlane.xlu1 %434  ;;  %v402_v18 = vpop.xlane.xlu0 %401 }
 0x206   :  { %743 = vrsqrt.f32 %v481_v16  ;;  %v471_v19 = vmul.f32 0.125, %v435_v17  ;;  %v460_v20 = vmul.f32 0.125, %v402_v18  ;;  %v594_v18 = vld [vmem:[%s1344_s1] sm:$0xff] }
 0x208   :  { %v491_v21 = vadd.f32 1e-05, %v471_v19  ;;  %v480_v22 = vadd.f32 1e-05, %v460_v20 }
 0x209   :  { %v411_v23 = vpop.xlane.xlu1 %410  ;;  %v432_v28 = vpop.xlane.xlu0 %431 }
 0x20a   :  { %745 = vrsqrt.f32 %v491_v21  ;;  %v463_v29 = vmul.f32 0.125, %v411_v23  ;;  %v470_v60 = vmul.f32 0.125, %v432_v28 }
 0x20b   :  { %747 = vrsqrt.f32 %v480_v22 }
 0x20c   :  { %v483_v32 = vadd.f32 1e-05, %v463_v29  ;;  %v490_v33 = vadd.f32 1e-05, %v470_v60 }
 0x20d   :  { %v441_v38 = vpop.xlane.xlu1 %440  ;;  %v408_v27 = vpop.xlane.xlu0 %407 }
 0x20e   :  { %749 = vrsqrt.f32 %v483_v32  ;;  %v473_v26 = vmul.f32 0.125, %v441_v38  ;;  %v462_v40 = vmul.f32 0.125, %v408_v27  ;;  %v597_v27 = vld [vmem:[%s1344_s1 + $0x18] sm:$0xff] }
 0x20f   :  { %751 = vrsqrt.f32 %v490_v33 }
 0x210   :  { %v744_v41 = vpop.eup %743  ;;  %v493_v43 = vadd.f32 1e-05, %v473_v26  ;;  %v482_v35 = vadd.f32 1e-05, %v462_v40 }
 0x211   :  { %v521_v45 = vmul.f32 %v744_v41, %v1013_v25  ;;  %v417_v46 = vpop.xlane.xlu1 %416  ;;  %v438_v49 = vpop.xlane.xlu0 %437  ;;  %v604_v41 = vld [vmem:[%s1344_s1 + $0x50] sm:$0xff] }
 0x212   :  { %753 = vrsqrt.f32 %v493_v43  ;;  %v465_v51 = vmul.f32 0.125, %v417_v46  ;;  %v472_v6 = vmul.f32 0.125, %v438_v49 }
 0x213   :  { %v548_v55 = vmul.f32 %v1132_v42, %v521_v45  ;;  %755 = vrsqrt.f32 %v482_v35 }
 0x214   :  { %v746_v56 = vpop.eup %745  ;;  %v485_v58 = vadd.f32 1e-05, %v465_v51  ;;  %v492_v25 = vadd.f32 1e-05, %v472_v6 }
 0x215   :  { %v748_v59 = vpop.eup %747  ;;  %v575_v62 = vadd.f32 %v1138_v50, %v548_v55  ;;  %v531_v63 = vmul.f32 %v746_v56, %v1010_v24  ;;  %v447_v0 = vpop.xlane.xlu1 %446 }
 0x216   :  { %v414_v1 = vpop.xlane.xlu0 %413  ;;  %v520_v47 = vmul.f32 %v748_v59, %v1021_v36  ;;  %757 = vrsqrt.f32 %v485_v58  ;;  %v475_v5 = vmul.f32 0.125, %v447_v0  ;;  %v596_v0 = vld [vmem:[%s1344_s1 + $0x10] sm:$0xff] }
 0x217   :  { %v464_v8 = vmul.f32 0.125, %v414_v1  ;;  %v615_v9 = vadd.f32 %v595_v57, %v575_v62  ;;  %v558_v14 = vmul.f32 %v1132_v42, %v531_v63  ;;  %759 = vrsqrt.f32 %v492_v25  ;;  %v607_v25 = vld [vmem:[%s1344_s1 + $0x68] sm:$0xff] }
 0x218   :  { %v750_v15 = vpop.eup %749  ;;  %v547_v13 = vmul.f32 %v1132_v42, %v520_v47  ;;  %v495_v16 = vadd.f32 1e-05, %v475_v5 }
 0x219   :  { %v484_v24 = vadd.f32 1e-05, %v464_v8  ;;  %v752_v17 = vpop.eup %751  ;;  %635 = vst.msk [vmem:[%s1345_s6 + $0x8] sm:$0xff] %vm278_vm1, %v615_v9  ;;  %v585_v36 = vadd.f32 %v1138_v50, %v558_v14  ;;  %v523_v19 = vmul.f32 %v750_v15, %v1018_v34  ;;  %v423_v20 = vpop.xlane.xlu1 %422 }
 0x21a   :  { %v444_v21 = vpop.xlane.xlu0 %443  ;;  %v574_v22 = vadd.f32 %v1138_v50, %v547_v13  ;;  %v530_v23 = vmul.f32 %v752_v17, %v1034_v30  ;;  %761 = vrsqrt.f32 %v495_v16  ;;  %v467_v28 = vmul.f32 0.125, %v423_v20  ;;  %v599_v17 = vld [vmem:[%s1344_s1 + $0x28] sm:$0xff]  ;;  %v606_v20 = vld [vmem:[%s1344_s1 + $0x60] sm:$0xff] }
 0x21b   :  { %v625_v29 = vadd.f32 %v605_v12, %v585_v36  ;;  %v550_v60 = vmul.f32 %v1132_v42, %v523_v19  ;;  %763 = vrsqrt.f32 %v484_v24  ;;  %v474_v32 = vmul.f32 0.125, %v444_v21 }
 0x21c   :  { %v754_v33 = vpop.eup %753  ;;  %v614_v38 = vadd.f32 %v594_v18, %v574_v22  ;;  %v557_v34 = vmul.f32 %v1132_v42, %v530_v23  ;;  %v487_v26 = vadd.f32 1e-05, %v467_v28 }
 0x21d   :  { %v756_v40 = vpop.eup %755  ;;  %645 = vst.msk [vmem:[%s1345_s6 + $0x58] sm:$0xff] %vm278_vm1, %v625_v29  ;;  %v577_v30 = vadd.f32 %v1138_v50, %v550_v60  ;;  %v533_v43 = vmul.f32 %v754_v33, %v1031_v44  ;;  %v494_v35 = vadd.f32 1e-05, %v474_v32  ;;  %v453_v45 = vpop.xlane.xlu1 %452 }
 0x21e   :  { %v420_v46 = vpop.xlane.xlu0 %419  ;;  %634 = vst.msk [vmem:[%s1345_s6] sm:$0xff] %vm278_vm1, %v614_v38  ;;  %v584_v49 = vadd.f32 %v1138_v50, %v557_v34  ;;  %v522_v51 = vmul.f32 %v756_v40, %v1042_v37  ;;  %765 = vrsqrt.f32 %v487_v26  ;;  %v477_v6 = vmul.f32 0.125, %v453_v45  ;;  %v609_v26 = vld [vmem:[%s1344_s1 + $0x78] sm:$0xff] }
 0x21f   :  { %v617_v55 = vadd.f32 %v597_v27, %v577_v30  ;;  %v560_v56 = vmul.f32 %v1132_v42, %v533_v43  ;;  %767 = vrsqrt.f32 %v494_v35  ;;  %v466_v57 = vmul.f32 0.125, %v420_v46  ;;  %v598_v43 = vld [vmem:[%s1344_s1 + $0x20] sm:$0xff] }
 0x220   :  { %v758_v44 = vpop.eup %757  ;;  %v624_v58 = vadd.f32 %v604_v41, %v584_v49  ;;  %v549_v59 = vmul.f32 %v1132_v42, %v522_v51  ;;  %v497_v62 = vadd.f32 1e-05, %v477_v6 }
 0x221   :  { %v760_v63 = vpop.eup %759  ;;  %637 = vst.msk [vmem:[%s1345_s6 + $0x18] sm:$0xff] %vm278_vm1, %v617_v55  ;;  %v587_v37 = vadd.f32 %v1138_v50, %v560_v56  ;;  %v525_v1 = vmul.f32 %v758_v44, %v1055_v48  ;;  %v486_v47 = vadd.f32 1e-05, %v466_v57  ;;  %v429_v5 = vpop.xlane.xlu1 %428 }
 0x222   :  { %v450_v8 = vpop.xlane.xlu0 %449  ;;  %644 = vst.msk [vmem:[%s1345_s6 + $0x50] sm:$0xff] %vm278_vm1, %v624_v58  ;;  %v576_v9 = vadd.f32 %v1138_v50, %v549_v59  ;;  %v532_v14 = vmul.f32 %v760_v63, %v1045_v39  ;;  %769 = vrsqrt.f32 %v497_v62  ;;  %v469_v15 = vmul.f32 0.125, %v429_v5  ;;  %v608_v62 = vld [vmem:[%s1344_s1 + $0x70] sm:$0xff] }
 0x223   :  { %v627_v12 = vadd.f32 %v607_v25, %v587_v37  ;;  %v552_v13 = vmul.f32 %v1132_v42, %v525_v1  ;;  %771 = vrsqrt.f32 %v486_v47  ;;  %v476_v16 = vmul.f32 0.125, %v450_v8 }
 0x224   :  { %v762_v48 = vpop.eup %761  ;;  %v616_v24 = vadd.f32 %v596_v0, %v576_v9  ;;  %v559_v36 = vmul.f32 %v1132_v42, %v532_v14  ;;  %v489_v18 = vadd.f32 1e-05, %v469_v15  ;;  %v611_v9 = vld [vmem:[%s1344_s1 + $0x88] sm:$0xff]  ;;  %v600_v15 = vld [vmem:[%s1344_s1 + $0x30] sm:$0xff] }
 0x225   :  { %v764_v19 = vpop.eup %763  ;;  %647 = vst.msk [vmem:[%s1345_s6 + $0x68] sm:$0xff] %vm278_vm1, %v627_v12  ;;  %v579_v39 = vadd.f32 %v1138_v50, %v552_v13  ;;  %v535_v21 = vmul.f32 %v762_v48, %v1066_v52  ;;  %v496_v22 = vadd.f32 1e-05, %v476_v16  ;;  %v459_v23 = vpop.xlane.xlu1 %458 }
 0x226   :  { %v426_v28 = vpop.xlane.xlu0 %425  ;;  %636 = vst.msk [vmem:[%s1345_s6 + $0x10] sm:$0xff] %vm278_vm1, %v616_v24  ;;  %v586_v29 = vadd.f32 %v1138_v50, %v559_v36  ;;  %v524_v60 = vmul.f32 %v764_v19, %v1058_v4  ;;  %773 = vrsqrt.f32 %v489_v18  ;;  %v479_v32 = vmul.f32 0.125, %v459_v23  ;;  %v603_v18 = vld [vmem:[%s1344_s1 + $0x48] sm:$0xff] }
 0x227   :  { %v619_v33 = vadd.f32 %v599_v17, %v579_v39  ;;  %v562_v38 = vmul.f32 %v1132_v42, %v535_v21  ;;  %775 = vrsqrt.f32 %v496_v22  ;;  %v468_v27 = vmul.f32 0.125, %v426_v28 }
 0x228   :  { %v766_v52 = vpop.eup %765  ;;  %v626_v34 = vadd.f32 %v606_v20, %v586_v29  ;;  %v551_v40 = vmul.f32 %v1132_v42, %v524_v60  ;;  %v499_v30 = vadd.f32 1e-05, %v479_v32  ;;  %v613_v32 = vld [vmem:[%s1344_s1 + $0x98] sm:$0xff] }
 0x229   :  { %v768_v41 = vpop.eup %767  ;;  %639 = vst.msk [vmem:[%s1345_s6 + $0x28] sm:$0xff] %vm278_vm1, %v619_v33  ;;  %v589_v4 = vadd.f32 %v1138_v50, %v562_v38  ;;  %v527_v35 = vmul.f32 %v766_v52, %v1079_v61  ;;  %v488_v45 = vadd.f32 1e-05, %v468_v27  ;;  %v601_v61 = vld [vmem:[%s1344_s1 + $0x38] sm:$0xff] }
 0x22a   :  { %v456_v46 = vpop.xlane.xlu0 %455  ;;  %646 = vst.msk [vmem:[%s1345_s6 + $0x60] sm:$0xff] %vm278_vm1, %v626_v34  ;;  %v578_v49 = vadd.f32 %v1138_v50, %v551_v40  ;;  %v534_v51 = vmul.f32 %v768_v41, %v1069_v53  ;;  %777 = vrsqrt.f32 %v499_v30  ;;  %v612_v40 = vld [vmem:[%s1344_s1 + $0x90] sm:$0xff] }
 0x22b   :  { %v478_v6 = vmul.f32 0.125, %v456_v46  ;;  %v629_v55 = vadd.f32 %v609_v26, %v589_v4  ;;  %v554_v56 = vmul.f32 %v1132_v42, %v527_v35  ;;  %779 = vrsqrt.f32 %v488_v45 }
 0x22c   :  { %v770_v57 = vpop.eup %769  ;;  %v618_v44 = vadd.f32 %v598_v43, %v578_v49  ;;  %v561_v58 = vmul.f32 %v1132_v42, %v534_v51 }
 0x22d   :  { %v498_v25 = vadd.f32 1e-05, %v478_v6  ;;  %v772_v59 = vpop.eup %771  ;;  %649 = vst.msk [vmem:[%s1345_s6 + $0x78] sm:$0xff] %vm278_vm1, %v629_v55  ;;  %v581_v53 = vadd.f32 %v1138_v50, %v554_v56  ;;  %v537_v63 = vmul.f32 %v770_v57, %v1090_v2 }
 0x22e   :  { %638 = vst.msk [vmem:[%s1345_s6 + $0x20] sm:$0xff] %vm278_vm1, %v618_v44  ;;  %v588_v37 = vadd.f32 %v1138_v50, %v561_v58  ;;  %v526_v0 = vmul.f32 %v772_v59, %v1082_v31 }
 0x22f   :  { %781 = vrsqrt.f32 %v498_v25  ;;  %v621_v1 = vadd.f32 %v601_v61, %v581_v53  ;;  %v564_v47 = vmul.f32 %v1132_v42, %v537_v63 }
 0x230   :  { %v774_v5 = vpop.eup %773  ;;  %v628_v8 = vadd.f32 %v608_v62, %v588_v37  ;;  %v553_v2 = vmul.f32 %v1132_v42, %v526_v0 }
 0x231   :  { %v776_v14 = vpop.eup %775  ;;  %641 = vst.msk [vmem:[%s1345_s6 + $0x38] sm:$0xff] %vm278_vm1, %v621_v1  ;;  %v591_v31 = vadd.f32 %v1138_v50, %v564_v47  ;;  %v529_v12 = vmul.f32 %v774_v5, %v1103_v7 }
 0x232   :  { %648 = vst.msk [vmem:[%s1345_s6 + $0x70] sm:$0xff] %vm278_vm1, %v628_v8  ;;  %v580_v13 = vadd.f32 %v1138_v50, %v553_v2  ;;  %v536_v16 = vmul.f32 %v776_v14, %v1093_v3  ;;  %v610_v3 = vld [vmem:[%s1344_s1 + $0x80] sm:$0xff] }
 0x233   :  { %v631_v48 = vadd.f32 %v611_v9, %v591_v31  ;;  %v556_v24 = vmul.f32 %v1132_v42, %v529_v12 }
 0x234   :  { %v778_v17 = vpop.eup %777  ;;  %v620_v36 = vadd.f32 %v600_v15, %v580_v13  ;;  %v563_v7 = vmul.f32 %v1132_v42, %v536_v16 }
 0x235   :  { %v780_v19 = vpop.eup %779  ;;  %651 = vst.msk [vmem:[%s1345_s6 + $0x88] sm:$0xff] %vm278_vm1, %v631_v48  ;;  %v583_v39 = vadd.f32 %v1138_v50, %v556_v24  ;;  %v539_v20 = vmul.f32 %v778_v17, %v1114_v10 }
 0x236   :  { %640 = vst.msk [vmem:[%s1345_s6 + $0x30] sm:$0xff] %vm278_vm1, %v620_v36  ;;  %v590_v21 = vadd.f32 %v1138_v50, %v563_v7  ;;  %v528_v22 = vmul.f32 %v780_v19, %v1106_v54  ;;  %v602_v54 = vld [vmem:[%s1344_s1 + $0x40] sm:$0xff] }
 0x237   :  { %v623_v23 = vadd.f32 %v603_v18, %v583_v39  ;;  %v566_v28 = vmul.f32 %v1132_v42, %v539_v20 }
 0x238   :  { %v630_v60 = vadd.f32 %v610_v3, %v590_v21  ;;  %v555_v10 = vmul.f32 %v1132_v42, %v528_v22 }
 0x239   :  { %v782_v29 = vpop.eup %781  ;;  %643 = vst.msk [vmem:[%s1345_s6 + $0x48] sm:$0xff] %vm278_vm1, %v623_v23  ;;  %v593_v33 = vadd.f32 %v1138_v50, %v566_v28 }
 0x23a   :  { %v538_v38 = vmul.f32 %v782_v29, %v1117_v11  ;;  %650 = vst.msk [vmem:[%s1345_s6 + $0x80] sm:$0xff] %vm278_vm1, %v630_v60  ;;  %v582_v27 = vadd.f32 %v1138_v50, %v555_v10 }
 0x23b   :  { %v633_v52 = vadd.f32 %v613_v32, %v593_v33 }
 0x23c   :  { %v565_v34 = vmul.f32 %v1132_v42, %v538_v38  ;;  %v622_v26 = vadd.f32 %v602_v54, %v582_v27 }
 0x23d   :  { %653 = vst.msk [vmem:[%s1345_s6 + $0x98] sm:$0xff] %vm278_vm1, %v633_v52 }
 0x23e   :  { %v592_v11 = vadd.f32 %v1138_v50, %v565_v34  ;;  %642 = vst.msk [vmem:[%s1345_s6 + $0x40] sm:$0xff] %vm278_vm1, %v622_v26 }
 0x240   :  { %v632_v30 = vadd.f32 %v612_v40, %v592_v11 }
 0x242   :  { %652 = vst.msk [vmem:[%s1345_s6 + $0x90] sm:$0xff] %vm278_vm1, %v632_v30 }

// kernel: tf_dsdprnn_forward.26
= control target key start
LH: loop header
LB: loop body
LE: loop exit
PB: predicated region body
PF: predicated region fallthrough
CT: control target
= control target key end

     0   :  { %s649_s9 = smov 0   ;;  %s651_s10 = smov 0   ;;  %s713_s0 = inlined_call_operand.vmem [shape: f32[8,20,64], index: 0, kind: input, shape index: {}]   ;;  %s714_s1 = inlined_call_operand.vmem [shape: f32[16,64], index: 1, kind: input, shape index: {}]   ;;  %s715_s2 = inlined_call_operand.vmem [shape: f32[8,20,16], index: 2, kind: output, shape index: {}]  }
   0x1   :  { %s653_s11 = smov 0  }
   0x2 LB: > { %s21_s12 = sadd.s32 1, %s619_s10  ;;  %p508_p0 = scmp.ge.s32.totalorder %s623_s11, 1  ;;  %s623_s11 = sphi %s653_s11, %s12_s11   ;;  %s619_s10 = sphi %s651_s10, %s717_s10   ;;  %s615_s9 = sphi %s649_s9, %s716_s9  }
   0x3   : > { %p22_p1 = scmp.ge.s32.totalorder %s21_s12, 8  ;;  %p133_p2 = scmp.lt.s32.totalorder %s623_s11, 9 }
   0x5   : > { %s719_s12 = smov (%p22_p1, %s21_s12), 0  ;;  %p134_p3 = pnand %p508_p0, %p133_p2 }
   0x6   : > { %p164_p4 = scmp.lt.s32.totalorder (!%p134_p3), %s615_s9, 7  ;;  %p511_p5 = scmp.ne.s32.totalorder (!%p134_p3), %s615_s9, 0 }
   0x7   : > { %137 = sbr.rel (%p134_p3) target bundleno = 736 (0x2e0), region = 28 }
   0xe   : > { %s165_s13 = scalar_select %p164_p4, %s615_s9, 7 }
   0xf   : > { %186 = sbr.rel (%p511_p5) target bundleno = 22 (0x16), region = 32  ;;  %vm187_vm0 = vcmask (!%p511_p5), 130048   ;;  %vm190_vm1 = vcmask (!%p511_p5), 125952   ;;  %v625_v0 = vmov (!%p511_p5), 0.0  }
  0x10   : > { %s543_s14 = smul.u32 24, %s165_s13  ;;  %188 = vst.msk [vmem:[#allocation2] sm:$0xff] (!%p511_p5), %vm187_vm0, %v625_v0  ;;  %189 = vst.msk [vmem:[#allocation2 + $0x8] sm:$0xff] (!%p511_p5), %vm187_vm0, %v625_v0 }
  0x11   : > { %192 = vst.msk [vmem:[#allocation3] sm:$0xff] (!%p511_p5), %vm187_vm0, %v625_v0  ;;  %193 = vst.msk [vmem:[#allocation3 + $0x8] sm:$0xff] (!%p511_p5), %vm187_vm0, %v625_v0 }
  0x12   : > { %s670_s17 = scalar_lea.vmem %s713_s0, %s543_s14  ;;  %s675_s20 = scalar_lea.vmem %s715_s2, %s543_s14  ;;  %191 = vst.msk [vmem:[#allocation2 + $0x10] sm:$0xf] (!%p511_p5), %vm190_vm1, %v625_v0  ;;  %194 = vst.msk [vmem:[#allocation3 + $0x10] sm:$0xf] (!%p511_p5), %vm190_vm1, %v625_v0 }
  0x16 PF: > { %v201_v1 = vld [vmem:[%s714_s1] sm:$0xff]  ;;  %v202_v2 = vld [vmem:[%s714_s1 + $0x8] sm:$0xff]  ;;  %v626_v3 = vmov 0.0|0.0   ;;  %vm627_vm2 = vmmov 0   ;;  %v628_v5 = vmov 0.0   ;;  %vm203_vm3 = vcmask 130048  }
  0x17   : > { %538 = vmatprep.subr.bf16.mxu0 %v626_v3  ;;  %541 = vmatprep.subr.bf16.mxu1 %v626_v3  ;;  %v539_v4 = vpack.c.bf16 %v202_v2, %v201_v1  ;;  %v198_v6 = vld [vmem:[#allocation2] sm:$0xff]  ;;  %v199_v7 = vld [vmem:[#allocation2 + $0x8] sm:$0xff]  ;;  %v197_v17 = vld [vmem:[%s670_s17 + $0x10] sm:$0xf]  ;;  %s629_s25 = smov 96   ;;  %s630_s26 = smov 16  }
  0x18   : > { %529 = vmatprep.mubr.msk.f32.mxu0 %vm627_vm2, %v628_v5  ;;  %532 = vmatprep.mubr.msk.f32.mxu1 %vm627_vm2, %v628_v5  ;;  %v195_v9 = vld [vmem:[%s670_s17] sm:$0xff]  ;;  %v196_v10 = vld [vmem:[%s670_s17 + $0x8] sm:$0xff]  ;;  %v317_v24 = vld [vmem:[#allocation3] sm:$0xff]  ;;  %s631_s27 = smov 32   ;;  %s632_s28 = smov 112   ;;  %vm397_vm4 = vcmask 125952  }
  0x19   : > { %540 = vmatpush3.bf16.msra.mxu0 %v539_v4  ;;  %542 = vmatpush3.bf16.msra.mxu1 %v539_v4  ;;  %v200_v8 = vld [vmem:[#allocation2 + $0x10] sm:$0xf]  ;;  %v318_v25 = vld [vmem:[#allocation3 + $0x8] sm:$0xff]  ;;  %v319_v26 = vld [vmem:[#allocation3 + $0x10] sm:$0xf]  ;;  %s633_s29 = smov 80  }
  0x1c   : > { %530 = vmatmul.mubr.msk.f32.vlgmr.msra.gmra.mrb[0].mxu0 %vm203_vm3, %v198_v6  ;;  %533 = vmatmul.mubr.msk.f32.vlgmr.msra.gmra.mrb[0].mxu1 %vm203_vm3, %v199_v7 }
  0x1d   : > { %535 = vmatprep.mubr.msk.f32.mxu1 %vm627_vm2, %v628_v5 }
  0x20   : > { %536 = vmatmul.mubr.msk.f32.gmra.mrb[2].mxu1 %vm203_vm3, %v200_v8 }
  0xef   : > { %v279_v11 = vpop.f32.mrb[0].mxu0  ;;  %v284_v12 = vpop.f32.mrb[0].mxu1 }
  0xf0   : > { %v293_v13 = vadd.f32 %v279_v11, %v195_v9  ;;  %v531_v14 = vpop.f32.mrb[1].mxu0  ;;  %v534_v15 = vpop.f32.mrb[1].mxu1  ;;  %v294_v16 = vadd.f32 %v284_v12, %v196_v10 }
  0xf2   : > { %577 = vtanh.f32 %v293_v13  ;;  %v515_v27 = vmul.f32 -1.442695, %v293_v13  ;;  %v516_v28 = vmul.f32 -1.442695, %v294_v16 }
  0xf3   : > { %v289_v18 = vpop.f32.mrb[2].mxu1  ;;  %579 = vtanh.f32 %v294_v16 }
  0xf4   : > { %v295_v19 = vadd.f32 %v289_v18, %v197_v17  ;;  %v537_v20 = vpop.f32.mrb[3].mxu1 }
  0xf6   : > { %581 = vtanh.f32 %v295_v19  ;;  %v517_v29 = vmul.f32 -1.442695, %v295_v19 }
  0xf7   : > { %583 = vpow2.f32 %v515_v27 }
  0xf8   : > { %585 = vpow2.f32 %v516_v28 }
  0xf9   : > { %587 = vpow2.f32 %v517_v29 }
  0xfc   : > { %v578_v21 = vpop.eup %577 }
  0xfd   : > { %338 = vrot.lane.b32.xlu0 %v578_v21, %s629_s25  ;;  %v580_v22 = vpop.eup %579 }
 0x100   : > { %v582_v23 = vpop.eup %581 }
 0x101   : > { %342 = vrot.lane.b32.xlu1 %v582_v23, %s629_s25  ;;  %340 = vrot.lane.b32.xlu0 %v580_v22, %s629_s25  ;;  %v584_v30 = vpop.eup %583 }
 0x102   : > { %v586_v31 = vpop.eup %585  ;;  %v305_v32 = vadd.f32 1.0, %v584_v30 }
 0x103   : > { %v588_v33 = vpop.eup %587  ;;  %v306_v34 = vadd.f32 1.0, %v586_v31 }
 0x104   : > { %589 = vrcp.f32 %v305_v32  ;;  %v307_v35 = vadd.f32 1.0, %v588_v33 }
 0x105   : > { %323 = vrot.lane.b32.xlu1 %v317_v24, %s630_s26  ;;  %325 = vrot.lane.b32.xlu0 %v318_v25, %s630_s26  ;;  %591 = vrcp.f32 %v306_v34 }
 0x106   : > { %593 = vrcp.f32 %v307_v35 }
 0x109   : > { %327 = vrot.lane.b32.xlu1 %v319_v26, %s630_s26 }
 0x10e   : > { %v590_v36 = vpop.eup %589 }
 0x10f   : > { %v592_v39 = vpop.eup %591 }
 0x110   : > { %v594_v40 = vpop.eup %593 }
 0x16f   : > { %v339_v37 = vpop.permute.xlu0 %338 }
 0x170   : > { %v347_v38 = vmul.f32 %v590_v36, %v339_v37 }
 0x172   : > { %353 = vrot.lane.b32.xlu0 %v347_v38, %s630_s26 }
 0x173   : > { %v343_v41 = vpop.permute.xlu1 %342  ;;  %v341_v42 = vpop.permute.xlu0 %340 }
 0x174   : > { %v349_v43 = vmul.f32 %v594_v40, %v343_v41  ;;  %v348_v44 = vmul.f32 %v592_v39, %v341_v42 }
 0x176   : > { %355 = vrot.lane.b32.xlu1 %v348_v44, %s630_s26  ;;  %357 = vrot.lane.b32.xlu0 %v349_v43, %s630_s26 }
 0x177   : > { %v324_v45 = vpop.permute.xlu1 %323  ;;  %v326_v46 = vpop.permute.xlu0 %325 }
 0x178   : > { %v332_v47 = vmul.f32 %v590_v36, %v324_v45  ;;  %v333_v51 = vmul.f32 %v592_v39, %v326_v46 }
 0x17b   : > { %v328_v48 = vpop.permute.xlu1 %327 }
 0x17c   : > { %v334_v52 = vmul.f32 %v594_v40, %v328_v48 }
 0x1e4   : > { %v354_v49 = vpop.permute.xlu0 %353 }
 0x1e5   : > { %v362_v50 = vadd.f32 %v354_v49, %v332_v47 }
 0x1e7   : > { %595 = vtanh.f32 %v362_v50 }
 0x1e8   : > { %v356_v53 = vpop.permute.xlu1 %355  ;;  %v358_v54 = vpop.permute.xlu0 %357 }
 0x1e9   : > { %v363_v55 = vadd.f32 %v356_v53, %v333_v51  ;;  %v364_v56 = vadd.f32 %v358_v54, %v334_v52 }
 0x1eb   : > { %597 = vtanh.f32 %v363_v55 }
 0x1ec   : > { %599 = vtanh.f32 %v364_v56 }
 0x1f1   : > { %v596_v57 = vpop.eup %595 }
 0x1f2   : > { %371 = vrot.lane.b32.xlu1 %v596_v57, %s631_s27 }
 0x1f5   : > { %v598_v58 = vpop.eup %597 }
 0x1f6   : > { %v600_v59 = vpop.eup %599  ;;  %373 = vrot.lane.b32.xlu0 %v598_v58, %s631_s27 }
 0x1f7   : > { %375 = vrot.lane.b32.xlu1 %v600_v59, %s631_s27 }
 0x1fa   : > { %386 = vrot.lane.b32.xlu0 %v362_v50, %s632_s28 }
 0x1fb   : > { %388 = vrot.lane.b32.xlu1 %v363_v55, %s632_s28 }
 0x1fe   : > { %390 = vrot.lane.b32.xlu0 %v364_v56, %s632_s28 }
 0x264   : > { %v372_v60 = vpop.permute.xlu1 %371 }
 0x265   : > { %v380_v61 = vmul.f32 %v590_v36, %v372_v60 }
 0x267   : > { %402 = vrot.lane.b32.xlu1 %v380_v61, %s633_s29 }
 0x268   : > { %v374_v62 = vpop.permute.xlu0 %373 }
 0x269   : > { %v381_v63 = vmul.f32 %v592_v39, %v374_v62  ;;  %v376_v0 = vpop.permute.xlu1 %375 }
 0x26a   : > { %v382_v1 = vmul.f32 %v594_v40, %v376_v0 }
 0x26b   : > { %404 = vrot.lane.b32.xlu0 %v381_v63, %s633_s29 }
 0x26c   : > { %406 = vrot.lane.b32.xlu1 %v382_v1, %s633_s29  ;;  %v387_v2 = vpop.permute.xlu0 %386 }
 0x26d   : > { %395 = vst.msk [vmem:[#allocation3] sm:$0xff] %vm203_vm3, %v387_v2  ;;  %v389_v3 = vpop.permute.xlu1 %388 }
 0x26e   : > { %396 = vst.msk [vmem:[#allocation3 + $0x8] sm:$0xff] %vm203_vm3, %v389_v3 }
 0x270   : > { %v391_v4 = vpop.permute.xlu0 %390 }
 0x271   : > { %398 = vst.msk [vmem:[#allocation3 + $0x10] sm:$0xf] %vm397_vm4, %v391_v4 }
 0x2d9   : > { %v403_v5 = vpop.permute.xlu1 %402 }
 0x2da   : > { %411 = vst.msk [vmem:[#allocation2] sm:$0xff] %vm203_vm3, %v403_v5  ;;  %414 = vst.msk [vmem:[%s675_s20] sm:$0xff] %vm203_vm3, %v403_v5 }
 0x2dd   : > { %v405_v6 = vpop.permute.xlu0 %404 }
 0x2de   : > { %412 = vst.msk [vmem:[#allocation2 + $0x8] sm:$0xff] %vm203_vm3, %v405_v6  ;;  %415 = vst.msk [vmem:[%s675_s20 + $0x8] sm:$0xff] %vm203_vm3, %v405_v6  ;;  %v407_v7 = vpop.permute.xlu1 %406 }
 0x2df   : > { %413 = vst.msk [vmem:[#allocation2 + $0x10] sm:$0xf] %vm397_vm4, %v407_v7  ;;  %416 = vst.msk [vmem:[%s675_s20 + $0x10] sm:$0xf] %vm397_vm4, %v407_v7 }
 0x2e0 PF: > { %s12_s11 = sadd.s32 1, %s623_s11   ;;  %s716_s9 = smov %s619_s10 }
 0x2e1   : > { %p9_p6 = scmp.ge.s32.totalorder %s12_s11, 10   ;;  %s717_s10 = smov %s719_s12 }
 0x2e3   :  { %11 = sbr.rel (!%p9_p6) target bundleno = 2 (0x2), region = 62 }

// kernel: tf_dsdprnn_forward.34
= control target key start
LH: loop header
LB: loop body
LE: loop exit
PB: predicated region body
PF: predicated region fallthrough
CT: control target
= control target key end

     0   :  { %vm108_vm0 = vcmask 64512   ;;  %s655_s2 = inlined_call_operand.vmem [shape: f32[8,16], index: 2, kind: input, shape index: {}]   ;;  %s656_s0 = inlined_call_operand.vmem [shape: f32[160,8], index: 0, kind: input, shape index: {}]   ;;  %s657_s1 = inlined_call_operand.<no memory space> [shape: f32[1,1], index: 1, kind: input, shape index: {}]   ;;  %s658_s3 = inlined_call_operand.vmem [shape: f32[1,16], index: 3, kind: input, shape index: {}]   ;;  %s659_s4 = inlined_call_operand.vmem [shape: f32[160,16], index: 4, kind: output, shape index: {}]  }
   0x1   :  { %v100_v0 = vld [vmem:[%s655_s2] sm:$0xff]  ;;  %v469_v2 = vstv %s657_s1  ;;  %v28_v3 = vld [vmem:[%s656_s0 + $0x50] sm:$0xff]  ;;  %v19_v6 = vld [vmem:[%s656_s0 + $0x8] sm:$0xff] }
   0x2   :  { %v18_v1 = vld [vmem:[%s656_s0] sm:$0xff]  ;;  %401 = vmatprep.subr.mxu0 %v100_v0  ;;  %433 = vmatprep.subr.mxu1 %v100_v0  ;;  %vm49_vm2 = vcmp.ge.f32.partialorder %v28_v3, 0.0  ;;  %v70_v5 = vmul.f32 %v469_v2, %v28_v3  ;;  %v29_v7 = vld [vmem:[%s656_s0 + $0x58] sm:$0xff]  ;;  %v20_v8 = vld [vmem:[%s656_s0 + $0x10] sm:$0xff]  ;;  %vm40_vm3 = vcmp.ge.f32.partialorder %v19_v6, 0.0  ;;  %v61_v9 = vmul.f32 %v469_v2, %v19_v6 }
   0x3   :  { %vm39_vm1 = vcmp.ge.f32.partialorder %v18_v1, 0.0  ;;  %v60_v4 = vmul.f32 %v469_v2, %v18_v1  ;;  %402 = vmatpush3.msra.mxu0 %v100_v0  ;;  %434 = vmatpush3.msra.mxu1 %v100_v0  ;;  %vm50_vm4 = vcmp.ge.f32.partialorder %v29_v7, 0.0  ;;  %v71_v10 = vmul.f32 %v469_v2, %v29_v7  ;;  %v30_v11 = vld [vmem:[%s656_s0 + $0x60] sm:$0xff]  ;;  %v21_v12 = vld [vmem:[%s656_s0 + $0x18] sm:$0xff]  ;;  %v31_v13 = vld [vmem:[%s656_s0 + $0x68] sm:$0xff] }
   0x4   :  { %v90_v15 = vsel %vm49_vm2, %v28_v3, %v70_v5  ;;  %vm41_vm5 = vcmp.ge.f32.partialorder %v20_v8, 0.0  ;;  %v62_v16 = vmul.f32 %v469_v2, %v20_v8  ;;  %v22_v17 = vld [vmem:[%s656_s0 + $0x20] sm:$0xff]  ;;  %v81_v18 = vsel %vm40_vm3, %v19_v6, %v61_v9  ;;  %v32_v21 = vld [vmem:[%s656_s0 + $0x70] sm:$0xff]  ;;  %v23_v22 = vld [vmem:[%s656_s0 + $0x28] sm:$0xff] }
   0x5   :  { %v80_v14 = vsel %vm39_vm1, %v18_v1, %v60_v4  ;;  %418 = vmatprep.mubr.msk.f32.mxu1 %vm108_vm0, %v90_v15  ;;  %v91_v19 = vsel %vm50_vm4, %v29_v7, %v71_v10  ;;  %vm51_vm6 = vcmp.ge.f32.partialorder %v30_v11, 0.0  ;;  %v72_v20 = vmul.f32 %v469_v2, %v30_v11  ;;  %v33_v25 = vld [vmem:[%s656_s0 + $0x78] sm:$0xff]  ;;  %v24_v29 = vld [vmem:[%s656_s0 + $0x30] sm:$0xff]  ;;  %v34_v32 = vld [vmem:[%s656_s0 + $0x80] sm:$0xff] }
   0x6   :  { %403 = vmatprep.mubr.msk.f32.mxu0 %vm108_vm0, %v80_v14  ;;  %419 = vmatmul.mubr.msk.f32.vlgmr.msra.gmra.mrb[0].mxu1 %vm108_vm0, %v91_v19  ;;  %v82_v23 = vsel %vm41_vm5, %v20_v8, %v62_v16  ;;  %vm42_vm7 = vcmp.ge.f32.partialorder %v21_v12, 0.0  ;;  %v63_v24 = vmul.f32 %v469_v2, %v21_v12  ;;  %vm52_vm8 = vcmp.ge.f32.partialorder %v31_v13, 0.0  ;;  %v25_v33 = vld [vmem:[%s656_s0 + $0x38] sm:$0xff]  ;;  %v35_v37 = vld [vmem:[%s656_s0 + $0x88] sm:$0xff]  ;;  %v26_v41 = vld [vmem:[%s656_s0 + $0x40] sm:$0xff] }
   0x7   :  { %404 = vmatmul.mubr.msk.f32.vlgmr.msra.gmra.mrb[0].mxu0 %vm108_vm0, %v81_v18  ;;  %v92_v26 = vsel %vm51_vm6, %v30_v11, %v72_v20  ;;  %v73_v27 = vmul.f32 %v469_v2, %v31_v13  ;;  %vm43_vm9 = vcmp.ge.f32.partialorder %v22_v17, 0.0  ;;  %v64_v28 = vmul.f32 %v469_v2, %v22_v17  ;;  %v36_v44 = vld [vmem:[%s656_s0 + $0x90] sm:$0xff]  ;;  %v27_v48 = vld [vmem:[%s656_s0 + $0x48] sm:$0xff]  ;;  %v37_v52 = vld [vmem:[%s656_s0 + $0x98] sm:$0xff] }
   0x8   :  { %406 = vmatprep.mubr.msk.f32.mxu0 %vm108_vm0, %v82_v23  ;;  %421 = vmatprep.mubr.msk.f32.mxu1 %vm108_vm0, %v92_v26  ;;  %v83_v30 = vsel %vm42_vm7, %v21_v12, %v63_v24  ;;  %vm53_vm10 = vcmp.ge.f32.partialorder %v32_v21, 0.0  ;;  %v74_v31 = vmul.f32 %v469_v2, %v32_v21  ;;  %vm44_vm11 = vcmp.ge.f32.partialorder %v23_v22, 0.0  ;;  %v359_v62 = vld [vmem:[%s658_s3] ss:$0 sm:$0xff] }
   0x9   :  { %v93_v34 = vsel %vm52_vm8, %v31_v13, %v73_v27  ;;  %v84_v35 = vsel %vm43_vm9, %v22_v17, %v64_v28  ;;  %v65_v36 = vmul.f32 %v469_v2, %v23_v22  ;;  %vm54_vm12 = vcmp.ge.f32.partialorder %v33_v25, 0.0 }
   0xa   :  { %422 = vmatmul.mubr.msk.f32.gmra.mrb[2].mxu1 %vm108_vm0, %v93_v34  ;;  %v94_v38 = vsel %vm53_vm10, %v32_v21, %v74_v31  ;;  %v75_v39 = vmul.f32 %v469_v2, %v33_v25  ;;  %vm45_vm13 = vcmp.ge.f32.partialorder %v24_v29, 0.0  ;;  %v66_v40 = vmul.f32 %v469_v2, %v24_v29 }
   0xb   :  { %407 = vmatmul.mubr.msk.f32.gmra.mrb[2].mxu0 %vm108_vm0, %v83_v30  ;;  %424 = vmatprep.mubr.msk.f32.mxu1 %vm108_vm0, %v94_v38  ;;  %v85_v42 = vsel %vm44_vm11, %v23_v22, %v65_v36  ;;  %vm55_vm14 = vcmp.ge.f32.partialorder %v34_v32, 0.0  ;;  %v76_v43 = vmul.f32 %v469_v2, %v34_v32  ;;  %vm46_vm15 = vcmp.ge.f32.partialorder %v25_v33, 0.0 }
   0xc   :  { %409 = vmatprep.mubr.msk.f32.mxu0 %vm108_vm0, %v84_v35  ;;  %v95_v45 = vsel %vm54_vm12, %v33_v25, %v75_v39  ;;  %v86_v46 = vsel %vm45_vm13, %v24_v29, %v66_v40  ;;  %v67_v47 = vmul.f32 %v469_v2, %v25_v33  ;;  %vm56_vm1 = vcmp.ge.f32.partialorder %v35_v37, 0.0 }
   0xd   :  { %v96_v49 = vsel %vm55_vm14, %v34_v32, %v76_v43  ;;  %v77_v50 = vmul.f32 %v469_v2, %v35_v37  ;;  %vm47_vm2 = vcmp.ge.f32.partialorder %v26_v41, 0.0  ;;  %v68_v51 = vmul.f32 %v469_v2, %v26_v41 }
   0xe   :  { %425 = vmatmul.mubr.msk.f32.gmra.mrb[4].mxu1 %vm108_vm0, %v95_v45  ;;  %vm57_vm3 = vcmp.ge.f32.partialorder %v36_v44, 0.0  ;;  %v78_v53 = vmul.f32 %v469_v2, %v36_v44  ;;  %v87_v54 = vsel %vm46_vm15, %v25_v33, %v67_v47  ;;  %vm48_vm4 = vcmp.ge.f32.partialorder %v27_v48, 0.0 }
   0xf   :  { %410 = vmatmul.mubr.msk.f32.gmra.mrb[4].mxu0 %vm108_vm0, %v85_v42  ;;  %427 = vmatprep.mubr.msk.f32.mxu1 %vm108_vm0, %v96_v49  ;;  %v97_v55 = vsel %vm56_vm1, %v35_v37, %v77_v50  ;;  %v69_v56 = vmul.f32 %v469_v2, %v27_v48  ;;  %v88_v57 = vsel %vm47_vm2, %v26_v41, %v68_v51  ;;  %vm58_vm5 = vcmp.ge.f32.partialorder %v37_v52, 0.0 }
  0x10   :  { %412 = vmatprep.mubr.msk.f32.mxu0 %vm108_vm0, %v86_v46  ;;  %v98_v58 = vsel %vm57_vm3, %v36_v44, %v78_v53  ;;  %v79_v59 = vmul.f32 %v469_v2, %v37_v52  ;;  %vm334_vm6 = vcmask 130048  }
  0x11   :  { %v89_v60 = vsel %vm48_vm4, %v27_v48, %v69_v56 }
  0x12   :  { %428 = vmatmul.mubr.msk.f32.gmra.mrb[6].mxu1 %vm108_vm0, %v97_v55  ;;  %v99_v61 = vsel %vm58_vm5, %v37_v52, %v79_v59 }
  0x13   :  { %413 = vmatmul.mubr.msk.f32.gmra.mrb[6].mxu0 %vm108_vm0, %v87_v54  ;;  %430 = vmatprep.mubr.msk.f32.mxu1 %vm108_vm0, %v98_v58 }
  0x14   :  { %415 = vmatprep.mubr.msk.f32.mxu0 %vm108_vm0, %v88_v57 }
  0x16   :  { %431 = vmatmul.mubr.msk.f32.gmra.mrb[8].mxu1 %vm108_vm0, %v99_v61 }
  0x17   :  { %416 = vmatmul.mubr.msk.f32.gmra.mrb[8].mxu0 %vm108_vm0, %v89_v60 }
  0xd9   :  { %v420_v0 = vpop.f32.mrb[0].mxu1 }
  0xda   :  { %v405_v63 = vpop.f32.mrb[0].mxu0  ;;  %v291_v2 = vadd.f32 %v420_v0, %v359_v62  ;;  %v285_v4 = vpop.f32.mrb[1].mxu1 }
  0xdb   :  { %v241_v1 = vadd.f32 %v405_v63, %v359_v62  ;;  %v235_v3 = vpop.f32.mrb[1].mxu0  ;;  %v286_v6 = vadd.f32 %v359_v62, %v285_v4 }
  0xdc   :  { %v236_v5 = vadd.f32 %v359_v62, %v235_v3  ;;  %346 = vst.msk [vmem:[%s659_s4 + $0x58] sm:$0xff] %vm334_vm6, %v291_v2 }
  0xdd   :  { %336 = vst.msk [vmem:[%s659_s4 + $0x8] sm:$0xff] %vm334_vm6, %v241_v1  ;;  %345 = vst.msk [vmem:[%s659_s4 + $0x50] sm:$0xff] %vm334_vm6, %v286_v6  ;;  %v423_v8 = vpop.f32.mrb[2].mxu1 }
  0xde   :  { %335 = vst.msk [vmem:[%s659_s4] sm:$0xff] %vm334_vm6, %v236_v5  ;;  %v408_v7 = vpop.f32.mrb[2].mxu0  ;;  %v301_v10 = vadd.f32 %v423_v8, %v359_v62  ;;  %v295_v12 = vpop.f32.mrb[3].mxu1 }
  0xdf   :  { %v251_v9 = vadd.f32 %v408_v7, %v359_v62  ;;  %v245_v11 = vpop.f32.mrb[3].mxu0  ;;  %v296_v14 = vadd.f32 %v359_v62, %v295_v12 }
  0xe0   :  { %v246_v13 = vadd.f32 %v359_v62, %v245_v11  ;;  %348 = vst.msk [vmem:[%s659_s4 + $0x68] sm:$0xff] %vm334_vm6, %v301_v10 }
  0xe1   :  { %338 = vst.msk [vmem:[%s659_s4 + $0x18] sm:$0xff] %vm334_vm6, %v251_v9  ;;  %347 = vst.msk [vmem:[%s659_s4 + $0x60] sm:$0xff] %vm334_vm6, %v296_v14  ;;  %v426_v16 = vpop.f32.mrb[4].mxu1 }
  0xe2   :  { %337 = vst.msk [vmem:[%s659_s4 + $0x10] sm:$0xff] %vm334_vm6, %v246_v13  ;;  %v411_v15 = vpop.f32.mrb[4].mxu0  ;;  %v311_v18 = vadd.f32 %v426_v16, %v359_v62  ;;  %v305_v20 = vpop.f32.mrb[5].mxu1 }
  0xe3   :  { %v261_v17 = vadd.f32 %v411_v15, %v359_v62  ;;  %v255_v19 = vpop.f32.mrb[5].mxu0  ;;  %v306_v22 = vadd.f32 %v359_v62, %v305_v20 }
  0xe4   :  { %v256_v21 = vadd.f32 %v359_v62, %v255_v19  ;;  %350 = vst.msk [vmem:[%s659_s4 + $0x78] sm:$0xff] %vm334_vm6, %v311_v18 }
  0xe5   :  { %340 = vst.msk [vmem:[%s659_s4 + $0x28] sm:$0xff] %vm334_vm6, %v261_v17  ;;  %349 = vst.msk [vmem:[%s659_s4 + $0x70] sm:$0xff] %vm334_vm6, %v306_v22  ;;  %v429_v24 = vpop.f32.mrb[6].mxu1 }
  0xe6   :  { %339 = vst.msk [vmem:[%s659_s4 + $0x20] sm:$0xff] %vm334_vm6, %v256_v21  ;;  %v414_v23 = vpop.f32.mrb[6].mxu0  ;;  %v321_v26 = vadd.f32 %v429_v24, %v359_v62  ;;  %v315_v28 = vpop.f32.mrb[7].mxu1 }
  0xe7   :  { %v271_v25 = vadd.f32 %v414_v23, %v359_v62  ;;  %v265_v27 = vpop.f32.mrb[7].mxu0  ;;  %v316_v30 = vadd.f32 %v359_v62, %v315_v28 }
  0xe8   :  { %v266_v29 = vadd.f32 %v359_v62, %v265_v27  ;;  %352 = vst.msk [vmem:[%s659_s4 + $0x88] sm:$0xff] %vm334_vm6, %v321_v26 }
  0xe9   :  { %342 = vst.msk [vmem:[%s659_s4 + $0x38] sm:$0xff] %vm334_vm6, %v271_v25  ;;  %351 = vst.msk [vmem:[%s659_s4 + $0x80] sm:$0xff] %vm334_vm6, %v316_v30  ;;  %v432_v32 = vpop.f32.mrb[8].mxu1 }
  0xea   :  { %341 = vst.msk [vmem:[%s659_s4 + $0x30] sm:$0xff] %vm334_vm6, %v266_v29  ;;  %v417_v31 = vpop.f32.mrb[8].mxu0  ;;  %v331_v34 = vadd.f32 %v432_v32, %v359_v62  ;;  %v325_v36 = vpop.f32.mrb[9].mxu1 }
  0xeb   :  { %v281_v33 = vadd.f32 %v417_v31, %v359_v62  ;;  %v275_v35 = vpop.f32.mrb[9].mxu0  ;;  %v326_v38 = vadd.f32 %v359_v62, %v325_v36 }
  0xec   :  { %v276_v37 = vadd.f32 %v359_v62, %v275_v35  ;;  %354 = vst.msk [vmem:[%s659_s4 + $0x98] sm:$0xff] %vm334_vm6, %v331_v34 }
  0xed   :  { %344 = vst.msk [vmem:[%s659_s4 + $0x48] sm:$0xff] %vm334_vm6, %v281_v33  ;;  %353 = vst.msk [vmem:[%s659_s4 + $0x90] sm:$0xff] %vm334_vm6, %v326_v38 }
  0xee   :  { %343 = vst.msk [vmem:[%s659_s4 + $0x40] sm:$0xff] %vm334_vm6, %v276_v37 }

// kernel: tf_dsdprnn_forward.35
= control target key start
LH: loop header
LB: loop body
LE: loop exit
PB: predicated region body
PF: predicated region fallthrough
CT: control target
= control target key end

     0   :  { %vm48_vm0 = vcmask 130048   ;;  %vm178_vm1 = vcmask 64512   ;;  %s345_s2 = inlined_call_operand.vmem [shape: f32[16,8], index: 2, kind: input, shape index: {}]   ;;  %s346_s0 = inlined_call_operand.vmem [shape: f32[64,16], index: 0, kind: input, shape index: {}]   ;;  %s347_s1 = inlined_call_operand.vmem [shape: f32[64,16], index: 1, kind: input, shape index: {}]   ;;  %s348_s3 = inlined_call_operand.vmem [shape: f32[64,8], index: 3, kind: output, shape index: {}]  }
   0x1   :  { %v46_v0 = vld [vmem:[%s345_s2] sm:$0xff]  ;;  %v47_v1 = vld [vmem:[%s345_s2 + $0x8] sm:$0xff]  ;;  %v16_v14 = vld [vmem:[%s346_s0 + $0x10] sm:$0xff] }
   0x2   :  { %v14_v2 = vld [vmem:[%s346_s0] sm:$0xff]  ;;  %v225_v3 = vpack.c.bf16 %v47_v1, %v46_v0  ;;  %v15_v9 = vld [vmem:[%s346_s0 + $0x8] sm:$0xff]  ;;  %v24_v15 = vld [vmem:[%s347_s1 + $0x10] sm:$0xff] }
   0x3   :  { %v22_v4 = vld [vmem:[%s347_s1] sm:$0xff]  ;;  %v23_v10 = vld [vmem:[%s347_s1 + $0x8] sm:$0xff]  ;;  %v32_v19 = vmax.f32 %v24_v15, 0.0  ;;  %v20_v20 = vld [vmem:[%s346_s0 + $0x30] sm:$0xff] }
   0x4   :  { %v18_v5 = vld [vmem:[%s346_s0 + $0x20] sm:$0xff]  ;;  %v30_v7 = vmax.f32 %v22_v4, 0.0  ;;  %v19_v11 = vld [vmem:[%s346_s0 + $0x28] sm:$0xff]  ;;  %226 = vmatprep.subr.bf16.mxu0 %v225_v3  ;;  %229 = vmatprep.subr.bf16.mxu1 %v225_v3  ;;  %v31_v12 = vmax.f32 %v23_v10, 0.0  ;;  %v28_v21 = vld [vmem:[%s347_s1 + $0x30] sm:$0xff] }
   0x5   :  { %v26_v6 = vld [vmem:[%s347_s1 + $0x20] sm:$0xff]  ;;  %v27_v13 = vld [vmem:[%s347_s1 + $0x28] sm:$0xff]  ;;  %228 = vmatpush3.bf16.msra.mxu0 %v225_v3  ;;  %230 = vmatpush3.bf16.msra.mxu1 %v225_v3  ;;  %v17_v22 = vld [vmem:[%s346_s0 + $0x18] sm:$0xff]  ;;  %v36_v24 = vmax.f32 %v28_v21, 0.0  ;;  %v40_v29 = vmul.f32 %v32_v19, %v16_v14 }
   0x6   :  { %v34_v8 = vmax.f32 %v26_v6, 0.0  ;;  %v38_v16 = vmul.f32 %v30_v7, %v14_v2  ;;  %v35_v18 = vmax.f32 %v27_v13, 0.0  ;;  %v39_v23 = vmul.f32 %v31_v12, %v15_v9  ;;  %v25_v25 = vld [vmem:[%s347_s1 + $0x18] sm:$0xff] }
   0x7   :  { %v21_v26 = vld [vmem:[%s346_s0 + $0x38] sm:$0xff]  ;;  %v33_v30 = vmax.f32 %v25_v25, 0.0  ;;  %v44_v32 = vmul.f32 %v36_v24, %v20_v20 }
   0x8   :  { %v42_v17 = vmul.f32 %v34_v8, %v18_v5  ;;  %v29_v27 = vld [vmem:[%s347_s1 + $0x38] sm:$0xff]  ;;  %213 = vmatprep.mubr.msk.f32.mxu0 %vm48_vm0, %v38_v16  ;;  %v43_v28 = vmul.f32 %v35_v18, %v19_v11 }
   0x9   :  { %v37_v31 = vmax.f32 %v29_v27, 0.0  ;;  %214 = vmatmul.mubr.msk.f32.vlgmr.msra.gmra.mrb[0].mxu0 %vm48_vm0, %v39_v23  ;;  %v41_v33 = vmul.f32 %v33_v30, %v17_v22 }
   0xa   :  { %219 = vmatprep.mubr.msk.f32.mxu1 %vm48_vm0, %v42_v17  ;;  %216 = vmatprep.mubr.msk.f32.mxu0 %vm48_vm0, %v40_v29 }
   0xb   :  { %220 = vmatmul.mubr.msk.f32.vlgmr.msra.gmra.mrb[0].mxu1 %vm48_vm0, %v43_v28  ;;  %v45_v34 = vmul.f32 %v37_v31, %v21_v26 }
   0xc   :  { %222 = vmatprep.mubr.msk.f32.mxu1 %vm48_vm0, %v44_v32 }
   0xd   :  { %217 = vmatmul.mubr.msk.f32.gmra.mrb[2].mxu0 %vm48_vm0, %v41_v33 }
   0xf   :  { %223 = vmatmul.mubr.msk.f32.gmra.mrb[2].mxu1 %vm48_vm0, %v45_v34 }
  0xdc   :  { %v215_v35 = vpop.f32.mrb[0].mxu0 }
  0xdd   :  { %180 = vst.msk [vmem:[%s348_s3 + $0x8] sm:$0xff] %vm178_vm1, %v215_v35  ;;  %v139_v37 = vpop.f32.mrb[1].mxu0 }
  0xde   :  { %v221_v36 = vpop.f32.mrb[0].mxu1  ;;  %179 = vst.msk [vmem:[%s348_s3] sm:$0xff] %vm178_vm1, %v139_v37 }
  0xdf   :  { %184 = vst.msk [vmem:[%s348_s3 + $0x28] sm:$0xff] %vm178_vm1, %v221_v36  ;;  %v159_v38 = vpop.f32.mrb[1].mxu1 }
  0xe0   :  { %183 = vst.msk [vmem:[%s348_s3 + $0x20] sm:$0xff] %vm178_vm1, %v159_v38  ;;  %v218_v39 = vpop.f32.mrb[2].mxu0 }
  0xe1   :  { %182 = vst.msk [vmem:[%s348_s3 + $0x18] sm:$0xff] %vm178_vm1, %v218_v39  ;;  %v149_v41 = vpop.f32.mrb[3].mxu0 }
  0xe2   :  { %v224_v40 = vpop.f32.mrb[2].mxu1  ;;  %181 = vst.msk [vmem:[%s348_s3 + $0x10] sm:$0xff] %vm178_vm1, %v149_v41 }
  0xe3   :  { %186 = vst.msk [vmem:[%s348_s3 + $0x38] sm:$0xff] %vm178_vm1, %v224_v40  ;;  %v169_v42 = vpop.f32.mrb[3].mxu1 }
  0xe4   :  { %185 = vst.msk [vmem:[%s348_s3 + $0x30] sm:$0xff] %vm178_vm1, %v169_v42 }

</bundles_post_ra>
